<compile_context>
chip_gen: v5e
topology: v5e:2x2
jax: 0.10.0
libtpu: 0.0.40
codegen_flags: <defaults>
</compile_context>

<pallas_src>
import math

import jax
import jax.numpy as jnp
from jax.experimental import pallas as pl
from jax.experimental.pallas import tpu as pltpu


def _round_up(x, m):
    return -(-x // m) * m


def _make_corr_kernel(pad_W, C, K, md, s2, ngr, out_len):
    ngw = 2 * ngr + 1
    inv_sumelems = 1.0 / float(K * K * C)

    def kernel(p1_ref, p2_ref, out_ref, acc_ref):
        # p1_ref : (1, Ct, len1)            resident frame-1 channel chunk (flattened spatial)
        # p2_ref : (1, Ct, len2)            resident frame-2 channel chunk (flattened spatial)
        # out_ref: (1, ngw, ngw, out_len)   lane-dense output rows for this batch element
        # acc_ref: (ngw, ngw, out_len) f32  accumulator across channel chunks
        c = pl.program_id(1)

        @pl.when(c == 0)
        def _init():
            acc_ref[...] = jnp.zeros_like(acc_ref)

        # K == 1 (FlowNet/PWC default): the single frame-1 slab is displacement-independent,
        # hoist it out of every displacement loop.  (For bf16 inputs the upcast is per-slab;
        # TODO(synk): on v6e/v7x the p2 slab could stay bf16 for the multiply.)
        a_hoisted = None
        if K == 1:
            off1 = md * pad_W + md
            a_hoisted = p1_ref[0, :, off1:off1 + out_len].astype(jnp.float32)

        # TODO(synk): for production ngw (21) the di loop should become a fori_loop / grid
        # axis to bound live ranges; that needs dynamic lane-offset slices (or a DMA-staged
        # window), avoided here so every slice start stays static.
        for gj in range(ngw):                 # row displacement dj
            dj = gj - ngr
            for j in range(K):
                for i in range(K):
                    if a_hoisted is not None:
                        a = a_hoisted
                    else:
                        off1 = (md + j) * pad_W + (md + i)
                        a = p1_ref[0, :, off1:off1 + out_len].astype(jnp.float32)
                    for gi in range(ngw):     # column displacement di
                        di = gi - ngr
                        off2 = (md + j + dj * s2) * pad_W + (md + i + di * s2)
                        b = p2_ref[0, :, off2:off2 + out_len].astype(jnp.float32)
                        # channel reduction over the sublane axis; spatial stays lane-dense
                        acc_ref[gj, gi:gi + 1, :] += jnp.sum(a * b, axis=0, keepdims=True)

        @pl.when(c == pl.num_programs(1) - 1)
        def _finalize():
            out_ref[0, :, :, :] = (acc_ref[...] * inv_sumelems).astype(out_ref.dtype)

    return kernel


def correlation(input1, input2, pad_size=4, kernel_size=1, max_displacement=4,
                stride1=1, stride2=2, corr_multiply=1, c_chunk=None):
    """Correlation layer forward. Inputs/outputs are NCHW (like the PyTorch module)."""
    assert corr_multiply == 1  # correlation_cuda implements multiply-correlation only
    assert kernel_size >= 1 and kernel_size % 2 == 1
    B, C, H, W = input1.shape
    assert input2.shape == input1.shape

    K, md, s1, s2 = kernel_size, max_displacement, stride1, stride2
    kr = (K - 1) // 2
    border = md + kr
    pad_H, pad_W = H + 2 * pad_size, W + 2 * pad_size
    assert pad_H > 2 * border and pad_W > 2 * border
    if (pad_H - 2 * border) % s1 != 0 or (pad_W - 2 * border) % s1 != 0:
        # TODO(synk): stride1 configs with a ceil'd output size read past the padded frame
        # in the CUDA layer; that boundary behaviour is not reproduced here.
        raise NotImplementedError("stride1 must evenly divide the padded valid region")
    top_H = (pad_H - 2 * border) // s1
    top_W = (pad_W - 2 * border) // s1
    ngr = md // s2
    ngw = 2 * ngr + 1
    D = ngw * ngw

    # Lane-dense slab geometry: one output "row" per (dj, di) spans all rows_needed rows of
    # the padded frame flattened onto the lane axis (128-aligned -> unmasked stores).
    rows_needed = s1 * (top_H - 1) + 1
    row_block = rows_needed * pad_W
    out_len = _round_up(row_block, 128)
    # TODO(synk): out_len spans all pad_W columns per row although only top_W survive the
    # crop (~1.5x extra VPU/XLU work at FlowNetC geometry); a packed per-row layout would
    # remove that waste but gives up the unmasked-store property.

    # Trim the resident slabs to exactly what the kernel reads (128-aligned).
    off1_max = (md + K - 1) * pad_W + (md + K - 1)
    off2_max = (md + K - 1 + ngr * s2) * pad_W + (md + K - 1 + ngr * s2)
    len1 = _round_up(off1_max + out_len, 128)
    len2 = _round_up(off2_max + out_len, 128)

    # Channel-chunk reduction axis: bounds per-step blocks for v7x's 64 MiB VMEM at
    # production C; degenerates to a single full-C chunk for small C (preferred on v5e/v6e).
    if c_chunk is None:
        if C <= 128:
            c_chunk = C
        elif C % 128 == 0:
            c_chunk = 128
        elif C % 64 == 0:
            c_chunk = 64
        else:
            c_chunk = C
    assert C % c_chunk == 0 and (c_chunk == C or c_chunk % 8 == 0)
    n_ck = C // c_chunk

    # Zero-pad spatially, flatten spatial onto the lane axis, and pad/trim the tail so
    # every per-displacement slab slice stays in bounds (extra lanes are cropped below).
    pad = ((0, 0), (0, 0), (pad_size, pad_size), (pad_size, pad_size))
    flat = pad_H * pad_W
    p1f = jnp.pad(input1, pad).reshape(B, C, flat)
    p2f = jnp.pad(input2, pad).reshape(B, C, flat)
    p1f = p1f[:, :, :len1] if len1 <= flat else jnp.pad(p1f, ((0, 0), (0, 0), (0, len1 - flat)))
    p2f = p2f[:, :, :len2] if len2 <= flat else jnp.pad(p2f, ((0, 0), (0, 0), (0, len2 - flat)))

    kernel = _make_corr_kernel(pad_W, C, K, md, s2, ngr, out_len)

    itemsize = jnp.dtype(input1.dtype).itemsize
    # Double-buffered input blocks + double-buffered output block + f32 accumulator, with
    # 2x headroom for in-kernel f32 temps / relayouts.  Raise the limit only when needed.
    block_bytes = (2 * c_chunk * (len1 + len2) * itemsize
                   + 2 * ngw * ngw * out_len * itemsize
                   + ngw * ngw * out_len * 4)
    vmem_limit = int(min(max(32 * 1024 * 1024, 2 * block_bytes), 100 * 1024 * 1024))

    cost = pl.CostEstimate(
        flops=int(2 * B * D * K * K * C * out_len),
        transcendentals=0,
        bytes_accessed=int(B * (C * (len1 + len2) + D * out_len) * itemsize),
    )

    # TODO(synk): for v7x megacore balance with B == 1, promote the dj sweep to a second
    # "parallel" grid axis; that needs either dynamic lane-offset slices of the resident
    # frame-2 slab or a manually DMA'd per-dj window — both avoided here for robustness.
    out_wide = pl.pallas_call(
        kernel,
        out_shape=jax.ShapeDtypeStruct((B, ngw, ngw, out_len), input1.dtype),
        grid_spec=pltpu.PrefetchScalarGridSpec(
            num_scalar_prefetch=0,
            grid=(B, n_ck),
            in_specs=[
                pl.BlockSpec((1, c_chunk, len1), lambda b, c: (b, c, 0)),  # frame 1 chunk
                pl.BlockSpec((1, c_chunk, len2), lambda b, c: (b, c, 0)),  # frame 2 chunk
            ],
            out_specs=pl.BlockSpec((1, ngw, ngw, out_len), lambda b, c: (b, 0, 0, 0)),
            scratch_shapes=[pltpu.VMEM((ngw, ngw, out_len), jnp.float32)],
        ),
        compiler_params=pltpu.CompilerParams(
            dimension_semantics=("parallel", "arbitrary"),
            vmem_limit_bytes=vmem_limit,
        ),
        cost_estimate=cost,
    )(p1f, p2f)

    # lane-dense slabs -> NCHW (B, D, top_H, top_W)
    out = out_wide.reshape(B, D, out_len)[:, :, :row_block]
    out = out.reshape(B, D, rows_needed, pad_W)[:, :, ::s1, ::s1][:, :, :, :top_W]
    return out


def correlation_reference(input1, input2, pad_size, kernel_size, max_displacement,
                          stride1, stride2):
    """Pure-JAX reference (NCHW in / NCHW out) for correctness checking."""
    B, C, H, W = input1.shape
    kr = (kernel_size - 1) // 2
    border = max_displacement + kr
    pad_H = H + 2 * pad_size
    top_H = int(math.ceil((pad_H - 2 * border) / stride1))
    top_W = int(math.ceil((W + 2 * pad_size - 2 * border) / stride1))
    ngr = max_displacement // stride2
    pad = ((0, 0), (0, 0), (pad_size, pad_size), (pad_size, pad_size))
    p1 = jnp.pad(input1, pad).astype(jnp.float32)
    p2 = jnp.pad(input2, pad).astype(jnp.float32)
    md, s1, s2, K = max_displacement, stride1, stride2, kernel_size
    outs = []
    for dj in range(-ngr, ngr + 1):
        for di in range(-ngr, ngr + 1):
            acc = jnp.zeros((B, top_H, top_W), jnp.float32)
            for j in range(K):
                for i in range(K):
                    r1, c1 = md + j, md + i
                    r2, c2 = md + j + dj * s2, md + i + di * s2
                    a = jax.lax.slice(
                        p1, (0, 0, r1, c1),
                        (B, C, r1 + s1 * (top_H - 1) + 1, c1 + s1 * (top_W - 1) + 1),
                        (1, 1, s1, s1))
                    b = jax.lax.slice(
                        p2, (0, 0, r2, c2),
                        (B, C, r2 + s1 * (top_H - 1) + 1, c2 + s1 * (top_W - 1) + 1),
                        (1, 1, s1, s1))
                    acc = acc + jnp.sum(a * b, axis=1)
            outs.append(acc / float(K * K * C))
    return jnp.stack(outs, axis=1).astype(input1.dtype)


if __name__ == "__main__":
    # Common FlowNetC/PWC-Net configuration (module defaults with meaningful pad/disp).
    pad_size, kernel_size, max_displacement, stride1, stride2, corr_multiply = 4, 1, 4, 1, 2, 1

    key = jax.random.PRNGKey(0)
    k1, k2 = jax.random.split(key)
    B, C, H, W = 2, 4, 16, 16
    x1 = jax.random.normal(k1, (B, C, H, W), dtype=jnp.float32)
    x2 = jax.random.normal(k2, (B, C, H, W), dtype=jnp.float32)

    out = correlation(x1, x2, pad_size, kernel_size, max_displacement,
                      stride1, stride2, corr_multiply)
    out = jax.block_until_ready(out)

    ref = correlation_reference(x1, x2, pad_size, kernel_size, max_displacement,
                                stride1, stride2)
    ref = jax.block_until_ready(ref)

    assert out.shape == ref.shape, (out.shape, ref.shape)
    assert jnp.allclose(out, ref, atol=1e-5, rtol=1e-5)

    # Also exercise the channel-chunk reduction path (n_ck > 1, accumulator across chunks).
    B2, C2 = 1, 16
    y1 = jax.random.normal(jax.random.PRNGKey(1), (B2, C2, H, W), dtype=jnp.float32)
    y2 = jax.random.normal(jax.random.PRNGKey(2), (B2, C2, H, W), dtype=jnp.float32)
    out2 = correlation(y1, y2, pad_size, kernel_size, max_displacement,
                       stride1, stride2, corr_multiply, c_chunk=8)
    out2 = jax.block_until_ready(out2)
    ref2 = correlation_reference(y1, y2, pad_size, kernel_size, max_displacement,
                                 stride1, stride2)
    assert out2.shape == ref2.shape, (out2.shape, ref2.shape)
    assert jnp.allclose(out2, ref2, atol=1e-5, rtol=1e-5)

    print("KERNEL_OK")
</pallas_src>

<mosaic_0001>
module attributes {stable_mosaic.version = 11 : i64} {
  func.func @kernel(%arg0: i32, %arg1: i32, %arg2: memref<1x4x512xf32, #tpu.memory_space<vmem>>, %arg3: memref<1x4x640xf32, #tpu.memory_space<vmem>>, %arg4: memref<1x5x5x384xf32, #tpu.memory_space<vmem>>, %arg5: memref<5x5x384xf32, #tpu.memory_space<vmem>>) attributes {dimension_semantics = [#tpu.dimension_semantics<parallel>, #tpu.dimension_semantics<arbitrary>], iteration_bounds = array<i64: 2, 1>, scalar_prefetch = 0 : i64, scratch_operands = 1 : i64, tpu.core_type = #tpu.core_type<tc>, window_params = [{transform_indices = @transform_0, window_bounds = array<i64: 1, 4, 512>}, {transform_indices = @transform_1, window_bounds = array<i64: 1, 4, 640>}, {transform_indices = @transform_2, window_bounds = array<i64: 1, 5, 5, 384>}]} {
    %c0_i32 = arith.constant 0 : i32
    %0 = arith.cmpi eq, %arg1, %c0_i32 : i32
    %1 = arith.extui %0 : i1 to i32
    %c0_i32_0 = arith.constant 0 : i32
    %2 = arith.cmpi ne, %1, %c0_i32_0 : i32
    scf.if %2 {
      %cst_228 = arith.constant 0.000000e+00 : f32
      %283 = vector.broadcast %cst_228 : f32 to vector<5x5x384xf32>
      %c0_229 = arith.constant 0 : index
      %c0_230 = arith.constant 0 : index
      %c0_231 = arith.constant 0 : index
      %284 = vector.load %arg5[%c0_229, %c0_230, %c0_231] : memref<5x5x384xf32, #tpu.memory_space<vmem>>, vector<5x5x384xf32>
      tpu.vector_store %arg5[%c0_229, %c0_230, %c0_231], %283 {strides = array<i32>} : memref<5x5x384xf32, #tpu.memory_space<vmem>>, vector<5x5x384xf32>,
    } else {
    }
    %c0 = arith.constant 0 : index
    %c0_1 = arith.constant 0 : index
    %c100 = arith.constant 100 : index
    %3 = vector.load %arg2[%c0, %c0_1, %c100] : memref<1x4x512xf32, #tpu.memory_space<vmem>>, vector<1x4x384xf32>
    %4 = vector.shape_cast %3 : vector<1x4x384xf32> to vector<4x384xf32>
    %c0_2 = arith.constant 0 : index
    %c0_3 = arith.constant 0 : index
    %c0_4 = arith.constant 0 : index
    %5 = vector.load %arg3[%c0_2, %c0_3, %c0_4] : memref<1x4x640xf32, #tpu.memory_space<vmem>>, vector<1x4x384xf32>
    %6 = vector.shape_cast %5 : vector<1x4x384xf32> to vector<4x384xf32>
    %c0_5 = arith.constant 0 : index
    %c0_6 = arith.constant 0 : index
    %c0_7 = arith.constant 0 : index
    %7 = vector.load %arg5[%c0_5, %c0_6, %c0_7] : memref<5x5x384xf32, #tpu.memory_space<vmem>>, vector<1x1x384xf32>
    %8 = vector.shape_cast %7 : vector<1x1x384xf32> to vector<1x384xf32>
    %9 = arith.mulf %4, %6 : vector<4x384xf32>
    %cst = arith.constant dense<0.000000e+00> : vector<384xf32>
    %10 = vector.multi_reduction <add>, %9, %cst [0] : vector<4x384xf32> to vector<384xf32>
    %11 = vector.shape_cast %10 : vector<384xf32> to vector<1x384xf32>
    %12 = arith.addf %8, %11 : vector<1x384xf32>
    %c0_8 = arith.constant 0 : index
    %c0_9 = arith.constant 0 : index
    %c0_10 = arith.constant 0 : index
    %13 = vector.load %arg5[%c0_8, %c0_9, %c0_10] : memref<5x5x384xf32, #tpu.memory_space<vmem>>, vector<1x1x384xf32>
    %14 = vector.shape_cast %13 : vector<1x1x384xf32> to vector<1x384xf32>
    %15 = vector.shape_cast %12 : vector<1x384xf32> to vector<1x1x384xf32>
    tpu.vector_store %arg5[%c0_8, %c0_9, %c0_10], %15 {strides = array<i32>} : memref<5x5x384xf32, #tpu.memory_space<vmem>>, vector<1x1x384xf32>,
    %c0_11 = arith.constant 0 : index
    %c0_12 = arith.constant 0 : index
    %c2 = arith.constant 2 : index
    %16 = vector.load %arg3[%c0_11, %c0_12, %c2] : memref<1x4x640xf32, #tpu.memory_space<vmem>>, vector<1x4x384xf32>
    %17 = vector.shape_cast %16 : vector<1x4x384xf32> to vector<4x384xf32>
    %c0_13 = arith.constant 0 : index
    %c1 = arith.constant 1 : index
    %c0_14 = arith.constant 0 : index
    %18 = vector.load %arg5[%c0_13, %c1, %c0_14] : memref<5x5x384xf32, #tpu.memory_space<vmem>>, vector<1x1x384xf32>
    %19 = vector.shape_cast %18 : vector<1x1x384xf32> to vector<1x384xf32>
    %20 = arith.mulf %4, %17 : vector<4x384xf32>
    %cst_15 = arith.constant dense<0.000000e+00> : vector<384xf32>
    %21 = vector.multi_reduction <add>, %20, %cst_15 [0] : vector<4x384xf32> to vector<384xf32>
    %22 = vector.shape_cast %21 : vector<384xf32> to vector<1x384xf32>
    %23 = arith.addf %19, %22 : vector<1x384xf32>
    %c0_16 = arith.constant 0 : index
    %c1_17 = arith.constant 1 : index
    %c0_18 = arith.constant 0 : index
    %24 = vector.load %arg5[%c0_16, %c1_17, %c0_18] : memref<5x5x384xf32, #tpu.memory_space<vmem>>, vector<1x1x384xf32>
    %25 = vector.shape_cast %24 : vector<1x1x384xf32> to vector<1x384xf32>
    %26 = vector.shape_cast %23 : vector<1x384xf32> to vector<1x1x384xf32>
    tpu.vector_store %arg5[%c0_16, %c1_17, %c0_18], %26 {strides = array<i32>} : memref<5x5x384xf32, #tpu.memory_space<vmem>>, vector<1x1x384xf32>,
    %c0_19 = arith.constant 0 : index
    %c0_20 = arith.constant 0 : index
    %c4 = arith.constant 4 : index
    %27 = vector.load %arg3[%c0_19, %c0_20, %c4] : memref<1x4x640xf32, #tpu.memory_space<vmem>>, vector<1x4x384xf32>
    %28 = vector.shape_cast %27 : vector<1x4x384xf32> to vector<4x384xf32>
    %c0_21 = arith.constant 0 : index
    %c2_22 = arith.constant 2 : index
    %c0_23 = arith.constant 0 : index
    %29 = vector.load %arg5[%c0_21, %c2_22, %c0_23] : memref<5x5x384xf32, #tpu.memory_space<vmem>>, vector<1x1x384xf32>
    %30 = vector.shape_cast %29 : vector<1x1x384xf32> to vector<1x384xf32>
    %31 = arith.mulf %4, %28 : vector<4x384xf32>
    %cst_24 = arith.constant dense<0.000000e+00> : vector<384xf32>
    %32 = vector.multi_reduction <add>, %31, %cst_24 [0] : vector<4x384xf32> to vector<384xf32>
    %33 = vector.shape_cast %32 : vector<384xf32> to vector<1x384xf32>
    %34 = arith.addf %30, %33 : vector<1x384xf32>
    %c0_25 = arith.constant 0 : index
    %c2_26 = arith.constant 2 : index
    %c0_27 = arith.constant 0 : index
    %35 = vector.load %arg5[%c0_25, %c2_26, %c0_27] : memref<5x5x384xf32, #tpu.memory_space<vmem>>, vector<1x1x384xf32>
    %36 = vector.shape_cast %35 : vector<1x1x384xf32> to vector<1x384xf32>
    %37 = vector.shape_cast %34 : vector<1x384xf32> to vector<1x1x384xf32>
    tpu.vector_store %arg5[%c0_25, %c2_26, %c0_27], %37 {strides = array<i32>} : memref<5x5x384xf32, #tpu.memory_space<vmem>>, vector<1x1x384xf32>,
    %c0_28 = arith.constant 0 : index
    %c0_29 = arith.constant 0 : index
    %c6 = arith.constant 6 : index
    %38 = vector.load %arg3[%c0_28, %c0_29, %c6] : memref<1x4x640xf32, #tpu.memory_space<vmem>>, vector<1x4x384xf32>
    %39 = vector.shape_cast %38 : vector<1x4x384xf32> to vector<4x384xf32>
    %c0_30 = arith.constant 0 : index
    %c3 = arith.constant 3 : index
    %c0_31 = arith.constant 0 : index
    %40 = vector.load %arg5[%c0_30, %c3, %c0_31] : memref<5x5x384xf32, #tpu.memory_space<vmem>>, vector<1x1x384xf32>
    %41 = vector.shape_cast %40 : vector<1x1x384xf32> to vector<1x384xf32>
    %42 = arith.mulf %4, %39 : vector<4x384xf32>
    %cst_32 = arith.constant dense<0.000000e+00> : vector<384xf32>
    %43 = vector.multi_reduction <add>, %42, %cst_32 [0] : vector<4x384xf32> to vector<384xf32>
    %44 = vector.shape_cast %43 : vector<384xf32> to vector<1x384xf32>
    %45 = arith.addf %41, %44 : vector<1x384xf32>
    %c0_33 = arith.constant 0 : index
    %c3_34 = arith.constant 3 : index
    %c0_35 = arith.constant 0 : index
    %46 = vector.load %arg5[%c0_33, %c3_34, %c0_35] : memref<5x5x384xf32, #tpu.memory_space<vmem>>, vector<1x1x384xf32>
    %47 = vector.shape_cast %46 : vector<1x1x384xf32> to vector<1x384xf32>
    %48 = vector.shape_cast %45 : vector<1x384xf32> to vector<1x1x384xf32>
    tpu.vector_store %arg5[%c0_33, %c3_34, %c0_35], %48 {strides = array<i32>} : memref<5x5x384xf32, #tpu.memory_space<vmem>>, vector<1x1x384xf32>,
    %c0_36 = arith.constant 0 : index
    %c0_37 = arith.constant 0 : index
    %c8 = arith.constant 8 : index
    %49 = vector.load %arg3[%c0_36, %c0_37, %c8] : memref<1x4x640xf32, #tpu.memory_space<vmem>>, vector<1x4x384xf32>
    %50 = vector.shape_cast %49 : vector<1x4x384xf32> to vector<4x384xf32>
    %c0_38 = arith.constant 0 : index
    %c4_39 = arith.constant 4 : index
    %c0_40 = arith.constant 0 : index
    %51 = vector.load %arg5[%c0_38, %c4_39, %c0_40] : memref<5x5x384xf32, #tpu.memory_space<vmem>>, vector<1x1x384xf32>
    %52 = vector.shape_cast %51 : vector<1x1x384xf32> to vector<1x384xf32>
    %53 = arith.mulf %4, %50 : vector<4x384xf32>
    %cst_41 = arith.constant dense<0.000000e+00> : vector<384xf32>
    %54 = vector.multi_reduction <add>, %53, %cst_41 [0] : vector<4x384xf32> to vector<384xf32>
    %55 = vector.shape_cast %54 : vector<384xf32> to vector<1x384xf32>
    %56 = arith.addf %52, %55 : vector<1x384xf32>
    %c0_42 = arith.constant 0 : index
    %c4_43 = arith.constant 4 : index
    %c0_44 = arith.constant 0 : index
    %57 = vector.load %arg5[%c0_42, %c4_43, %c0_44] : memref<5x5x384xf32, #tpu.memory_space<vmem>>, vector<1x1x384xf32>
    %58 = vector.shape_cast %57 : vector<1x1x384xf32> to vector<1x384xf32>
    %59 = vector.shape_cast %56 : vector<1x384xf32> to vector<1x1x384xf32>
    tpu.vector_store %arg5[%c0_42, %c4_43, %c0_44], %59 {strides = array<i32>} : memref<5x5x384xf32, #tpu.memory_space<vmem>>, vector<1x1x384xf32>,
    %c0_45 = arith.constant 0 : index
    %c0_46 = arith.constant 0 : index
    %c48 = arith.constant 48 : index
    %60 = vector.load %arg3[%c0_45, %c0_46, %c48] : memref<1x4x640xf32, #tpu.memory_space<vmem>>, vector<1x4x384xf32>
    %61 = vector.shape_cast %60 : vector<1x4x384xf32> to vector<4x384xf32>
    %c1_47 = arith.constant 1 : index
    %c0_48 = arith.constant 0 : index
    %c0_49 = arith.constant 0 : index
    %62 = vector.load %arg5[%c1_47, %c0_48, %c0_49] : memref<5x5x384xf32, #tpu.memory_space<vmem>>, vector<1x1x384xf32>
    %63 = vector.shape_cast %62 : vector<1x1x384xf32> to vector<1x384xf32>
    %64 = arith.mulf %4, %61 : vector<4x384xf32>
    %cst_50 = arith.constant dense<0.000000e+00> : vector<384xf32>
    %65 = vector.multi_reduction <add>, %64, %cst_50 [0] : vector<4x384xf32> to vector<384xf32>
    %66 = vector.shape_cast %65 : vector<384xf32> to vector<1x384xf32>
    %67 = arith.addf %63, %66 : vector<1x384xf32>
    %c1_51 = arith.constant 1 : index
    %c0_52 = arith.constant 0 : index
    %c0_53 = arith.constant 0 : index
    %68 = vector.load %arg5[%c1_51, %c0_52, %c0_53] : memref<5x5x384xf32, #tpu.memory_space<vmem>>, vector<1x1x384xf32>
    %69 = vector.shape_cast %68 : vector<1x1x384xf32> to vector<1x384xf32>
    %70 = vector.shape_cast %67 : vector<1x384xf32> to vector<1x1x384xf32>
    tpu.vector_store %arg5[%c1_51, %c0_52, %c0_53], %70 {strides = array<i32>} : memref<5x5x384xf32, #tpu.memory_space<vmem>>, vector<1x1x384xf32>,
    %c0_54 = arith.constant 0 : index
    %c0_55 = arith.constant 0 : index
    %c50 = arith.constant 50 : index
    %71 = vector.load %arg3[%c0_54, %c0_55, %c50] : memref<1x4x640xf32, #tpu.memory_space<vmem>>, vector<1x4x384xf32>
    %72 = vector.shape_cast %71 : vector<1x4x384xf32> to vector<4x384xf32>
    %c1_56 = arith.constant 1 : index
    %c1_57 = arith.constant 1 : index
    %c0_58 = arith.constant 0 : index
    %73 = vector.load %arg5[%c1_56, %c1_57, %c0_58] : memref<5x5x384xf32, #tpu.memory_space<vmem>>, vector<1x1x384xf32>
    %74 = vector.shape_cast %73 : vector<1x1x384xf32> to vector<1x384xf32>
    %75 = arith.mulf %4, %72 : vector<4x384xf32>
    %cst_59 = arith.constant dense<0.000000e+00> : vector<384xf32>
    %76 = vector.multi_reduction <add>, %75, %cst_59 [0] : vector<4x384xf32> to vector<384xf32>
    %77 = vector.shape_cast %76 : vector<384xf32> to vector<1x384xf32>
    %78 = arith.addf %74, %77 : vector<1x384xf32>
    %c1_60 = arith.constant 1 : index
    %c1_61 = arith.constant 1 : index
    %c0_62 = arith.constant 0 : index
    %79 = vector.load %arg5[%c1_60, %c1_61, %c0_62] : memref<5x5x384xf32, #tpu.memory_space<vmem>>, vector<1x1x384xf32>
    %80 = vector.shape_cast %79 : vector<1x1x384xf32> to vector<1x384xf32>
    %81 = vector.shape_cast %78 : vector<1x384xf32> to vector<1x1x384xf32>
    tpu.vector_store %arg5[%c1_60, %c1_61, %c0_62], %81 {strides = array<i32>} : memref<5x5x384xf32, #tpu.memory_space<vmem>>, vector<1x1x384xf32>,
    %c0_63 = arith.constant 0 : index
    %c0_64 = arith.constant 0 : index
    %c52 = arith.constant 52 : index
    %82 = vector.load %arg3[%c0_63, %c0_64, %c52] : memref<1x4x640xf32, #tpu.memory_space<vmem>>, vector<1x4x384xf32>
    %83 = vector.shape_cast %82 : vector<1x4x384xf32> to vector<4x384xf32>
    %c1_65 = arith.constant 1 : index
    %c2_66 = arith.constant 2 : index
    %c0_67 = arith.constant 0 : index
    %84 = vector.load %arg5[%c1_65, %c2_66, %c0_67] : memref<5x5x384xf32, #tpu.memory_space<vmem>>, vector<1x1x384xf32>
    %85 = vector.shape_cast %84 : vector<1x1x384xf32> to vector<1x384xf32>
    %86 = arith.mulf %4, %83 : vector<4x384xf32>
    %cst_68 = arith.constant dense<0.000000e+00> : vector<384xf32>
    %87 = vector.multi_reduction <add>, %86, %cst_68 [0] : vector<4x384xf32> to vector<384xf32>
    %88 = vector.shape_cast %87 : vector<384xf32> to vector<1x384xf32>
    %89 = arith.addf %85, %88 : vector<1x384xf32>
    %c1_69 = arith.constant 1 : index
    %c2_70 = arith.constant 2 : index
    %c0_71 = arith.constant 0 : index
    %90 = vector.load %arg5[%c1_69, %c2_70, %c0_71] : memref<5x5x384xf32, #tpu.memory_space<vmem>>, vector<1x1x384xf32>
    %91 = vector.shape_cast %90 : vector<1x1x384xf32> to vector<1x384xf32>
    %92 = vector.shape_cast %89 : vector<1x384xf32> to vector<1x1x384xf32>
    tpu.vector_store %arg5[%c1_69, %c2_70, %c0_71], %92 {strides = array<i32>} : memref<5x5x384xf32, #tpu.memory_space<vmem>>, vector<1x1x384xf32>,
    %c0_72 = arith.constant 0 : index
    %c0_73 = arith.constant 0 : index
    %c54 = arith.constant 54 : index
    %93 = vector.load %arg3[%c0_72, %c0_73, %c54] : memref<1x4x640xf32, #tpu.memory_space<vmem>>, vector<1x4x384xf32>
    %94 = vector.shape_cast %93 : vector<1x4x384xf32> to vector<4x384xf32>
    %c1_74 = arith.constant 1 : index
    %c3_75 = arith.constant 3 : index
    %c0_76 = arith.constant 0 : index
    %95 = vector.load %arg5[%c1_74, %c3_75, %c0_76] : memref<5x5x384xf32, #tpu.memory_space<vmem>>, vector<1x1x384xf32>
    %96 = vector.shape_cast %95 : vector<1x1x384xf32> to vector<1x384xf32>
    %97 = arith.mulf %4, %94 : vector<4x384xf32>
    %cst_77 = arith.constant dense<0.000000e+00> : vector<384xf32>
    %98 = vector.multi_reduction <add>, %97, %cst_77 [0] : vector<4x384xf32> to vector<384xf32>
    %99 = vector.shape_cast %98 : vector<384xf32> to vector<1x384xf32>
    %100 = arith.addf %96, %99 : vector<1x384xf32>
    %c1_78 = arith.constant 1 : index
    %c3_79 = arith.constant 3 : index
    %c0_80 = arith.constant 0 : index
    %101 = vector.load %arg5[%c1_78, %c3_79, %c0_80] : memref<5x5x384xf32, #tpu.memory_space<vmem>>, vector<1x1x384xf32>
    %102 = vector.shape_cast %101 : vector<1x1x384xf32> to vector<1x384xf32>
    %103 = vector.shape_cast %100 : vector<1x384xf32> to vector<1x1x384xf32>
    tpu.vector_store %arg5[%c1_78, %c3_79, %c0_80], %103 {strides = array<i32>} : memref<5x5x384xf32, #tpu.memory_space<vmem>>, vector<1x1x384xf32>,
    %c0_81 = arith.constant 0 : index
    %c0_82 = arith.constant 0 : index
    %c56 = arith.constant 56 : index
    %104 = vector.load %arg3[%c0_81, %c0_82, %c56] : memref<1x4x640xf32, #tpu.memory_space<vmem>>, vector<1x4x384xf32>
    %105 = vector.shape_cast %104 : vector<1x4x384xf32> to vector<4x384xf32>
    %c1_83 = arith.constant 1 : index
    %c4_84 = arith.constant 4 : index
    %c0_85 = arith.constant 0 : index
    %106 = vector.load %arg5[%c1_83, %c4_84, %c0_85] : memref<5x5x384xf32, #tpu.memory_space<vmem>>, vector<1x1x384xf32>
    %107 = vector.shape_cast %106 : vector<1x1x384xf32> to vector<1x384xf32>
    %108 = arith.mulf %4, %105 : vector<4x384xf32>
    %cst_86 = arith.constant dense<0.000000e+00> : vector<384xf32>
    %109 = vector.multi_reduction <add>, %108, %cst_86 [0] : vector<4x384xf32> to vector<384xf32>
    %110 = vector.shape_cast %109 : vector<384xf32> to vector<1x384xf32>
    %111 = arith.addf %107, %110 : vector<1x384xf32>
    %c1_87 = arith.constant 1 : index
    %c4_88 = arith.constant 4 : index
    %c0_89 = arith.constant 0 : index
    %112 = vector.load %arg5[%c1_87, %c4_88, %c0_89] : memref<5x5x384xf32, #tpu.memory_space<vmem>>, vector<1x1x384xf32>
    %113 = vector.shape_cast %112 : vector<1x1x384xf32> to vector<1x384xf32>
    %114 = vector.shape_cast %111 : vector<1x384xf32> to vector<1x1x384xf32>
    tpu.vector_store %arg5[%c1_87, %c4_88, %c0_89], %114 {strides = array<i32>} : memref<5x5x384xf32, #tpu.memory_space<vmem>>, vector<1x1x384xf32>,
    %c0_90 = arith.constant 0 : index
    %c0_91 = arith.constant 0 : index
    %c96 = arith.constant 96 : index
    %115 = vector.load %arg3[%c0_90, %c0_91, %c96] : memref<1x4x640xf32, #tpu.memory_space<vmem>>, vector<1x4x384xf32>
    %116 = vector.shape_cast %115 : vector<1x4x384xf32> to vector<4x384xf32>
    %c2_92 = arith.constant 2 : index
    %c0_93 = arith.constant 0 : index
    %c0_94 = arith.constant 0 : index
    %117 = vector.load %arg5[%c2_92, %c0_93, %c0_94] : memref<5x5x384xf32, #tpu.memory_space<vmem>>, vector<1x1x384xf32>
    %118 = vector.shape_cast %117 : vector<1x1x384xf32> to vector<1x384xf32>
    %119 = arith.mulf %4, %116 : vector<4x384xf32>
    %cst_95 = arith.constant dense<0.000000e+00> : vector<384xf32>
    %120 = vector.multi_reduction <add>, %119, %cst_95 [0] : vector<4x384xf32> to vector<384xf32>
    %121 = vector.shape_cast %120 : vector<384xf32> to vector<1x384xf32>
    %122 = arith.addf %118, %121 : vector<1x384xf32>
    %c2_96 = arith.constant 2 : index
    %c0_97 = arith.constant 0 : index
    %c0_98 = arith.constant 0 : index
    %123 = vector.load %arg5[%c2_96, %c0_97, %c0_98] : memref<5x5x384xf32, #tpu.memory_space<vmem>>, vector<1x1x384xf32>
    %124 = vector.shape_cast %123 : vector<1x1x384xf32> to vector<1x384xf32>
    %125 = vector.shape_cast %122 : vector<1x384xf32> to vector<1x1x384xf32>
    tpu.vector_store %arg5[%c2_96, %c0_97, %c0_98], %125 {strides = array<i32>} : memref<5x5x384xf32, #tpu.memory_space<vmem>>, vector<1x1x384xf32>,
    %c0_99 = arith.constant 0 : index
    %c0_100 = arith.constant 0 : index
    %c98 = arith.constant 98 : index
    %126 = vector.load %arg3[%c0_99, %c0_100, %c98] : memref<1x4x640xf32, #tpu.memory_space<vmem>>, vector<1x4x384xf32>
    %127 = vector.shape_cast %126 : vector<1x4x384xf32> to vector<4x384xf32>
    %c2_101 = arith.constant 2 : index
    %c1_102 = arith.constant 1 : index
    %c0_103 = arith.constant 0 : index
    %128 = vector.load %arg5[%c2_101, %c1_102, %c0_103] : memref<5x5x384xf32, #tpu.memory_space<vmem>>, vector<1x1x384xf32>
    %129 = vector.shape_cast %128 : vector<1x1x384xf32> to vector<1x384xf32>
    %130 = arith.mulf %4, %127 : vector<4x384xf32>
    %cst_104 = arith.constant dense<0.000000e+00> : vector<384xf32>
    %131 = vector.multi_reduction <add>, %130, %cst_104 [0] : vector<4x384xf32> to vector<384xf32>
    %132 = vector.shape_cast %131 : vector<384xf32> to vector<1x384xf32>
    %133 = arith.addf %129, %132 : vector<1x384xf32>
    %c2_105 = arith.constant 2 : index
    %c1_106 = arith.constant 1 : index
    %c0_107 = arith.constant 0 : index
    %134 = vector.load %arg5[%c2_105, %c1_106, %c0_107] : memref<5x5x384xf32, #tpu.memory_space<vmem>>, vector<1x1x384xf32>
    %135 = vector.shape_cast %134 : vector<1x1x384xf32> to vector<1x384xf32>
    %136 = vector.shape_cast %133 : vector<1x384xf32> to vector<1x1x384xf32>
    tpu.vector_store %arg5[%c2_105, %c1_106, %c0_107], %136 {strides = array<i32>} : memref<5x5x384xf32, #tpu.memory_space<vmem>>, vector<1x1x384xf32>,
    %c0_108 = arith.constant 0 : index
    %c0_109 = arith.constant 0 : index
    %c100_110 = arith.constant 100 : index
    %137 = vector.load %arg3[%c0_108, %c0_109, %c100_110] : memref<1x4x640xf32, #tpu.memory_space<vmem>>, vector<1x4x384xf32>
    %138 = vector.shape_cast %137 : vector<1x4x384xf32> to vector<4x384xf32>
    %c2_111 = arith.constant 2 : index
    %c2_112 = arith.constant 2 : index
    %c0_113 = arith.constant 0 : index
    %139 = vector.load %arg5[%c2_111, %c2_112, %c0_113] : memref<5x5x384xf32, #tpu.memory_space<vmem>>, vector<1x1x384xf32>
    %140 = vector.shape_cast %139 : vector<1x1x384xf32> to vector<1x384xf32>
    %141 = arith.mulf %4, %138 : vector<4x384xf32>
    %cst_114 = arith.constant dense<0.000000e+00> : vector<384xf32>
    %142 = vector.multi_reduction <add>, %141, %cst_114 [0] : vector<4x384xf32> to vector<384xf32>
    %143 = vector.shape_cast %142 : vector<384xf32> to vector<1x384xf32>
    %144 = arith.addf %140, %143 : vector<1x384xf32>
    %c2_115 = arith.constant 2 : index
    %c2_116 = arith.constant 2 : index
    %c0_117 = arith.constant 0 : index
    %145 = vector.load %arg5[%c2_115, %c2_116, %c0_117] : memref<5x5x384xf32, #tpu.memory_space<vmem>>, vector<1x1x384xf32>
    %146 = vector.shape_cast %145 : vector<1x1x384xf32> to vector<1x384xf32>
    %147 = vector.shape_cast %144 : vector<1x384xf32> to vector<1x1x384xf32>
    tpu.vector_store %arg5[%c2_115, %c2_116, %c0_117], %147 {strides = array<i32>} : memref<5x5x384xf32, #tpu.memory_space<vmem>>, vector<1x1x384xf32>,
    %c0_118 = arith.constant 0 : index
    %c0_119 = arith.constant 0 : index
    %c102 = arith.constant 102 : index
    %148 = vector.load %arg3[%c0_118, %c0_119, %c102] : memref<1x4x640xf32, #tpu.memory_space<vmem>>, vector<1x4x384xf32>
    %149 = vector.shape_cast %148 : vector<1x4x384xf32> to vector<4x384xf32>
    %c2_120 = arith.constant 2 : index
    %c3_121 = arith.constant 3 : index
    %c0_122 = arith.constant 0 : index
    %150 = vector.load %arg5[%c2_120, %c3_121, %c0_122] : memref<5x5x384xf32, #tpu.memory_space<vmem>>, vector<1x1x384xf32>
    %151 = vector.shape_cast %150 : vector<1x1x384xf32> to vector<1x384xf32>
    %152 = arith.mulf %4, %149 : vector<4x384xf32>
    %cst_123 = arith.constant dense<0.000000e+00> : vector<384xf32>
    %153 = vector.multi_reduction <add>, %152, %cst_123 [0] : vector<4x384xf32> to vector<384xf32>
    %154 = vector.shape_cast %153 : vector<384xf32> to vector<1x384xf32>
    %155 = arith.addf %151, %154 : vector<1x384xf32>
    %c2_124 = arith.constant 2 : index
    %c3_125 = arith.constant 3 : index
    %c0_126 = arith.constant 0 : index
    %156 = vector.load %arg5[%c2_124, %c3_125, %c0_126] : memref<5x5x384xf32, #tpu.memory_space<vmem>>, vector<1x1x384xf32>
    %157 = vector.shape_cast %156 : vector<1x1x384xf32> to vector<1x384xf32>
    %158 = vector.shape_cast %155 : vector<1x384xf32> to vector<1x1x384xf32>
    tpu.vector_store %arg5[%c2_124, %c3_125, %c0_126], %158 {strides = array<i32>} : memref<5x5x384xf32, #tpu.memory_space<vmem>>, vector<1x1x384xf32>,
    %c0_127 = arith.constant 0 : index
    %c0_128 = arith.constant 0 : index
    %c104 = arith.constant 104 : index
    %159 = vector.load %arg3[%c0_127, %c0_128, %c104] : memref<1x4x640xf32, #tpu.memory_space<vmem>>, vector<1x4x384xf32>
    %160 = vector.shape_cast %159 : vector<1x4x384xf32> to vector<4x384xf32>
    %c2_129 = arith.constant 2 : index
    %c4_130 = arith.constant 4 : index
    %c0_131 = arith.constant 0 : index
    %161 = vector.load %arg5[%c2_129, %c4_130, %c0_131] : memref<5x5x384xf32, #tpu.memory_space<vmem>>, vector<1x1x384xf32>
    %162 = vector.shape_cast %161 : vector<1x1x384xf32> to vector<1x384xf32>
    %163 = arith.mulf %4, %160 : vector<4x384xf32>
    %cst_132 = arith.constant dense<0.000000e+00> : vector<384xf32>
    %164 = vector.multi_reduction <add>, %163, %cst_132 [0] : vector<4x384xf32> to vector<384xf32>
    %165 = vector.shape_cast %164 : vector<384xf32> to vector<1x384xf32>
    %166 = arith.addf %162, %165 : vector<1x384xf32>
    %c2_133 = arith.constant 2 : index
    %c4_134 = arith.constant 4 : index
    %c0_135 = arith.constant 0 : index
    %167 = vector.load %arg5[%c2_133, %c4_134, %c0_135] : memref<5x5x384xf32, #tpu.memory_space<vmem>>, vector<1x1x384xf32>
    %168 = vector.shape_cast %167 : vector<1x1x384xf32> to vector<1x384xf32>
    %169 = vector.shape_cast %166 : vector<1x384xf32> to vector<1x1x384xf32>
    tpu.vector_store %arg5[%c2_133, %c4_134, %c0_135], %169 {strides = array<i32>} : memref<5x5x384xf32, #tpu.memory_space<vmem>>, vector<1x1x384xf32>,
    %c0_136 = arith.constant 0 : index
    %c0_137 = arith.constant 0 : index
    %c144 = arith.constant 144 : index
    %170 = vector.load %arg3[%c0_136, %c0_137, %c144] : memref<1x4x640xf32, #tpu.memory_space<vmem>>, vector<1x4x384xf32>
    %171 = vector.shape_cast %170 : vector<1x4x384xf32> to vector<4x384xf32>
    %c3_138 = arith.constant 3 : index
    %c0_139 = arith.constant 0 : index
    %c0_140 = arith.constant 0 : index
    %172 = vector.load %arg5[%c3_138, %c0_139, %c0_140] : memref<5x5x384xf32, #tpu.memory_space<vmem>>, vector<1x1x384xf32>
    %173 = vector.shape_cast %172 : vector<1x1x384xf32> to vector<1x384xf32>
    %174 = arith.mulf %4, %171 : vector<4x384xf32>
    %cst_141 = arith.constant dense<0.000000e+00> : vector<384xf32>
    %175 = vector.multi_reduction <add>, %174, %cst_141 [0] : vector<4x384xf32> to vector<384xf32>
    %176 = vector.shape_cast %175 : vector<384xf32> to vector<1x384xf32>
    %177 = arith.addf %173, %176 : vector<1x384xf32>
    %c3_142 = arith.constant 3 : index
    %c0_143 = arith.constant 0 : index
    %c0_144 = arith.constant 0 : index
    %178 = vector.load %arg5[%c3_142, %c0_143, %c0_144] : memref<5x5x384xf32, #tpu.memory_space<vmem>>, vector<1x1x384xf32>
    %179 = vector.shape_cast %178 : vector<1x1x384xf32> to vector<1x384xf32>
    %180 = vector.shape_cast %177 : vector<1x384xf32> to vector<1x1x384xf32>
    tpu.vector_store %arg5[%c3_142, %c0_143, %c0_144], %180 {strides = array<i32>} : memref<5x5x384xf32, #tpu.memory_space<vmem>>, vector<1x1x384xf32>,
    %c0_145 = arith.constant 0 : index
    %c0_146 = arith.constant 0 : index
    %c146 = arith.constant 146 : index
    %181 = vector.load %arg3[%c0_145, %c0_146, %c146] : memref<1x4x640xf32, #tpu.memory_space<vmem>>, vector<1x4x384xf32>
    %182 = vector.shape_cast %181 : vector<1x4x384xf32> to vector<4x384xf32>
    %c3_147 = arith.constant 3 : index
    %c1_148 = arith.constant 1 : index
    %c0_149 = arith.constant 0 : index
    %183 = vector.load %arg5[%c3_147, %c1_148, %c0_149] : memref<5x5x384xf32, #tpu.memory_space<vmem>>, vector<1x1x384xf32>
    %184 = vector.shape_cast %183 : vector<1x1x384xf32> to vector<1x384xf32>
    %185 = arith.mulf %4, %182 : vector<4x384xf32>
    %cst_150 = arith.constant dense<0.000000e+00> : vector<384xf32>
    %186 = vector.multi_reduction <add>, %185, %cst_150 [0] : vector<4x384xf32> to vector<384xf32>
    %187 = vector.shape_cast %186 : vector<384xf32> to vector<1x384xf32>
    %188 = arith.addf %184, %187 : vector<1x384xf32>
    %c3_151 = arith.constant 3 : index
    %c1_152 = arith.constant 1 : index
    %c0_153 = arith.constant 0 : index
    %189 = vector.load %arg5[%c3_151, %c1_152, %c0_153] : memref<5x5x384xf32, #tpu.memory_space<vmem>>, vector<1x1x384xf32>
    %190 = vector.shape_cast %189 : vector<1x1x384xf32> to vector<1x384xf32>
    %191 = vector.shape_cast %188 : vector<1x384xf32> to vector<1x1x384xf32>
    tpu.vector_store %arg5[%c3_151, %c1_152, %c0_153], %191 {strides = array<i32>} : memref<5x5x384xf32, #tpu.memory_space<vmem>>, vector<1x1x384xf32>,
    %c0_154 = arith.constant 0 : index
    %c0_155 = arith.constant 0 : index
    %c148 = arith.constant 148 : index
    %192 = vector.load %arg3[%c0_154, %c0_155, %c148] : memref<1x4x640xf32, #tpu.memory_space<vmem>>, vector<1x4x384xf32>
    %193 = vector.shape_cast %192 : vector<1x4x384xf32> to vector<4x384xf32>
    %c3_156 = arith.constant 3 : index
    %c2_157 = arith.constant 2 : index
    %c0_158 = arith.constant 0 : index
    %194 = vector.load %arg5[%c3_156, %c2_157, %c0_158] : memref<5x5x384xf32, #tpu.memory_space<vmem>>, vector<1x1x384xf32>
    %195 = vector.shape_cast %194 : vector<1x1x384xf32> to vector<1x384xf32>
    %196 = arith.mulf %4, %193 : vector<4x384xf32>
    %cst_159 = arith.constant dense<0.000000e+00> : vector<384xf32>
    %197 = vector.multi_reduction <add>, %196, %cst_159 [0] : vector<4x384xf32> to vector<384xf32>
    %198 = vector.shape_cast %197 : vector<384xf32> to vector<1x384xf32>
    %199 = arith.addf %195, %198 : vector<1x384xf32>
    %c3_160 = arith.constant 3 : index
    %c2_161 = arith.constant 2 : index
    %c0_162 = arith.constant 0 : index
    %200 = vector.load %arg5[%c3_160, %c2_161, %c0_162] : memref<5x5x384xf32, #tpu.memory_space<vmem>>, vector<1x1x384xf32>
    %201 = vector.shape_cast %200 : vector<1x1x384xf32> to vector<1x384xf32>
    %202 = vector.shape_cast %199 : vector<1x384xf32> to vector<1x1x384xf32>
    tpu.vector_store %arg5[%c3_160, %c2_161, %c0_162], %202 {strides = array<i32>} : memref<5x5x384xf32, #tpu.memory_space<vmem>>, vector<1x1x384xf32>,
    %c0_163 = arith.constant 0 : index
    %c0_164 = arith.constant 0 : index
    %c150 = arith.constant 150 : index
    %203 = vector.load %arg3[%c0_163, %c0_164, %c150] : memref<1x4x640xf32, #tpu.memory_space<vmem>>, vector<1x4x384xf32>
    %204 = vector.shape_cast %203 : vector<1x4x384xf32> to vector<4x384xf32>
    %c3_165 = arith.constant 3 : index
    %c3_166 = arith.constant 3 : index
    %c0_167 = arith.constant 0 : index
    %205 = vector.load %arg5[%c3_165, %c3_166, %c0_167] : memref<5x5x384xf32, #tpu.memory_space<vmem>>, vector<1x1x384xf32>
    %206 = vector.shape_cast %205 : vector<1x1x384xf32> to vector<1x384xf32>
    %207 = arith.mulf %4, %204 : vector<4x384xf32>
    %cst_168 = arith.constant dense<0.000000e+00> : vector<384xf32>
    %208 = vector.multi_reduction <add>, %207, %cst_168 [0] : vector<4x384xf32> to vector<384xf32>
    %209 = vector.shape_cast %208 : vector<384xf32> to vector<1x384xf32>
    %210 = arith.addf %206, %209 : vector<1x384xf32>
    %c3_169 = arith.constant 3 : index
    %c3_170 = arith.constant 3 : index
    %c0_171 = arith.constant 0 : index
    %211 = vector.load %arg5[%c3_169, %c3_170, %c0_171] : memref<5x5x384xf32, #tpu.memory_space<vmem>>, vector<1x1x384xf32>
    %212 = vector.shape_cast %211 : vector<1x1x384xf32> to vector<1x384xf32>
    %213 = vector.shape_cast %210 : vector<1x384xf32> to vector<1x1x384xf32>
    tpu.vector_store %arg5[%c3_169, %c3_170, %c0_171], %213 {strides = array<i32>} : memref<5x5x384xf32, #tpu.memory_space<vmem>>, vector<1x1x384xf32>,
    %c0_172 = arith.constant 0 : index
    %c0_173 = arith.constant 0 : index
    %c152 = arith.constant 152 : index
    %214 = vector.load %arg3[%c0_172, %c0_173, %c152] : memref<1x4x640xf32, #tpu.memory_space<vmem>>, vector<1x4x384xf32>
    %215 = vector.shape_cast %214 : vector<1x4x384xf32> to vector<4x384xf32>
    %c3_174 = arith.constant 3 : index
    %c4_175 = arith.constant 4 : index
    %c0_176 = arith.constant 0 : index
    %216 = vector.load %arg5[%c3_174, %c4_175, %c0_176] : memref<5x5x384xf32, #tpu.memory_space<vmem>>, vector<1x1x384xf32>
    %217 = vector.shape_cast %216 : vector<1x1x384xf32> to vector<1x384xf32>
    %218 = arith.mulf %4, %215 : vector<4x384xf32>
    %cst_177 = arith.constant dense<0.000000e+00> : vector<384xf32>
    %219 = vector.multi_reduction <add>, %218, %cst_177 [0] : vector<4x384xf32> to vector<384xf32>
    %220 = vector.shape_cast %219 : vector<384xf32> to vector<1x384xf32>
    %221 = arith.addf %217, %220 : vector<1x384xf32>
    %c3_178 = arith.constant 3 : index
    %c4_179 = arith.constant 4 : index
    %c0_180 = arith.constant 0 : index
    %222 = vector.load %arg5[%c3_178, %c4_179, %c0_180] : memref<5x5x384xf32, #tpu.memory_space<vmem>>, vector<1x1x384xf32>
    %223 = vector.shape_cast %222 : vector<1x1x384xf32> to vector<1x384xf32>
    %224 = vector.shape_cast %221 : vector<1x384xf32> to vector<1x1x384xf32>
    tpu.vector_store %arg5[%c3_178, %c4_179, %c0_180], %224 {strides = array<i32>} : memref<5x5x384xf32, #tpu.memory_space<vmem>>, vector<1x1x384xf32>,
    %c0_181 = arith.constant 0 : index
    %c0_182 = arith.constant 0 : index
    %c192 = arith.constant 192 : index
    %225 = vector.load %arg3[%c0_181, %c0_182, %c192] : memref<1x4x640xf32, #tpu.memory_space<vmem>>, vector<1x4x384xf32>
    %226 = vector.shape_cast %225 : vector<1x4x384xf32> to vector<4x384xf32>
    %c4_183 = arith.constant 4 : index
    %c0_184 = arith.constant 0 : index
    %c0_185 = arith.constant 0 : index
    %227 = vector.load %arg5[%c4_183, %c0_184, %c0_185] : memref<5x5x384xf32, #tpu.memory_space<vmem>>, vector<1x1x384xf32>
    %228 = vector.shape_cast %227 : vector<1x1x384xf32> to vector<1x384xf32>
    %229 = arith.mulf %4, %226 : vector<4x384xf32>
    %cst_186 = arith.constant dense<0.000000e+00> : vector<384xf32>
    %230 = vector.multi_reduction <add>, %229, %cst_186 [0] : vector<4x384xf32> to vector<384xf32>
    %231 = vector.shape_cast %230 : vector<384xf32> to vector<1x384xf32>
    %232 = arith.addf %228, %231 : vector<1x384xf32>
    %c4_187 = arith.constant 4 : index
    %c0_188 = arith.constant 0 : index
    %c0_189 = arith.constant 0 : index
    %233 = vector.load %arg5[%c4_187, %c0_188, %c0_189] : memref<5x5x384xf32, #tpu.memory_space<vmem>>, vector<1x1x384xf32>
    %234 = vector.shape_cast %233 : vector<1x1x384xf32> to vector<1x384xf32>
    %235 = vector.shape_cast %232 : vector<1x384xf32> to vector<1x1x384xf32>
    tpu.vector_store %arg5[%c4_187, %c0_188, %c0_189], %235 {strides = array<i32>} : memref<5x5x384xf32, #tpu.memory_space<vmem>>, vector<1x1x384xf32>,
    %c0_190 = arith.constant 0 : index
    %c0_191 = arith.constant 0 : index
    %c194 = arith.constant 194 : index
    %236 = vector.load %arg3[%c0_190, %c0_191, %c194] : memref<1x4x640xf32, #tpu.memory_space<vmem>>, vector<1x4x384xf32>
    %237 = vector.shape_cast %236 : vector<1x4x384xf32> to vector<4x384xf32>
    %c4_192 = arith.constant 4 : index
    %c1_193 = arith.constant 1 : index
    %c0_194 = arith.constant 0 : index
    %238 = vector.load %arg5[%c4_192, %c1_193, %c0_194] : memref<5x5x384xf32, #tpu.memory_space<vmem>>, vector<1x1x384xf32>
    %239 = vector.shape_cast %238 : vector<1x1x384xf32> to vector<1x384xf32>
    %240 = arith.mulf %4, %237 : vector<4x384xf32>
    %cst_195 = arith.constant dense<0.000000e+00> : vector<384xf32>
    %241 = vector.multi_reduction <add>, %240, %cst_195 [0] : vector<4x384xf32> to vector<384xf32>
    %242 = vector.shape_cast %241 : vector<384xf32> to vector<1x384xf32>
    %243 = arith.addf %239, %242 : vector<1x384xf32>
    %c4_196 = arith.constant 4 : index
    %c1_197 = arith.constant 1 : index
    %c0_198 = arith.constant 0 : index
    %244 = vector.load %arg5[%c4_196, %c1_197, %c0_198] : memref<5x5x384xf32, #tpu.memory_space<vmem>>, vector<1x1x384xf32>
    %245 = vector.shape_cast %244 : vector<1x1x384xf32> to vector<1x384xf32>
    %246 = vector.shape_cast %243 : vector<1x384xf32> to vector<1x1x384xf32>
    tpu.vector_store %arg5[%c4_196, %c1_197, %c0_198], %246 {strides = array<i32>} : memref<5x5x384xf32, #tpu.memory_space<vmem>>, vector<1x1x384xf32>,
    %c0_199 = arith.constant 0 : index
    %c0_200 = arith.constant 0 : index
    %c196 = arith.constant 196 : index
    %247 = vector.load %arg3[%c0_199, %c0_200, %c196] : memref<1x4x640xf32, #tpu.memory_space<vmem>>, vector<1x4x384xf32>
    %248 = vector.shape_cast %247 : vector<1x4x384xf32> to vector<4x384xf32>
    %c4_201 = arith.constant 4 : index
    %c2_202 = arith.constant 2 : index
    %c0_203 = arith.constant 0 : index
    %249 = vector.load %arg5[%c4_201, %c2_202, %c0_203] : memref<5x5x384xf32, #tpu.memory_space<vmem>>, vector<1x1x384xf32>
    %250 = vector.shape_cast %249 : vector<1x1x384xf32> to vector<1x384xf32>
    %251 = arith.mulf %4, %248 : vector<4x384xf32>
    %cst_204 = arith.constant dense<0.000000e+00> : vector<384xf32>
    %252 = vector.multi_reduction <add>, %251, %cst_204 [0] : vector<4x384xf32> to vector<384xf32>
    %253 = vector.shape_cast %252 : vector<384xf32> to vector<1x384xf32>
    %254 = arith.addf %250, %253 : vector<1x384xf32>
    %c4_205 = arith.constant 4 : index
    %c2_206 = arith.constant 2 : index
    %c0_207 = arith.constant 0 : index
    %255 = vector.load %arg5[%c4_205, %c2_206, %c0_207] : memref<5x5x384xf32, #tpu.memory_space<vmem>>, vector<1x1x384xf32>
    %256 = vector.shape_cast %255 : vector<1x1x384xf32> to vector<1x384xf32>
    %257 = vector.shape_cast %254 : vector<1x384xf32> to vector<1x1x384xf32>
    tpu.vector_store %arg5[%c4_205, %c2_206, %c0_207], %257 {strides = array<i32>} : memref<5x5x384xf32, #tpu.memory_space<vmem>>, vector<1x1x384xf32>,
    %c0_208 = arith.constant 0 : index
    %c0_209 = arith.constant 0 : index
    %c198 = arith.constant 198 : index
    %258 = vector.load %arg3[%c0_208, %c0_209, %c198] : memref<1x4x640xf32, #tpu.memory_space<vmem>>, vector<1x4x384xf32>
    %259 = vector.shape_cast %258 : vector<1x4x384xf32> to vector<4x384xf32>
    %c4_210 = arith.constant 4 : index
    %c3_211 = arith.constant 3 : index
    %c0_212 = arith.constant 0 : index
    %260 = vector.load %arg5[%c4_210, %c3_211, %c0_212] : memref<5x5x384xf32, #tpu.memory_space<vmem>>, vector<1x1x384xf32>
    %261 = vector.shape_cast %260 : vector<1x1x384xf32> to vector<1x384xf32>
    %262 = arith.mulf %4, %259 : vector<4x384xf32>
    %cst_213 = arith.constant dense<0.000000e+00> : vector<384xf32>
    %263 = vector.multi_reduction <add>, %262, %cst_213 [0] : vector<4x384xf32> to vector<384xf32>
    %264 = vector.shape_cast %263 : vector<384xf32> to vector<1x384xf32>
    %265 = arith.addf %261, %264 : vector<1x384xf32>
    %c4_214 = arith.constant 4 : index
    %c3_215 = arith.constant 3 : index
    %c0_216 = arith.constant 0 : index
    %266 = vector.load %arg5[%c4_214, %c3_215, %c0_216] : memref<5x5x384xf32, #tpu.memory_space<vmem>>, vector<1x1x384xf32>
    %267 = vector.shape_cast %266 : vector<1x1x384xf32> to vector<1x384xf32>
    %268 = vector.shape_cast %265 : vector<1x384xf32> to vector<1x1x384xf32>
    tpu.vector_store %arg5[%c4_214, %c3_215, %c0_216], %268 {strides = array<i32>} : memref<5x5x384xf32, #tpu.memory_space<vmem>>, vector<1x1x384xf32>,
    %c0_217 = arith.constant 0 : index
    %c0_218 = arith.constant 0 : index
    %c200 = arith.constant 200 : index
    %269 = vector.load %arg3[%c0_217, %c0_218, %c200] : memref<1x4x640xf32, #tpu.memory_space<vmem>>, vector<1x4x384xf32>
    %270 = vector.shape_cast %269 : vector<1x4x384xf32> to vector<4x384xf32>
    %c4_219 = arith.constant 4 : index
    %c4_220 = arith.constant 4 : index
    %c0_221 = arith.constant 0 : index
    %271 = vector.load %arg5[%c4_219, %c4_220, %c0_221] : memref<5x5x384xf32, #tpu.memory_space<vmem>>, vector<1x1x384xf32>
    %272 = vector.shape_cast %271 : vector<1x1x384xf32> to vector<1x384xf32>
    %273 = arith.mulf %4, %270 : vector<4x384xf32>
    %cst_222 = arith.constant dense<0.000000e+00> : vector<384xf32>
    %274 = vector.multi_reduction <add>, %273, %cst_222 [0] : vector<4x384xf32> to vector<384xf32>
    %275 = vector.shape_cast %274 : vector<384xf32> to vector<1x384xf32>
    %276 = arith.addf %272, %275 : vector<1x384xf32>
    %c4_223 = arith.constant 4 : index
    %c4_224 = arith.constant 4 : index
    %c0_225 = arith.constant 0 : index
    %277 = vector.load %arg5[%c4_223, %c4_224, %c0_225] : memref<5x5x384xf32, #tpu.memory_space<vmem>>, vector<1x1x384xf32>
    %278 = vector.shape_cast %277 : vector<1x1x384xf32> to vector<1x384xf32>
    %279 = vector.shape_cast %276 : vector<1x384xf32> to vector<1x1x384xf32>
    tpu.vector_store %arg5[%c4_223, %c4_224, %c0_225], %279 {strides = array<i32>} : memref<5x5x384xf32, #tpu.memory_space<vmem>>, vector<1x1x384xf32>,
    %c0_i32_226 = arith.constant 0 : i32
    %280 = arith.cmpi eq, %arg1, %c0_i32_226 : i32
    %281 = arith.extui %280 : i1 to i32
    %c0_i32_227 = arith.constant 0 : i32
    %282 = arith.cmpi ne, %281, %c0_i32_227 : i32
    scf.if %282 {
      %c0_228 = arith.constant 0 : index
      %c0_229 = arith.constant 0 : index
      %c0_230 = arith.constant 0 : index
      %283 = vector.load %arg5[%c0_228, %c0_229, %c0_230] : memref<5x5x384xf32, #tpu.memory_space<vmem>>, vector<5x5x384xf32>
      %cst_231 = arith.constant 2.500000e-01 : f32
      %284 = vector.broadcast %cst_231 : f32 to vector<5x5x384xf32>
      %285 = arith.mulf %283, %284 : vector<5x5x384xf32>
      %c0_232 = arith.constant 0 : index
      %c0_233 = arith.constant 0 : index
      %c0_234 = arith.constant 0 : index
      %c0_235 = arith.constant 0 : index
      %286 = vector.load %arg4[%c0_232, %c0_233, %c0_234, %c0_235] : memref<1x5x5x384xf32, #tpu.memory_space<vmem>>, vector<1x5x5x384xf32>
      %287 = vector.shape_cast %286 : vector<1x5x5x384xf32> to vector<5x5x384xf32>
      %288 = vector.shape_cast %285 : vector<5x5x384xf32> to vector<1x5x5x384xf32>
      tpu.vector_store %arg4[%c0_232, %c0_233, %c0_234, %c0_235], %288 {strides = array<i32>} : memref<1x5x5x384xf32, #tpu.memory_space<vmem>>, vector<1x5x5x384xf32>,
    } else {
    }
    return
  }
  func.func @transform_0(%arg0: i32, %arg1: i32) -> (i32, i32, i32) {
    %c0_i32 = arith.constant 0 : i32
    %c0_i32_0 = arith.constant 0 : i32
    return %arg0, %arg1, %c0_i32 : i32, i32, i32
  }
  func.func @transform_1(%arg0: i32, %arg1: i32) -> (i32, i32, i32) {
    %c0_i32 = arith.constant 0 : i32
    %c0_i32_0 = arith.constant 0 : i32
    return %arg0, %arg1, %c0_i32 : i32, i32, i32
  }
  func.func @transform_2(%arg0: i32, %arg1: i32) -> (i32, i32, i32, i32) {
    %c0_i32 = arith.constant 0 : i32
    %c0_i32_0 = arith.constant 0 : i32
    %c0_i32_1 = arith.constant 0 : i32
    %c0_i32_2 = arith.constant 0 : i32
    return %arg0, %c0_i32, %c0_i32_0, %c0_i32_1 : i32, i32, i32, i32
  }
}

</mosaic_0001>

<bundles_post_ra>
// kernel: tpu_custom_call.1
= control target key start
LH: loop header
LB: loop body
LE: loop exit
PB: predicated region body
PF: predicated region fallthrough
CT: control target
= control target key end

     0   :  { %7 = vsyncpa [#allocation4], 0  ;;  %s3508_s0 = inlined_call_operand.hbm [shape: f32[2,4,512], index: 0, kind: input, shape index: {}]   ;;  %s3509_s1 = inlined_call_operand.hbm [shape: f32[2,4,640], index: 1, kind: input, shape index: {}]   ;;  %s3510_s2 = inlined_call_operand.vmem [shape: f32[2,5,5,384], index: 2, kind: output, shape index: {}]  }
   0x1   :  { %9 = vsyncpa [#allocation4 + $0x1], 0 }
   0x2   :  { %10 = vsyncpa [#allocation6], 0 }
   0x3   :  { %12 = vsyncpa [#allocation6 + $0x1], 0  ;;  %s2646_s9 = smov 0   ;;  %s2648_s10 = smov 0  }
   0x4   :  { %s2650_s11 = smov 0   ;;  %s2652_s12 = smov 0  }
   0x5   :  { %s2654_s13 = smov 0   ;;  %s2656_s14 = smov 0  }
   0x6 LB: > { %s2383_s15 = sadd.s32 4294967295, %s2604_s14   ;;  %s30_s16 = sadd.s32 1, %s2600_s13  ;;  %s2604_s14 = sphi %s2656_s14, %s18_s14   ;;  %s2600_s13 = sphi %s2654_s13, %s3520_s13   ;;  %s2596_s12 = sphi %s2652_s12, %s3519_s12   ;;  %s2592_s11 = sphi %s2650_s11, %s3518_s11   ;;  %s2588_s10 = sphi %s2648_s10, %s3517_s10   ;;  %s2584_s9 = sphi %s2646_s9, %s3516_s9  }
   0x7   : > { %p32_p0 = scmp.ge.s32.totalorder %s30_s16, 2  ;;  %s39_s17 = sadd.s32 1, %s2592_s11 }
   0x8   : > { %p46_p1 = scmp.ne.s32.totalorder %s2592_s11, %s2588_s10  ;;  %p47_p2 = scmp.eq.s32.totalorder %s2604_s14, 0 }
   0x9   : > { %s3522_s16 = smov (%p32_p0, %s30_s16), 0  ;;  %p52_p4 = scmp.ne.s32.totalorder %s2588_s10, %s2584_s9 }
   0xa   : > { %p2682_p3 = por %p47_p2, %p46_p1  ;;  %s34_s19 = ssub.s32 %s2600_s13, %s3522_s16 }
   0xb   : > { %p53_p5 = scmp.eq.s32.totalorder %s2383_s15, 0  ;;  %p37_p6 = scmp.eq.s32.totalorder %s34_s19, 0 }
   0xc   : > { %p2412_p8 = scmp.lt.s32.totalorder %s2604_s14, 2  ;;  %s130_s22 = sand.u32 1, %s2592_s11  }
   0xd   : > { %p2689_p7 = por %p53_p5, %p52_p4  ;;  %s2396_s23 = sshll.u32 %s2600_s13, 4 }
   0xe   : > { %s2695_s21 = scalar_select %p37_p6, %s2592_s11, %s39_s17  }
   0xf   : > { %s2387_s24 = sshll.u32 %s130_s22, 4  ;;  %s141_s27 = scalar_lea.hbm %s3508_s0, %s2396_s23 }
  0x10   : > { %s143_s28 = sshll.u32 %s141_s27, 4  ;;  %s134_s29 = scalar_lea.vmem [#allocation3], %s2387_s24  ;;  %s144_s28 = int_to_ptr.hbm [resolvable:$true] %s143_s28 }
  0x11   : > { %s145_s30 = sshll.u32 %s134_s29, 4  ;;  %p2704_p9 = pnand %p2412_p8, %p2682_p3  ;;  %s146_s30 = int_to_ptr.vmem [resolvable:$true] %s145_s30 }
  0x12   : > { %p2391_p10 = scmp.ge.s32.totalorder %s2604_s14, 1  ;;  %p172_p11 = scmp.lt.s32.totalorder %s2604_s14, 3 }
  0x13   : > { %s2397_s4 = smul.u32 20, %s130_s22  ;;  %s131_s5 = scalar_lea.sflag [#allocation4], %s130_s22 }
  0x14   : > { %2408 = dma.hbm_to_vmem [thread:$0]  (!%p2704_p9), %s144_s28, 256, %s146_s30, %s131_s5  }
  0x15   : > { %p173_p12 = pnand %p2391_p10, %p172_p11  ;;  %s2398_s6 = smul.u32 20, %s2600_s13 }
  0x16   : > { %s156_s7 = scalar_lea.vmem [#allocation5], %s2397_s4  ;;  %s153_s19 = scalar_lea.sflag [#allocation6], %s130_s22 }
  0x17   : > { %s167_s8 = sshll.u32 %s156_s7, 4  ;;  %s163_s17 = scalar_lea.hbm %s3509_s1, %s2398_s6  ;;  %s168_s8 = int_to_ptr.vmem [resolvable:$true] %s167_s8 }
  0x18   : > { %s165_s18 = sshll.u32 %s163_s17, 4  ;;  %176 = sbr.rel (%p173_p12) target bundleno = 583 (0x247), region = 28  ;;  %s166_s18 = int_to_ptr.hbm [resolvable:$true] %s165_s18 }
  0x19   : > { %2411 = dma.hbm_to_vmem [thread:$0]  (!%p2704_p9), %s166_s18, 320, %s168_s8, %s153_s19  }
  0x1a   : > { %s178_s23 = sand.u32 (!%p173_p12), 1, %s2588_s10  }
  0x1b   : > { %s2392_s24 = sshll.u32 (!%p173_p12), %s178_s23, 4  ;;  %s179_s25 = scalar_lea.sflag (!%p173_p12), [#allocation4], %s178_s23 }
  0x1c   : > { %s2719_s26 = scalar_lea.vmem (!%p173_p12), [#allocation3], %s2392_s24 }
  0x1d   : > { %2575 = dma.done.wait (%p2689_p7), %s179_s25, 256  }
  0x1e   : > { %2577 = vsyncadd (%p2689_p7), %s179_s25, 4294967040  ;;  %s2399_s27 = smul.u32 20, %s178_s23  ;;  %s189_s28 = scalar_lea.sflag [#allocation6], %s178_s23 }
  0x20   : > { %s2725_s29 = scalar_lea.vmem [#allocation5], %s2399_s27 }
  0x21   : > { %2579 = dma.done.wait (%p2689_p7), %s189_s28, 320  }
  0x22   : > { %2581 = vsyncadd (%p2689_p7), %s189_s28, 4294966976  ;;  %v334_v0 = vld [vmem:[%s2725_s29] sm:$0xff]  ;;  %s2606_s22 = smov 98   ;;  %s2607_s30 = smov 100   ;;  %v335_v1 = vld [vmem:[%s2725_s29 + $0x8] sm:$0xff]  ;;  %vm256_vm0 = vcmask 818176  }
  0x23   : > { %340 = vrot.lane.b32.xlu1 %v334_v0, %s2606_s22  ;;  %250 = vrot.lane.b32.xlu0 %v334_v0, %s2607_s30  ;;  %s2608_s3 = smov 96   ;;  %v246_v2 = vld [vmem:[%s2725_s29 + $0x8] sm:$0xf]  ;;  %s2609_s4 = smov 94   ;;  %v1427_v4 = vld [vmem:[%s2725_s29 + $0xc] sm:$0xff]  ;;  %vm346_vm1 = vcmask 801792  }
  0x24   : > { %419 = vrot.lane.b32.xlu2 %v334_v0, %s2608_s3  ;;  %s2610_s20 = smov 92   ;;  %s2611_s5 = smov 52   ;;  %v1426_v3 = vld [vmem:[%s2725_s29 + $0x4] sm:$0xff]  ;;  %vm258_vm2 = vcmask 1043456   ;;  %vm278_vm3 = vcmask 1044256   ;;  %vm425_vm4 = vcmask 785408  }
  0x25   : > { %s2612_s6 = smov 50   ;;  %s2613_s7 = smov 48   ;;  %v2737_v8 = vld [vmem:[%s2719_s26] sm:$0xff]  ;;  %v2745_v18 = vld [vmem:[%s2719_s26 + $0x8] sm:$0xff]  ;;  %vm504_vm5 = vcmask 769024   ;;  %vm300_vm6 = vcmask 814080  }
  0x26   : > { %s2614_s8 = smov 46   ;;  %s2615_s9 = smov 44   ;;  %vm583_vm7 = vcmask 752640   ;;  %vm662_vm8 = vcmask 424960   ;;  %vm315_vm9 = vcmask 1040384   ;;  %vm317_vm10 = vcmask 1042434  }
  0x27   : > { %s2616_s15 = smov 4   ;;  %s2617_s17 = smov 2   ;;  %vm319_vm11 = vcmask 1041408   ;;  %vm741_vm12 = vcmask 408576   ;;  %vm820_vm13 = vcmask 392192   ;;  %vm899_vm14 = vcmask 375808  }
  0x28   : > { %s2618_s18 = smov 126   ;;  %s2619_s19 = smov 124   ;;  %vm1057_vm15 = vcmask 31744  }
  0x29   : > { %s2620_s23 = smov 84   ;;  %s2621_s24 = smov 82  }
  0x2a   : > { %s2622_s25 = smov 80   ;;  %s2623_s27 = smov 78  }
  0x2b   : > { %342 = vrot.lane.b32.xlu1 %v335_v1, %s2606_s22  ;;  %252 = vrot.lane.b32.xlu0 %v246_v2, %s2607_s30  ;;  %s2624_s28 = smov 76   ;;  %s2625_s22 = smov 36  }
  0x2c   : > { %421 = vrot.lane.b32.xlu2 %v335_v1, %s2608_s3  ;;  %s2626_s30 = smov 34   ;;  %s2627_s3 = smov 32  }
  0x2d   : > { %p219_p13 = scmp.lt.s32.totalorder %s2596_s12, 1 }
  0x2f   : > { %s3524_s12 = smov (!%p219_p13, %s2596_s12), 1 }
  0x33   : > { %498 = vrot.lane.b32.xlu0 %v334_v0, %s2609_s4  ;;  %500 = vrot.lane.b32.xlu1 %v335_v1, %s2609_s4  ;;  %s2628_s4 = smov 30  }
  0x34   : > { %577 = vrot.lane.b32.xlu2 %v334_v0, %s2610_s20 }
  0x3b   : > { %579 = vrot.lane.b32.xlu0 %v335_v1, %s2610_s20  ;;  %656 = vrot.lane.b32.xlu1 %v334_v0, %s2611_s5  ;;  %s2629_s20 = smov 28  }
  0x3c   : > { %658 = vrot.lane.b32.xlu2 %v335_v1, %s2611_s5 }
  0x43   : > { %735 = vrot.lane.b32.xlu0 %v334_v0, %s2612_s6  ;;  %737 = vrot.lane.b32.xlu1 %v335_v1, %s2612_s6 }
  0x44   : > { %814 = vrot.lane.b32.xlu2 %v334_v0, %s2613_s7 }
  0x4b   : > { %816 = vrot.lane.b32.xlu0 %v335_v1, %s2613_s7  ;;  %893 = vrot.lane.b32.xlu1 %v334_v0, %s2614_s8 }
  0x4c   : > { %895 = vrot.lane.b32.xlu2 %v335_v1, %s2614_s8 }
  0x53   : > { %972 = vrot.lane.b32.xlu0 %v334_v0, %s2615_s9  ;;  %974 = vrot.lane.b32.xlu1 %v335_v1, %s2615_s9 }
  0x54   : > { %1051 = vrot.lane.b32.xlu2 %v334_v0, %s2616_s15 }
  0x5b   : > { %1053 = vrot.lane.b32.xlu0 %v335_v1, %s2616_s15  ;;  %1130 = vrot.lane.b32.xlu1 %v334_v0, %s2617_s17 }
  0x5c   : > { %1132 = vrot.lane.b32.xlu2 %v335_v1, %s2617_s17 }
  0x63   : > { %1274 = vrot.lane.b32.xlu0 %v334_v0, %s2618_s18  ;;  %1276 = vrot.lane.b32.xlu1 %v335_v1, %s2618_s18 }
  0x64   : > { %1353 = vrot.lane.b32.xlu2 %v334_v0, %s2619_s19 }
  0x6b   : > { %1355 = vrot.lane.b32.xlu0 %v335_v1, %s2619_s19  ;;  %1432 = vrot.lane.b32.xlu1 %v1426_v3, %s2620_s23 }
  0x6c   : > { %1434 = vrot.lane.b32.xlu2 %v1427_v4, %s2620_s23 }
  0x73   : > { %1511 = vrot.lane.b32.xlu0 %v1426_v3, %s2621_s24  ;;  %1513 = vrot.lane.b32.xlu1 %v1427_v4, %s2621_s24 }
  0x74   : > { %1590 = vrot.lane.b32.xlu2 %v1426_v3, %s2622_s25 }
  0x7b   : > { %1592 = vrot.lane.b32.xlu0 %v1427_v4, %s2622_s25  ;;  %1669 = vrot.lane.b32.xlu1 %v1426_v3, %s2623_s27 }
  0x7c   : > { %1671 = vrot.lane.b32.xlu2 %v1427_v4, %s2623_s27 }
  0x7e   : > { %v420_v5 = vpop.permute.xlu2 %419 }
  0x7f   : > { %v423_v21 = vrot.slane %v420_v5, 4 }
  0x81   : > { %v426_v32 = vsel %vm425_vm4, %v423_v21, %v420_v5 }
  0x82   : > { %v431_v40 = vmul.f32 %v426_v32, %v2737_v8 }
  0x83   : > { %1748 = vrot.lane.b32.xlu0 %v1426_v3, %s2624_s28  ;;  %1750 = vrot.lane.b32.xlu1 %v1427_v4, %s2624_s28 }
  0x84   : > { %1827 = vrot.lane.b32.xlu2 %v1426_v3, %s2625_s22 }
  0x86   : > { %v422_v17 = vpop.permute.xlu2 %421 }
  0x87   : > { %v424_v36 = vrot.slane %v422_v17, 4 }
  0x89   : > { %v427_v48 = vsel %vm258_vm2, %v423_v21, %v424_v36 }
  0x8a   : > { %v428_v58 = vsel %vm425_vm4, %v427_v48, %v422_v17  ;;  %vm1281_vm4 = vcmask 1031168  }
  0x8b   : > { %1829 = vrot.lane.b32.xlu0 %v1427_v4, %s2625_s22  ;;  %1906 = vrot.lane.b32.xlu1 %v1426_v3, %s2626_s30 }
  0x8c   : > { %1908 = vrot.lane.b32.xlu2 %v1427_v4, %s2626_s30 }
  0x8e   : > { %v2755_v33 = vpop.permute.xlu2 %577 }
  0x8f   : > { %v581_v41 = vrot.slane %v2755_v33, 4 }
  0x91   : > { %v584_v1 = vsel %vm583_vm7, %v581_v41, %v2755_v33 }
  0x93   : > { %1985 = vrot.lane.b32.xlu0 %v1426_v3, %s2627_s3  ;;  %1987 = vrot.lane.b32.xlu1 %v1427_v4, %s2627_s3 }
  0x94   : > { %2064 = vrot.lane.b32.xlu2 %v1426_v3, %s2628_s4 }
  0x95   : > { %v341_v6 = vpop.permute.xlu1 %340  ;;  %v251_v7 = vpop.permute.xlu0 %250 }
  0x96   : > { %v254_v9 = vrot.slane %v251_v7, 4  ;;  %v344_v12 = vrot.slane %v341_v6, 4 }
  0x98   : > { %v257_v10 = vsel %vm256_vm0, %v254_v9, %v251_v7  ;;  %v347_v14 = vsel %vm346_vm1, %v344_v12, %v341_v6 }
  0x99   : > { %v263_v11 = vmul.f32 %v257_v10, %v2737_v8  ;;  %v352_v20 = vmul.f32 %v347_v14, %v2737_v8  ;;  %v432_v10 = vmul.f32 %v428_v58, %v2745_v18 }
  0x9b   : > { %267 = vst [vmem:[#allocation1] ss:$2 sm:$0xff] %v263_v11  ;;  %2066 = vrot.lane.b32.xlu0 %v1427_v4, %s2628_s4  ;;  %2143 = vrot.lane.b32.xlu1 %v1426_v3, %s2629_s20 }
  0x9c   : > { %2145 = vrot.lane.b32.xlu2 %v1427_v4, %s2629_s20 }
  0x9d   : > { %v253_v13 = vpop.permute.xlu0 %252  ;;  %v343_v15 = vpop.permute.xlu1 %342 }
  0x9e   : > { %v255_v16 = vrot.slane %v253_v13, 4  ;;  %v345_v22 = vrot.slane %v343_v15, 4 }
  0xa0   : > { %v259_v19 = vsel %vm258_vm2, %v254_v9, %v255_v16  ;;  %v348_v30 = vsel %vm258_vm2, %v344_v12, %v345_v22 }
  0xa1   : > { %v260_v23 = vsel %vm256_vm0, %v259_v19, %v253_v13  ;;  %v349_v37 = vsel %vm346_vm1, %v348_v30, %v343_v15  ;;  %v2781_v13 = vpop.permute.xlu2 %658  ;;  %vm978_vm0 = vcmask 359424   ;;  %vm1136_vm1 = vcmask 15360  }
  0xa2   : > { %v270_v24 = vld.sshfl [vmem:[#allocation1] sm:$0xff pattern:$0x75316420]  ;;  %v271_v25 = vld.sshfl [vmem:[#allocation1 + $0x8] sm:$0xff pattern:$0x75316420]  ;;  %v264_v26 = vmul.f32 %v260_v23, %v2745_v18  ;;  %v353_v46 = vmul.f32 %v349_v37, %v2745_v18 }
  0xa3   : > { %356 = vst [vmem:[#allocation1] ss:$2 sm:$0xff] %v352_v20  ;;  %v279_v27 = vsel %vm278_vm3, %v270_v24, 0.0  ;;  %v286_v28 = vsel %vm258_vm2, %v271_v25, 0.0  ;;  %v661_v20 = vrot.slane %v2781_v13, 4  ;;  %v589_v24 = vmul.f32 %v584_v1, %v2737_v8 }
  0xa4   : > { %269 = vst [vmem:[#allocation1 + $0x10] ss:$2 sm:$0xff] %v264_v26  ;;  %v287_v29 = vrot.slane %v286_v28, 4  ;;  %v280_v34 = vrot.slane %v279_v27, 4 }
  0xa5   : > { %v499_v31 = vpop.permute.xlu0 %498  ;;  %v501_v44 = vpop.permute.xlu1 %500 }
  0xa6   : > { %v288_v35 = vadd.f32 %v287_v29, %v286_v28  ;;  %v502_v38 = vrot.slane %v499_v31, 4  ;;  %v281_v45 = vadd.f32 %v280_v34, %v279_v27  ;;  %v503_v54 = vrot.slane %v501_v44, 4 }
  0xa8   : > { %v289_v39 = vrot.slane %v288_v35, 2  ;;  %v505_v51 = vsel %vm504_vm5, %v502_v38, %v499_v31  ;;  %v282_v59 = vrot.slane %v281_v45, 2  ;;  %v506_v4 = vsel %vm258_vm2, %v502_v38, %v503_v54 }
  0xa9   : > { %v510_v61 = vmul.f32 %v505_v51, %v2737_v8  ;;  %v507_v23 = vsel %vm504_vm5, %v506_v4, %v501_v44  ;;  %vm1360_vm5 = vcmask 1014784  }
  0xaa   : > { %v359_v42 = vld.sshfl [vmem:[#allocation1] sm:$0xff pattern:$0x75316420]  ;;  %v360_v43 = vld.sshfl [vmem:[#allocation1 + $0x8] sm:$0xff pattern:$0x75316420]  ;;  %v290_v52 = vadd.f32 %v289_v39, %v288_v35  ;;  %v283_v12 = vadd.f32 %v282_v59, %v281_v45  ;;  %v511_v38 = vmul.f32 %v507_v23, %v2745_v18 }
  0xab   : > { %435 = vst [vmem:[#allocation1] ss:$2 sm:$0xff] %v431_v40  ;;  %v272_v47 = vld.sshfl [vmem:[#allocation1 + $0x10] sm:$0xff pattern:$0x75316420]  ;;  %v367_v49 = vsel %vm278_vm3, %v359_v42, 0.0 }
  0xac   : > { %v273_v50 = vld.sshfl [vmem:[#allocation1 + $0x18] sm:$0xff pattern:$0x75316420]  ;;  %v293_v53 = vsel %vm258_vm2, %v272_v47, 0.0  ;;  %v374_v57 = vsel %vm258_vm2, %v360_v43, 0.0  ;;  %v368_v60 = vrot.slane %v367_v49, 4 }
  0xad   : > { %358 = vst [vmem:[#allocation1 + $0x10] ss:$2 sm:$0xff] %v353_v46  ;;  %v294_v55 = vrot.slane %v293_v53, 4  ;;  %v301_v56 = vsel %vm300_vm6, %v273_v50, 0.0  ;;  %v375_v0 = vrot.slane %v374_v57, 4  ;;  %v2773_v2 = vpop.permute.xlu0 %579  ;;  %v291_v3 = vrot.slane %v290_v52, 1  ;;  %v657_v11 = vpop.permute.xlu1 %656 }
  0xae   : > { %v302_v63 = vrot.slane %v301_v56, 4  ;;  %v369_v14 = vadd.f32 %v368_v60, %v367_v49  ;;  %v582_v16 = vrot.slane %v2773_v2, 4  ;;  %v660_v26 = vrot.slane %v657_v11, 4 }
  0xaf   : > { %v295_v62 = vadd.f32 %v294_v55, %v293_v53  ;;  %v376_v15 = vadd.f32 %v375_v0, %v374_v57  ;;  %v292_v25 = vadd.f32 %v291_v3, %v290_v52  ;;  %v284_v30 = vrot.slane %v283_v12, 1  ;;  %v815_v3 = vpop.permute.xlu2 %814 }
  0xb0   : > { %v303_v6 = vadd.f32 %v302_v63, %v301_v56  ;;  %v370_v31 = vrot.slane %v369_v14, 2  ;;  %v585_v44 = vsel %vm258_vm2, %v581_v41, %v582_v16  ;;  %v663_v45 = vsel %vm662_vm8, %v660_v26, %v657_v11 }
  0xb1   : > { %v296_v5 = vrot.slane %v295_v62, 2  ;;  %v377_v29 = vrot.slane %v376_v15, 2  ;;  %v312_v39 = vrot.slane %v292_v25, 7  ;;  %v285_v50 = vadd.f32 %v284_v30, %v283_v12 }
  0xb2   : > { %v2776_v7 = vld.sshfl [vmem:[#allocation1] sm:$0xff pattern:$0x75316420]  ;;  %v2778_v9 = vld.sshfl [vmem:[#allocation1 + $0x8] sm:$0xff pattern:$0x75316420]  ;;  %v371_v51 = vadd.f32 %v370_v31, %v369_v14  ;;  %v586_v58 = vsel %vm583_vm7, %v585_v44, %v2773_v2  ;;  %v668_v59 = vmul.f32 %v663_v45, %v2737_v8 }
  0xb3   : > { %514 = vst [vmem:[#allocation1] ss:$2 sm:$0xff] %v510_v61  ;;  %v297_v17 = vadd.f32 %v296_v5, %v295_v62  ;;  %v304_v19 = vrot.slane %v303_v6, 2  ;;  %v378_v37 = vadd.f32 %v377_v29, %v376_v15  ;;  %v316_v60 = vsel %vm315_vm9, %v285_v50, %v312_v39 }
  0xb4   : > { %v361_v21 = vld.sshfl [vmem:[#allocation1 + $0x10] sm:$0xff pattern:$0x75316420]  ;;  %v362_v22 = vld.sshfl [vmem:[#allocation1 + $0x18] sm:$0xff pattern:$0x75316420]  ;;  %v664_v61 = vsel %vm258_vm2, %v660_v26, %v661_v20 }
  0xb5   : > { %437 = vst [vmem:[#allocation1 + $0x10] ss:$2 sm:$0xff] %v432_v10  ;;  %v298_v27 = vrot.slane %v297_v17, 1  ;;  %v305_v28 = vadd.f32 %v304_v19, %v303_v6  ;;  %v381_v32 = vsel %vm258_vm2, %v361_v21, 0.0  ;;  %v388_v34 = vsel %vm300_vm6, %v362_v22, 0.0  ;;  %v736_v40 = vpop.permute.xlu0 %735  ;;  %v738_v33 = vpop.permute.xlu1 %737 }
  0xb6   : > { %v382_v42 = vrot.slane %v381_v32, 4  ;;  %v389_v43 = vrot.slane %v388_v34, 4  ;;  %v739_v55 = vrot.slane %v736_v40, 4  ;;  %v379_v56 = vrot.slane %v378_v37, 1 }
  0xb7   : > { %v299_v35 = vadd.f32 %v298_v27, %v297_v17  ;;  %v306_v36 = vrot.slane %v305_v28, 1  ;;  %v740_v5 = vrot.slane %v738_v33, 4  ;;  %v446_v6 = vsel %vm278_vm3, %v2776_v7, 0.0 }
  0xb8   : > { %v383_v52 = vadd.f32 %v382_v42, %v381_v32  ;;  %v390_v53 = vadd.f32 %v389_v43, %v388_v34  ;;  %v380_v63 = vadd.f32 %v379_v56, %v378_v37  ;;  %v453_v2 = vsel %vm258_vm2, %v2778_v9, 0.0 }
  0xb9   : > { %v307_v46 = vadd.f32 %v306_v36, %v305_v28  ;;  %v313_v47 = vrot.slane %v299_v35, 6  ;;  %v742_v10 = vsel %vm741_vm12, %v739_v55, %v736_v40  ;;  %v372_v11 = vrot.slane %v371_v51, 1 }
  0xba   : > { %v2794_v48 = vld.sshfl [vmem:[#allocation1] sm:$0xff pattern:$0x75316420]  ;;  %v2796_v49 = vld.sshfl [vmem:[#allocation1 + $0x8] sm:$0xff pattern:$0x75316420]  ;;  %v590_v9 = vmul.f32 %v586_v58, %v2745_v18  ;;  %v743_v25 = vsel %vm258_vm2, %v739_v55, %v740_v5  ;;  %v665_v36 = vsel %vm662_vm8, %v664_v61, %v2781_v13  ;;  %v747_v37 = vmul.f32 %v742_v10, %v2737_v8 }
  0xbb   : > { %593 = vst [vmem:[#allocation1] ss:$2 sm:$0xff] %v589_v24  ;;  %v314_v54 = vrot.slane %v307_v46, 5  ;;  %v384_v0 = vrot.slane %v383_v52, 2  ;;  %v391_v1 = vrot.slane %v390_v53, 2  ;;  %v818_v15 = vrot.slane %v815_v3, 4 }
  0xbc   : > { %v440_v57 = vld.sshfl [vmem:[#allocation1 + $0x10] sm:$0xff pattern:$0x75316420]  ;;  %v441_v41 = vld.sshfl [vmem:[#allocation1 + $0x18] sm:$0xff pattern:$0x75316420]  ;;  %v744_v45 = vsel %vm741_vm12, %v743_v25, %v738_v33 }
  0xbd   : > { %516 = vst [vmem:[#allocation1 + $0x10] ss:$2 sm:$0xff] %v511_v38  ;;  %v318_v62 = vsel %vm317_vm10, %v313_v47, %v314_v54  ;;  %v385_v12 = vadd.f32 %v384_v0, %v383_v52  ;;  %v392_v14 = vadd.f32 %v391_v1, %v390_v53  ;;  %v447_v16 = vrot.slane %v446_v6, 4  ;;  %v817_v32 = vpop.permute.xlu0 %816  ;;  %v894_v52 = vpop.permute.xlu1 %893 }
  0xbe   : > { %v320_v4 = vsel %vm319_vm11, %v316_v60, %v318_v62  ;;  %v454_v17 = vrot.slane %v453_v2, 4  ;;  %v460_v19 = vsel %vm258_vm2, %v440_v57, 0.0  ;;  %v399_v22 = vrot.slane %v380_v63, 7 }
  0xbf   : > { %321 = vrot.lane.b32.xlu0 %v320_v4, %s2629_s20  ;;  %v386_v20 = vrot.slane %v385_v12, 1  ;;  %v393_v21 = vrot.slane %v392_v14, 1  ;;  %v461_v23 = vrot.slane %v460_v19, 4  ;;  %v448_v26 = vadd.f32 %v447_v16, %v446_v6 }
  0xc0   : > { %v455_v27 = vadd.f32 %v454_v17, %v453_v2  ;;  %v467_v31 = vsel %vm300_vm6, %v441_v41, 0.0  ;;  %v373_v38 = vadd.f32 %v372_v11, %v371_v51  ;;  %v821_v39 = vsel %vm820_vm13, %v818_v15, %v815_v3  ;;  %v896_v51 = vpop.permute.xlu2 %895 }
  0xc1   : > { %v387_v28 = vadd.f32 %v386_v20, %v385_v12  ;;  %v394_v29 = vadd.f32 %v393_v21, %v392_v14  ;;  %v462_v30 = vadd.f32 %v461_v23, %v460_v19  ;;  %v449_v43 = vrot.slane %v448_v26, 2 }
  0xc2   : > { %v2812_v7 = vld.sshfl [vmem:[#allocation1] sm:$0xff pattern:$0x75316420]  ;;  %v2814_v24 = vld.sshfl [vmem:[#allocation1 + $0x8] sm:$0xff pattern:$0x75316420]  ;;  %v402_v53 = vsel %vm315_vm9, %v373_v38, %v399_v22  ;;  %v669_v1 = vmul.f32 %v665_v36, %v2745_v18  ;;  %v2839_v10 = vmul.f32 %v821_v39, %v2737_v8  ;;  %v748_v11 = vmul.f32 %v744_v45, %v2745_v18 }
  0xc3   : > { %672 = vst [vmem:[#allocation1] ss:$2 sm:$0xff] %v668_v59  ;;  %v400_v40 = vrot.slane %v387_v28, 6  ;;  %v401_v42 = vrot.slane %v394_v29, 5  ;;  %v456_v44 = vrot.slane %v455_v27, 2  ;;  %v463_v46 = vrot.slane %v462_v30, 2 }
  0xc4   : > { %v519_v34 = vld.sshfl [vmem:[#allocation1 + $0x10] sm:$0xff pattern:$0x75316420]  ;;  %v520_v35 = vld.sshfl [vmem:[#allocation1 + $0x18] sm:$0xff pattern:$0x75316420]  ;;  %v450_v54 = vadd.f32 %v449_v43, %v448_v26 }
  0xc5   : > { %595 = vst [vmem:[#allocation1 + $0x10] ss:$2 sm:$0xff] %v590_v9  ;;  %v468_v47 = vrot.slane %v467_v31, 4  ;;  %v819_v50 = vrot.slane %v817_v32, 4  ;;  %v403_v13 = vsel %vm317_vm10, %v400_v40, %v401_v42  ;;  %v457_v55 = vadd.f32 %v456_v44, %v455_v27 }
  0xc6   : > { %v404_v56 = vsel %vm319_vm11, %v402_v53, %v403_v13  ;;  %v464_v57 = vadd.f32 %v463_v46, %v462_v30  ;;  %v898_v58 = vrot.slane %v896_v51, 4  ;;  %v897_v60 = vrot.slane %v894_v52, 4 }
  0xc7   : > { %v469_v41 = vadd.f32 %v468_v47, %v467_v31  ;;  %405 = vrot.lane.b32.xlu1 %v404_v56, %s2629_s20  ;;  %v458_v59 = vrot.slane %v457_v55, 1  ;;  %v822_v33 = vsel %vm258_vm2, %v818_v15, %v819_v50  ;;  %v451_v61 = vrot.slane %v450_v54, 1 }
  0xc8   : > { %v465_v62 = vrot.slane %v464_v57, 1  ;;  %v525_v0 = vsel %vm278_vm3, %v2794_v48, 0.0  ;;  %v823_v48 = vsel %vm820_vm13, %v822_v33, %v817_v32  ;;  %v900_v15 = vsel %vm899_vm14, %v897_v60, %v894_v52  ;;  %v2860_v50 = vpop.permute.xlu2 %1051 }
  0xc9   : > { %v470_v63 = vrot.slane %v469_v41, 2  ;;  %v459_v3 = vadd.f32 %v458_v59, %v457_v55  ;;  %v526_v16 = vrot.slane %v525_v0, 4  ;;  %v532_v17 = vsel %vm258_vm2, %v2796_v49, 0.0 }
  0xca   : > { %v2832_v4 = vld.sshfl [vmem:[#allocation1] sm:$0xff pattern:$0x75316420]  ;;  %v2834_v5 = vld.sshfl [vmem:[#allocation1 + $0x8] sm:$0xff pattern:$0x75316420]  ;;  %v466_v12 = vadd.f32 %v465_v62, %v464_v57  ;;  %v901_v20 = vsel %vm258_vm2, %v897_v60, %v898_v58  ;;  %v452_v31 = vadd.f32 %v451_v61, %v450_v54  ;;  %v2850_v32 = vmul.f32 %v823_v48, %v2745_v18 }
  0xcb   : > { %v471_v14 = vadd.f32 %v470_v63, %v469_v41  ;;  %v533_v21 = vrot.slane %v532_v17, 4  ;;  %v539_v22 = vsel %vm258_vm2, %v519_v34, 0.0  ;;  %751 = vst [vmem:[#allocation1] ss:$2 sm:$0xff] %v747_v37  ;;  %v478_v23 = vrot.slane %v459_v3, 7  ;;  %v973_v63 = vpop.permute.xlu0 %972 }
  0xcc   : > { %v598_v6 = vld.sshfl [vmem:[#allocation1 + $0x10] sm:$0xff pattern:$0x75316420]  ;;  %v2836_v2 = vld.sshfl [vmem:[#allocation1 + $0x18] sm:$0xff pattern:$0x75316420]  ;;  %v527_v9 = vadd.f32 %v526_v16, %v525_v0  ;;  %v902_v39 = vsel %vm899_vm14, %v901_v20, %v896_v51  ;;  %v2854_v40 = vmul.f32 %v900_v15, %v2737_v8 }
  0xcd   : > { %674 = vst [vmem:[#allocation1 + $0x10] ss:$2 sm:$0xff] %v669_v1  ;;  %v472_v19 = vrot.slane %v471_v14, 1  ;;  %v540_v25 = vrot.slane %v539_v22, 4  ;;  %v546_v26 = vsel %vm300_vm6, %v520_v35, 0.0  ;;  %v479_v28 = vrot.slane %v466_v12, 6 }
  0xce   : > { %v534_v29 = vadd.f32 %v533_v21, %v532_v17  ;;  %v547_v30 = vrot.slane %v546_v26, 4  ;;  %v528_v49 = vrot.slane %v527_v9, 2  ;;  %v604_v43 = vsel %vm278_vm3, %v2812_v7, 0.0  ;;  %v975_v21 = vpop.permute.xlu1 %974 }
  0xcf   : > { %v473_v27 = vadd.f32 %v472_v19, %v471_v14  ;;  %v541_v36 = vadd.f32 %v540_v25, %v539_v22  ;;  %v481_v44 = vsel %vm315_vm9, %v452_v31, %v478_v23  ;;  %v1055_v54 = vrot.slane %v2860_v50, 4 }
  0xd0   : > { %v535_v34 = vrot.slane %v534_v29, 2  ;;  %v548_v37 = vadd.f32 %v547_v30, %v546_v26  ;;  %v529_v42 = vadd.f32 %v528_v49, %v527_v9  ;;  %v605_v57 = vrot.slane %v604_v43, 4 }
  0xd1   : > { %v480_v38 = vrot.slane %v473_v27, 5  ;;  %v542_v35 = vrot.slane %v541_v36, 2  ;;  %v2870_v41 = vmul.f32 %v902_v39, %v2745_v18  ;;  %v611_v59 = vsel %vm258_vm2, %v2814_v24, 0.0 }
  0xd2   : > { %v536_v46 = vadd.f32 %v535_v34, %v534_v29  ;;  %v549_v47 = vrot.slane %v548_v37, 2  ;;  %v530_v7 = vrot.slane %v529_v42, 1  ;;  %v618_v33 = vsel %vm258_vm2, %v598_v6, 0.0  ;;  %v2875_v60 = vld.sshfl [vmem:[#allocation1] sm:$0xff pattern:$0x75316420] }
  0xd3   : > { %v482_v45 = vsel %vm317_vm10, %v479_v28, %v480_v38  ;;  %v543_v13 = vadd.f32 %v542_v35, %v541_v36  ;;  %v606_v0 = vadd.f32 %v605_v57, %v604_v43  ;;  %v612_v1 = vrot.slane %v611_v59, 4  ;;  %v2877_v3 = vld.sshfl [vmem:[#allocation1 + $0x8] sm:$0xff pattern:$0x75316420] }
  0xd4   : > { %v2862_v52 = vld.sshfl [vmem:[#allocation1 + $0x10] sm:$0xff pattern:$0x75316420]  ;;  %v483_v53 = vsel %vm319_vm11, %v481_v44, %v482_v45  ;;  %v2866_v55 = vld.sshfl [vmem:[#allocation1 + $0x18] sm:$0xff pattern:$0x75316420]  ;;  %v550_v56 = vadd.f32 %v549_v47, %v548_v37  ;;  %v531_v22 = vadd.f32 %v530_v7, %v529_v42 }
  0xd5   : > { %484 = vrot.lane.b32.xlu2 %v483_v53, %s2629_s20  ;;  %v537_v51 = vrot.slane %v536_v46, 1  ;;  %753 = vst [vmem:[#allocation1 + $0x10] ss:$2 sm:$0xff] %v748_v11  ;;  %v544_v58 = vrot.slane %v543_v13, 1  ;;  %v619_v11 = vrot.slane %v618_v33, 4  ;;  %v625_v14 = vsel %vm300_vm6, %v2836_v2, 0.0 }
  0xd6   : > { %v551_v62 = vrot.slane %v550_v56, 1  ;;  %830 = vst [vmem:[#allocation1] ss:$2 sm:$0xff] %v2839_v10  ;;  %v607_v6 = vrot.slane %v606_v0, 2  ;;  %v613_v15 = vadd.f32 %v612_v1, %v611_v59  ;;  %v976_v17 = vrot.slane %v973_v63, 4 }
  0xd7   : > { %v538_v61 = vadd.f32 %v537_v51, %v536_v46  ;;  %v545_v12 = vadd.f32 %v544_v58, %v543_v13  ;;  %v620_v19 = vadd.f32 %v619_v11, %v618_v33  ;;  %v626_v20 = vrot.slane %v625_v14, 4  ;;  %v1054_v11 = vpop.permute.xlu0 %1053 }
  0xd8   : > { %v552_v24 = vadd.f32 %v551_v62, %v550_v56  ;;  %v608_v9 = vadd.f32 %v607_v6, %v606_v0  ;;  %v614_v25 = vrot.slane %v613_v15, 2  ;;  %v2886_v2 = vsel %vm1057_vm15, %v1055_v54, %v2860_v50 }
  0xd9   : > { %v557_v48 = vrot.slane %v538_v61, 7  ;;  %v558_v16 = vrot.slane %v545_v12, 6  ;;  %v621_v10 = vrot.slane %v620_v19, 2  ;;  %v627_v26 = vadd.f32 %v626_v20, %v625_v14 }
  0xda   : > { %v559_v23 = vrot.slane %v552_v24, 5  ;;  %v683_v27 = vsel %vm278_vm3, %v2832_v4, 0.0  ;;  %v615_v31 = vadd.f32 %v614_v25, %v613_v15  ;;  %v977_v49 = vrot.slane %v975_v21, 4 }
  0xdb   : > { %v560_v29 = vsel %vm315_vm9, %v531_v22, %v557_v48  ;;  %v609_v39 = vrot.slane %v608_v9, 1  ;;  %v622_v34 = vadd.f32 %v621_v10, %v620_v19  ;;  %v628_v37 = vrot.slane %v627_v26, 2 }
  0xdc   : > { %v2890_v28 = vld.sshfl [vmem:[#allocation1 + $0x10] sm:$0xff pattern:$0x75316420]  ;;  %v561_v30 = vsel %vm317_vm10, %v558_v16, %v559_v23  ;;  %v2894_v36 = vld.sshfl [vmem:[#allocation1 + $0x18] sm:$0xff pattern:$0x75316420]  ;;  %v979_v4 = vsel %vm978_vm0, %v976_v17, %v973_v63  ;;  %v980_v61 = vsel %vm258_vm2, %v976_v17, %v977_v49 }
  0xdd   : > { %v562_v38 = vsel %vm319_vm11, %v560_v29, %v561_v30  ;;  %832 = vst [vmem:[#allocation1 + $0x10] ss:$2 sm:$0xff] %v2850_v32  ;;  %v616_v42 = vrot.slane %v615_v31, 1  ;;  %v684_v35 = vrot.slane %v683_v27, 4  ;;  %v690_v43 = vsel %vm258_vm2, %v2834_v5, 0.0 }
  0xde   : > { %563 = vrot.lane.b32.xlu0 %v562_v38, %s2629_s20  ;;  %v2902_v44 = vld.sshfl [vmem:[#allocation1] sm:$0xff pattern:$0x75316420]  ;;  %v623_v45 = vrot.slane %v622_v34, 1  ;;  %v629_v46 = vadd.f32 %v628_v37, %v627_v26  ;;  %v691_v47 = vrot.slane %v690_v43, 4  ;;  %v697_v53 = vsel %vm258_vm2, %v2862_v52, 0.0 }
  0xdf   : > { %v2906_v13 = vld.sshfl [vmem:[#allocation1 + $0x8] sm:$0xff pattern:$0x75316420]  ;;  %v617_v32 = vadd.f32 %v616_v42, %v615_v31  ;;  %v685_v7 = vadd.f32 %v684_v35, %v683_v27  ;;  %v698_v51 = vrot.slane %v697_v53, 4  ;;  %v704_v56 = vsel %vm300_vm6, %v2866_v55, 0.0 }
  0xe0   : > { %909 = vst [vmem:[#allocation1] ss:$2 sm:$0xff] %v2854_v40  ;;  %v624_v57 = vadd.f32 %v623_v45, %v622_v34  ;;  %v630_v5 = vrot.slane %v629_v46, 1  ;;  %v692_v58 = vadd.f32 %v691_v47, %v690_v43  ;;  %v705_v59 = vrot.slane %v704_v56, 4 }
  0xe1   : > { %v636_v33 = vrot.slane %v617_v32, 7  ;;  %v686_v62 = vrot.slane %v685_v7, 2  ;;  %v699_v63 = vadd.f32 %v698_v51, %v697_v53  ;;  %v610_v14 = vadd.f32 %v609_v39, %v608_v9 }
  0xe2   : > { %v631_v52 = vadd.f32 %v630_v5, %v629_v46  ;;  %v637_v0 = vrot.slane %v624_v57, 6  ;;  %v693_v1 = vrot.slane %v692_v58, 2  ;;  %v706_v12 = vadd.f32 %v705_v59, %v704_v56 }
  0xe3   : > { %v687_v24 = vadd.f32 %v686_v62, %v685_v7  ;;  %v700_v48 = vrot.slane %v699_v63, 2  ;;  %v1056_v55 = vrot.slane %v1054_v11, 4  ;;  %v984_v40 = vmul.f32 %v979_v4, %v2737_v8 }
  0xe4   : > { %v2912_v6 = vld.sshfl [vmem:[#allocation1 + $0x10] sm:$0xff pattern:$0x75316420]  ;;  %v638_v15 = vrot.slane %v631_v52, 5  ;;  %v694_v16 = vadd.f32 %v693_v1, %v692_v58  ;;  %v707_v19 = vrot.slane %v706_v12, 2  ;;  %v639_v17 = vsel %vm315_vm9, %v610_v14, %v636_v33 }
  0xe5   : > { %v2915_v20 = vld.sshfl [vmem:[#allocation1 + $0x18] sm:$0xff pattern:$0x75316420]  ;;  %v981_v22 = vsel %vm978_vm0, %v980_v61, %v975_v21  ;;  %v688_v23 = vrot.slane %v687_v24, 1  ;;  %v701_v25 = vadd.f32 %v700_v48, %v699_v63  ;;  %v1059_v27 = vsel %vm258_vm2, %v1055_v54, %v1056_v55  ;;  %v2929_v21 = vpop.permute.xlu2 %1132 }
  0xe6   : > { %911 = vst [vmem:[#allocation1 + $0x10] ss:$2 sm:$0xff] %v2870_v41  ;;  %v640_v9 = vsel %vm317_vm10, %v637_v0, %v638_v15  ;;  %v695_v10 = vrot.slane %v694_v16, 1  ;;  %v708_v26 = vadd.f32 %v707_v19, %v706_v12  ;;  %v1063_v30 = vmul.f32 %v2886_v2, %v2737_v8  ;;  %v1131_v2 = vpop.permute.xlu1 %1130 }
  0xe7   : > { %v2924_v29 = vld.sshfl [vmem:[#allocation1] sm:$0xff pattern:$0x75316420]  ;;  %v641_v31 = vsel %vm319_vm11, %v639_v17, %v640_v9  ;;  %v702_v49 = vrot.slane %v701_v25, 1  ;;  %v1135_v41 = vrot.slane %v2929_v21, 4  ;;  %v985_v50 = vmul.f32 %v981_v22, %v2745_v18 }
  0xe8   : > { %v2931_v38 = vld.sshfl [vmem:[#allocation1 + $0x8] sm:$0xff pattern:$0x75316420]  ;;  %642 = vrot.lane.b32.xlu1 %v641_v31, %s2629_s20  ;;  %v696_v39 = vadd.f32 %v695_v10, %v694_v16  ;;  %v709_v54 = vrot.slane %v708_v26, 1  ;;  %v1060_v37 = vsel %vm1057_vm15, %v1059_v27, %v1054_v11  ;;  %v762_v4 = vsel %vm278_vm3, %v2875_v60, 0.0 }
  0xe9   : > { %988 = vst [vmem:[#allocation1] ss:$2 sm:$0xff] %v984_v40  ;;  %v703_v34 = vadd.f32 %v702_v49, %v701_v25  ;;  %v689_v42 = vadd.f32 %v688_v23, %v687_v24  ;;  %v763_v45 = vrot.slane %v762_v4, 4  ;;  %v769_v47 = vsel %vm258_vm2, %v2877_v3, 0.0 }
  0xea   : > { %v710_v35 = vadd.f32 %v709_v54, %v708_v26  ;;  %v715_v43 = vrot.slane %v696_v39, 7  ;;  %v776_v53 = vsel %vm258_vm2, %v2890_v28, 0.0  ;;  %v783_v32 = vsel %vm300_vm6, %v2894_v36, 0.0 }
  0xeb   : > { %v716_v46 = vrot.slane %v703_v34, 6  ;;  %v1134_v51 = vrot.slane %v1131_v2, 4  ;;  %v764_v56 = vadd.f32 %v763_v45, %v762_v4  ;;  %v770_v57 = vrot.slane %v769_v47, 4 }
  0xec   : > { %v717_v7 = vrot.slane %v710_v35, 5  ;;  %v718_v60 = vsel %vm315_vm9, %v689_v42, %v715_v43  ;;  %v1064_v58 = vmul.f32 %v1060_v37, %v2745_v18  ;;  %v777_v59 = vrot.slane %v776_v53, 4 }
  0xed   : > { %v2945_v5 = vld.sshfl [vmem:[#allocation1 + $0x10] sm:$0xff pattern:$0x75316420]  ;;  %v784_v33 = vrot.slane %v783_v32, 4  ;;  %v765_v61 = vrot.slane %v764_v56, 2  ;;  %v771_v62 = vadd.f32 %v770_v57, %v769_v47  ;;  %v841_v28 = vsel %vm278_vm3, %v2902_v44, 0.0 }
  0xee   : > { %v719_v3 = vsel %vm317_vm10, %v716_v46, %v717_v7  ;;  %v2952_v36 = vld.sshfl [vmem:[#allocation1 + $0x18] sm:$0xff pattern:$0x75316420]  ;;  %v778_v52 = vadd.f32 %v777_v59, %v776_v53  ;;  %v842_v1 = vrot.slane %v841_v28, 4  ;;  %v848_v24 = vsel %vm258_vm2, %v2906_v13, 0.0  ;;  %v2967_v13 = vpop.permute.xlu0 %1274  ;;  %v2975_v46 = vpop.permute.xlu1 %1276 }
  0xef   : > { %v720_v63 = vsel %vm319_vm11, %v718_v60, %v719_v3  ;;  %v785_v0 = vadd.f32 %v784_v33, %v783_v32  ;;  %990 = vst [vmem:[#allocation1 + $0x10] ss:$2 sm:$0xff] %v985_v50  ;;  %v766_v11 = vadd.f32 %v765_v61, %v764_v56  ;;  %v772_v14 = vrot.slane %v771_v62, 2  ;;  %v2970_v50 = vpop.permute.xlu2 %1353 }
  0xf0   : > { %v2955_v12 = vld.sshfl [vmem:[#allocation1] sm:$0xff pattern:$0x75316420]  ;;  %721 = vrot.lane.b32.xlu2 %v720_v63, %s2629_s20  ;;  %v855_v44 = vsel %vm258_vm2, %v2912_v6, 0.0  ;;  %v779_v55 = vrot.slane %v778_v52, 2  ;;  %v843_v15 = vadd.f32 %v842_v1, %v841_v28  ;;  %v849_v16 = vrot.slane %v848_v24, 4 }
  0xf1   : > { %v2962_v48 = vld.sshfl [vmem:[#allocation1 + $0x8] sm:$0xff pattern:$0x75316420]  ;;  %v786_v40 = vrot.slane %v785_v0, 2  ;;  %v1137_v19 = vsel %vm1136_vm1, %v1134_v51, %v1131_v2  ;;  %v773_v17 = vadd.f32 %v772_v14, %v771_v62  ;;  %v856_v22 = vrot.slane %v855_v44, 4 }
  0xf2   : > { %1067 = vst [vmem:[#allocation1] ss:$2 sm:$0xff] %v1063_v30  ;;  %v862_v23 = vsel %vm300_vm6, %v2915_v20, 0.0  ;;  %v780_v25 = vadd.f32 %v779_v55, %v778_v52  ;;  %v844_v10 = vrot.slane %v843_v15, 2  ;;  %v850_v6 = vadd.f32 %v849_v16, %v848_v24 }
  0xf3   : > { %v787_v9 = vadd.f32 %v786_v40, %v785_v0  ;;  %v1138_v26 = vsel %vm258_vm2, %v1134_v51, %v1135_v41  ;;  %v774_v27 = vrot.slane %v773_v17, 1  ;;  %v857_v31 = vadd.f32 %v856_v22, %v855_v44 }
  0xf4   : > { %v863_v49 = vrot.slane %v862_v23, 4  ;;  %v767_v30 = vrot.slane %v766_v11, 1  ;;  %v781_v39 = vrot.slane %v780_v25, 1  ;;  %v851_v34 = vrot.slane %v850_v6, 2 }
  0xf5   : > { %v788_v54 = vrot.slane %v787_v9, 1  ;;  %v1142_v37 = vmul.f32 %v1137_v19, %v2737_v8  ;;  %v775_v20 = vadd.f32 %v774_v27, %v773_v17  ;;  %v858_v2 = vrot.slane %v857_v31, 2 }
  0xf6   : > { %v864_v4 = vadd.f32 %v863_v49, %v862_v23  ;;  %v2973_v42 = vld.sshfl [vmem:[#allocation1 + $0x10] sm:$0xff pattern:$0x75316420]  ;;  %v782_v35 = vadd.f32 %v781_v39, %v780_v25  ;;  %v845_v45 = vadd.f32 %v844_v10, %v843_v15  ;;  %v852_v41 = vadd.f32 %v851_v34, %v850_v6  ;;  %v2977_v47 = vld.sshfl [vmem:[#allocation1 + $0x18] sm:$0xff pattern:$0x75316420]  ;;  %v2989_v14 = vpop.permute.xlu0 %1355  ;;  %v3003_v25 = vpop.permute.xlu1 %1432 }
  0xf7   : > { %v789_v43 = vadd.f32 %v788_v54, %v787_v9  ;;  %v794_v53 = vrot.slane %v775_v20, 7  ;;  %v859_v32 = vadd.f32 %v858_v2, %v857_v31  ;;  %1069 = vst [vmem:[#allocation1 + $0x10] ss:$2 sm:$0xff] %v1064_v58  ;;  %v768_v51 = vadd.f32 %v767_v30, %v766_v11  ;;  %v2994_v40 = vpop.permute.xlu2 %1434 }
  0xf8   : > { %v865_v7 = vrot.slane %v864_v4, 2  ;;  %v795_v56 = vrot.slane %v782_v35, 6  ;;  %v853_v57 = vrot.slane %v852_v41, 1  ;;  %v1139_v59 = vsel %vm1136_vm1, %v1138_v26, %v2929_v21 }
  0xf9   : > { %v796_v8 = vrot.slane %v789_v43, 5  ;;  %v2979_v60 = vld.sshfl [vmem:[#allocation1] sm:$0xff pattern:$0x75316420]  ;;  %v860_v33 = vrot.slane %v859_v32, 1  ;;  %v797_v62 = vsel %vm315_vm9, %v768_v51, %v794_v53  ;;  %v846_v63 = vrot.slane %v845_v45, 1 }
  0xfa   : > { %v866_v3 = vadd.f32 %v865_v7, %v864_v4  ;;  %v2983_v61 = vld.sshfl [vmem:[#allocation1 + $0x8] sm:$0xff pattern:$0x75316420]  ;;  %v854_v52 = vadd.f32 %v853_v57, %v852_v41  ;;  %v1143_v21 = vmul.f32 %v1139_v59, %v2745_v18  ;;  %v920_v55 = vsel %vm278_vm3, %v2924_v29, 0.0 }
  0xfb   : > { %v798_v28 = vsel %vm317_vm10, %v795_v56, %v796_v8  ;;  %1146 = vst [vmem:[#allocation1] ss:$2 sm:$0xff] %v1142_v37  ;;  %v861_v0 = vadd.f32 %v860_v33, %v859_v32  ;;  %v847_v15 = vadd.f32 %v846_v63, %v845_v45  ;;  %v921_v23 = vrot.slane %v920_v55, 4 }
  0xfc   : > { %v799_v58 = vsel %vm319_vm11, %v797_v62, %v798_v28  ;;  %v867_v1 = vrot.slane %v866_v3, 1  ;;  %v873_v11 = vrot.slane %v854_v52, 7  ;;  %v927_v18 = vsel %vm258_vm2, %v2931_v38, 0.0 }
  0xfd   : > { %800 = vrot.lane.b32.xlu0 %v799_v58, %s2629_s20  ;;  %v874_v44 = vrot.slane %v861_v0, 6  ;;  %v928_v29 = vrot.slane %v927_v18, 4  ;;  %v934_v10 = vsel %vm258_vm2, %v2945_v5, 0.0  ;;  %v941_v6 = vsel %vm300_vm6, %v2952_v36, 0.0 }
  0xfe   : > { %v868_v24 = vadd.f32 %v867_v1, %v866_v3  ;;  %v2996_v16 = vld.sshfl [vmem:[#allocation1 + $0x10] sm:$0xff pattern:$0x75316420]  ;;  %v2998_v19 = vld.sshfl [vmem:[#allocation1 + $0x18] sm:$0xff pattern:$0x75316420]  ;;  %v876_v22 = vsel %vm315_vm9, %v847_v15, %v873_v11  ;;  %v922_v27 = vadd.f32 %v921_v23, %v920_v55  ;;  %v3012_v4 = vpop.permute.xlu0 %1511  ;;  %v3022_v57 = vpop.permute.xlu1 %1513 }
  0xff   : > { %1148 = vst [vmem:[#allocation1 + $0x10] ss:$2 sm:$0xff] %v1143_v21  ;;  %v935_v31 = vrot.slane %v934_v10, 4  ;;  %v942_v49 = vrot.slane %v941_v6, 4  ;;  %v929_v30 = vadd.f32 %v928_v29, %v927_v18  ;;  %v3014_v35 = vpop.permute.xlu2 %1590  ;;  %v999_v53 = vsel %vm278_vm3, %v2955_v12, 0.0 }
 0x100   : > { %v875_v17 = vrot.slane %v868_v24, 5  ;;  %v923_v38 = vrot.slane %v922_v27, 2  ;;  %v1006_v32 = vsel %vm258_vm2, %v2962_v48, 0.0  ;;  %v1013_v7 = vsel %vm258_vm2, %v2973_v42, 0.0 }
 0x101   : > { %v936_v39 = vadd.f32 %v935_v31, %v934_v10  ;;  %v943_v54 = vadd.f32 %v942_v49, %v941_v6  ;;  %v930_v34 = vrot.slane %v929_v30, 2  ;;  %v1000_v8 = vrot.slane %v999_v53, 4 }
 0x102   : > { %v877_v9 = vsel %vm317_vm10, %v874_v44, %v875_v17  ;;  %v924_v37 = vadd.f32 %v923_v38, %v922_v27  ;;  %v1007_v33 = vrot.slane %v1006_v32, 4  ;;  %v1014_v3 = vrot.slane %v1013_v7, 4 }
 0x103   : > { %v878_v26 = vsel %vm319_vm11, %v876_v22, %v877_v9  ;;  %v937_v20 = vrot.slane %v936_v39, 2  ;;  %v944_v2 = vrot.slane %v943_v54, 2  ;;  %v931_v5 = vadd.f32 %v930_v34, %v929_v30 }
 0x104   : > { %879 = vrot.lane.b32.xlu1 %v878_v26, %s2629_s20  ;;  %v925_v36 = vrot.slane %v924_v37, 1  ;;  %v1020_v62 = vsel %vm300_vm6, %v2977_v47, 0.0  ;;  %v1001_v12 = vadd.f32 %v1000_v8, %v999_v53  ;;  %v1008_v0 = vadd.f32 %v1007_v33, %v1006_v32 }
 0x105   : > { %v938_v43 = vadd.f32 %v937_v20, %v936_v39  ;;  %v945_v45 = vadd.f32 %v944_v2, %v943_v54  ;;  %v932_v41 = vrot.slane %v931_v5, 1  ;;  %v1021_v52 = vrot.slane %v1020_v62, 4 }
 0x106   : > { %v926_v58 = vadd.f32 %v925_v36, %v924_v37  ;;  %v1015_v1 = vadd.f32 %v1014_v3, %v1013_v7  ;;  %v1002_v21 = vrot.slane %v1001_v12, 2  ;;  %v1009_v44 = vrot.slane %v1008_v0, 2  ;;  %v3028_v23 = vpop.permute.xlu0 %1592  ;;  %v3039_v34 = vpop.permute.xlu1 %1669 }
 0x107   : > { %v939_v51 = vrot.slane %v938_v43, 1  ;;  %v946_v56 = vrot.slane %v945_v45, 1  ;;  %v933_v59 = vadd.f32 %v932_v41, %v931_v5  ;;  %v1022_v24 = vadd.f32 %v1021_v52, %v1020_v62  ;;  %v3034_v26 = vpop.permute.xlu2 %1671 }
 0x108   : > { %v1016_v55 = vrot.slane %v1015_v1, 2  ;;  %v1003_v22 = vadd.f32 %v1002_v21, %v1001_v12  ;;  %v1010_v9 = vadd.f32 %v1009_v44, %v1008_v0  ;;  %v1278_v10 = vrot.slane %v2967_v13, 4 }
 0x109   : > { %v940_v28 = vadd.f32 %v939_v51, %v938_v43  ;;  %v947_v63 = vadd.f32 %v946_v56, %v945_v45  ;;  %v952_v48 = vrot.slane %v933_v59, 7  ;;  %v1023_v47 = vrot.slane %v1022_v24, 2 }
 0x10a   : > { %v1017_v29 = vadd.f32 %v1016_v55, %v1015_v1  ;;  %v1279_v6 = vrot.slane %v2975_v46, 4  ;;  %v1357_v31 = vrot.slane %v2970_v50, 4  ;;  %v1004_v49 = vrot.slane %v1003_v22, 1  ;;  %v1149_v55 = vld.sshfl [vmem:[#allocation1] sm:$0xff pattern:$0x75316420] }
 0x10b   : > { %v953_v42 = vrot.slane %v940_v28, 6  ;;  %v954_v11 = vrot.slane %v947_v63, 5  ;;  %v955_v15 = vsel %vm315_vm9, %v926_v58, %v952_v48  ;;  %v1024_v27 = vadd.f32 %v1023_v47, %v1022_v24 }
 0x10c   : > { %v1011_v30 = vrot.slane %v1010_v9, 1  ;;  %v1018_v38 = vrot.slane %v1017_v29, 1  ;;  %v1078_v54 = vsel %vm278_vm3, %v2979_v60, 0.0  ;;  %v1358_v37 = vrot.slane %v2989_v14, 4 }
 0x10d   : > { %v956_v17 = vsel %vm317_vm10, %v953_v42, %v954_v11  ;;  %v1025_v39 = vrot.slane %v1024_v27, 1  ;;  %v1079_v5 = vrot.slane %v1078_v54, 4  ;;  %v1280_v36 = vsel %vm258_vm2, %v1278_v10, %v1279_v6 }
 0x10e   : > { %v957_v18 = vsel %vm319_vm11, %v955_v15, %v956_v17  ;;  %v1012_v20 = vadd.f32 %v1011_v30, %v1010_v9  ;;  %v1019_v2 = vadd.f32 %v1018_v38, %v1017_v29  ;;  %v1085_v45 = vsel %vm258_vm2, %v2983_v61, 0.0  ;;  %v3054_v52 = vpop.permute.xlu0 %1748  ;;  %v3067_v15 = vld [vmem:[%s2719_s26] sm:$0xff]  ;;  %v1150_v9 = vld.sshfl [vmem:[#allocation1 + $0x8] sm:$0xff pattern:$0x75316420]  ;;  %v3078_v10 = vpop.permute.xlu1 %1750 }
 0x10f   : > { %958 = vrot.lane.b32.xlu2 %v957_v18, %s2629_s20  ;;  %v1026_v43 = vadd.f32 %v1025_v39, %v1024_v27  ;;  %v1092_v41 = vsel %vm258_vm2, %v2996_v16, 0.0  ;;  %v1005_v53 = vadd.f32 %v1004_v49, %v1003_v22  ;;  %v1080_v60 = vadd.f32 %v1079_v5, %v1078_v54  ;;  %v3063_v42 = vpop.permute.xlu2 %1827  ;;  %v3073_v22 = vld [vmem:[%s2719_s26 + $0x8] sm:$0xff]  ;;  %v1151_v29 = vld.sshfl [vmem:[#allocation1 + $0x10] sm:$0xff pattern:$0x75316420] }
 0x110   : > { %v1031_v32 = vrot.slane %v1012_v20, 7  ;;  %v1032_v7 = vrot.slane %v1019_v2, 6  ;;  %v1086_v56 = vrot.slane %v1085_v45, 4  ;;  %v1093_v8 = vrot.slane %v1092_v41, 4  ;;  %v1203_v30 = vld [vmem:[%s2725_s29] sm:$0xff] }
 0x111   : > { %v1033_v51 = vrot.slane %v1026_v43, 5  ;;  %v1099_v59 = vsel %vm300_vm6, %v2998_v19, 0.0  ;;  %v1283_v33 = vsel %vm1281_vm4, %v2975_v46, %v1279_v6  ;;  %v1359_v3 = vsel %vm258_vm2, %v1357_v31, %v1358_v37  ;;  %v1152_v20 = vld.sshfl [vmem:[#allocation1 + $0x18] sm:$0xff pattern:$0x75316420] }
 0x112   : > { %v1081_v62 = vrot.slane %v1080_v60, 2  ;;  %v1100_v61 = vrot.slane %v1099_v59, 4  ;;  %v1034_v28 = vsel %vm315_vm9, %v1005_v53, %v1031_v32  ;;  %v1087_v63 = vadd.f32 %v1086_v56, %v1085_v45  ;;  %v1204_v32 = vld [vmem:[%s2725_s29 + $0x8] sm:$0xff]  ;;  %s2400_s29 = smul.u32 120, %s3524_s12 }
 0x113   : > { %v1035_v16 = vsel %vm317_vm10, %v1032_v7, %v1033_v51  ;;  %v1094_v12 = vadd.f32 %v1093_v8, %v1092_v41  ;;  %v1282_v58 = vsel %vm1281_vm4, %v2967_v13, %v1280_v36  ;;  %v1437_v0 = vrot.slane %v2994_v40, 4 }
 0x114   : > { %v1036_v19 = vsel %vm319_vm11, %v1034_v28, %v1035_v16  ;;  %v1082_v46 = vadd.f32 %v1081_v62, %v1080_v60  ;;  %v1101_v48 = vadd.f32 %v1100_v61, %v1099_v59  ;;  %v1361_v1 = vsel %vm1360_vm5, %v2970_v50, %v1359_v3  ;;  %s3329_s6 = scalar_lea.vmem %s3510_s2, %s2400_s29 }
 0x115   : > { %1037 = vrot.lane.b32.xlu0 %v1036_v19, %s2629_s20  ;;  %v1088_v11 = vrot.slane %v1087_v63, 2  ;;  %v1095_v21 = vrot.slane %v1094_v12, 2  ;;  %v1594_v24 = vrot.slane %v3014_v35, 4  ;;  %v3070_v17 = vmul.f32 %v3067_v15, %v1282_v58 }
 0x116   : > { %v1083_v44 = vrot.slane %v1082_v46, 1  ;;  %v1102_v13 = vrot.slane %v1101_v48, 2  ;;  %v3076_v50 = vmul.f32 %v3073_v22, %v1283_v33  ;;  %v1362_v6 = vsel %vm1360_vm5, %v2989_v14, %v1358_v37  ;;  %v1830_v62 = vpop.permute.xlu0 %1829 }
 0x117   : > { %v1089_v47 = vadd.f32 %v1088_v11, %v1087_v63  ;;  %v1096_v18 = vadd.f32 %v1095_v21, %v1094_v12  ;;  %v3083_v27 = vmul.f32 %v3067_v15, %v1361_v1  ;;  %v1436_v31 = vrot.slane %v3003_v25, 4  ;;  %v1909_v58 = vpop.permute.xlu2 %1908 }
 0x118   : > { %v1103_v49 = vadd.f32 %v1102_v13, %v1101_v48  ;;  %v1084_v38 = vadd.f32 %v1083_v44, %v1082_v46  ;;  %v1157_v2 = vsel %vm278_vm3, %v1149_v55, 0.0  ;;  %v1164_v43 = vsel %vm258_vm2, %v1150_v9, 0.0 }
 0x119   : > { %v1090_v39 = vrot.slane %v1089_v47, 1  ;;  %v1097_v54 = vrot.slane %v1096_v18, 1  ;;  %v1158_v36 = vrot.slane %v1157_v2, 4  ;;  %v1171_v14 = vsel %vm258_vm2, %v1151_v29, 0.0 }
 0x11a   : > { %v1104_v5 = vrot.slane %v1103_v49, 1  ;;  %v1165_v41 = vrot.slane %v1164_v43, 4  ;;  %v1172_v53 = vrot.slane %v1171_v14, 4  ;;  %v1178_v51 = vsel %vm300_vm6, %v1152_v20, 0.0 }
 0x11b   : > { %v1091_v37 = vadd.f32 %v1090_v39, %v1089_v47  ;;  %v1098_v45 = vadd.f32 %v1097_v54, %v1096_v18  ;;  %v1159_v60 = vadd.f32 %v1158_v36, %v1157_v2  ;;  %v1207_v56 = vmul.f32 %v3067_v15, %v1203_v30  ;;  %v3099_v18 = vpop.permute.xlu1 %1906 }
 0x11c   : > { %v1105_v7 = vadd.f32 %v1104_v5, %v1103_v49  ;;  %v1166_v33 = vadd.f32 %v1165_v41, %v1164_v43  ;;  %v1173_v3 = vadd.f32 %v1172_v53, %v1171_v14  ;;  %v1179_v16 = vrot.slane %v1178_v51, 4 }
 0x11d   : > { %v1110_v8 = vrot.slane %v1091_v37, 7  ;;  %v1111_v59 = vrot.slane %v1098_v45, 6  ;;  %v1160_v28 = vrot.slane %v1159_v60, 2  ;;  %v1208_v63 = vmul.f32 %v3073_v22, %v1204_v32  ;;  %1211 = vst [vmem:[#allocation1] ss:$2 sm:$0xff] %v1207_v56 }
 0x11e   : > { %v1112_v61 = vrot.slane %v1105_v7, 5  ;;  %vm1438_vm7 = vcmask 687104   ;;  %v1440_v12 = vsel %vm258_vm2, %v1436_v31, %v1437_v0  ;;  %v1167_v19 = vrot.slane %v1166_v33, 2 }
 0x11f   : > { %v1174_v46 = vrot.slane %v1173_v3, 2  ;;  %v1113_v48 = vsel %vm315_vm9, %v1084_v38, %v1110_v8  ;;  %v1161_v11 = vadd.f32 %v1160_v28, %v1159_v60  ;;  %v1180_v21 = vadd.f32 %v1179_v16, %v1178_v51  ;;  %1213 = vst [vmem:[#allocation1 + $0x10] ss:$2 sm:$0xff] %v1208_v63  ;;  %v3126_v60 = vpop.permute.xlu0 %1985 }
 0x120   : > { %v1114_v1 = vsel %vm317_vm10, %v1111_v59, %v1112_v61  ;;  %v1674_v44 = vrot.slane %v3034_v26, 4  ;;  %v1168_v55 = vadd.f32 %v1167_v19, %v1166_v33  ;;  %v1439_v0 = vsel %vm1438_vm7, %v1436_v31, %v3003_v25 }
 0x121   : > { %v1115_v13 = vsel %vm319_vm11, %v1113_v48, %v1114_v1  ;;  %v1175_v47 = vadd.f32 %v1174_v46, %v1173_v3  ;;  %v1831_v9 = vrot.slane %v3063_v42, 4  ;;  %v1181_v29 = vrot.slane %v1180_v21, 2 }
 0x122   : > { %1116 = vrot.lane.b32.xlu1 %v1115_v13, %s2629_s20  ;;  %v1832_v49 = vrot.slane %v1830_v62, 4  ;;  %v1441_v30 = vsel %vm1438_vm7, %v1440_v12, %v2994_v40  ;;  %vm1833_vm8 = vcmask 293888   ;;  %v1169_v38 = vrot.slane %v1168_v55, 1 }
 0x123   : > { %v1176_v39 = vrot.slane %v1175_v47, 1  ;;  %v1911_v54 = vrot.slane %v1909_v58, 4  ;;  %v1162_v20 = vrot.slane %v1161_v11, 1  ;;  %v1182_v2 = vadd.f32 %v1181_v29, %v1180_v21  ;;  %v1988_v21 = vpop.permute.xlu1 %1987 }
 0x124   : > { %v1835_v5 = vsel %vm258_vm2, %v1831_v9, %v1832_v49  ;;  %v3111_v25 = vmul.f32 %v3073_v22, %v1362_v6  ;;  %v1170_v31 = vadd.f32 %v1169_v38, %v1168_v55  ;;  %v1214_v43 = vld.sshfl [vmem:[#allocation1] sm:$0xff pattern:$0x75316420]  ;;  %v1215_v14 = vld.sshfl [vmem:[#allocation1 + $0x8] sm:$0xff pattern:$0x75316420]  ;;  %v3117_v40 = vmul.f32 %v3067_v15, %v1439_v0 }
 0x125   : > { %v1177_v36 = vadd.f32 %v1176_v39, %v1175_v47  ;;  %v3114_v37 = vsel %vm1833_vm8, %v1835_v5, %v1830_v62  ;;  %vm1517_vm12 = vcmask 670720   ;;  %v1515_v45 = vrot.slane %v3012_v4, 4  ;;  %1290 = vst [vmem:[#allocation1] ss:$2 sm:$0xff] %v3070_v17  ;;  %v3130_v62 = vpop.permute.xlu2 %2064 }
 0x126   : > { %v1183_v41 = vrot.slane %v1182_v2, 1  ;;  %v3122_v53 = vmul.f32 %v3073_v22, %v1441_v30  ;;  %v1516_v6 = vrot.slane %v3022_v57, 4  ;;  %v1189_v32 = vrot.slane %v1170_v31, 7  ;;  %v1216_v8 = vld.sshfl [vmem:[#allocation1 + $0x10] sm:$0xff pattern:$0x75316420] }
 0x127   : > { %v1910_v7 = vrot.slane %v3099_v18, 4  ;;  %v1190_v56 = vrot.slane %v1177_v36, 6  ;;  %v1222_v59 = vsel %vm278_vm3, %v1214_v43, 0.0  ;;  %v1229_v33 = vsel %vm258_vm2, %v1215_v14, 0.0 }
 0x128   : > { %v1184_v51 = vadd.f32 %v1183_v41, %v1182_v2  ;;  %v1163_v3 = vadd.f32 %v1162_v20, %v1161_v11  ;;  %vm1912_vm13 = vcmask 277504   ;;  %v1217_v61 = vld.sshfl [vmem:[#allocation1 + $0x18] sm:$0xff pattern:$0x75316420]  ;;  %v1223_v28 = vrot.slane %v1222_v59, 4 }
 0x129   : > { %v1914_v17 = vsel %vm258_vm2, %v1910_v7, %v1911_v54  ;;  %v1595_v16 = vrot.slane %v3028_v23, 4  ;;  %v2068_v12 = vrot.slane %v3130_v62, 4  ;;  %1292 = vst [vmem:[#allocation1 + $0x10] ss:$2 sm:$0xff] %v3076_v50  ;;  %v1989_v48 = vrot.slane %v3126_v60, 4 }
 0x12a   : > { %v1191_v63 = vrot.slane %v1184_v51, 5  ;;  %v3138_v19 = vsel %vm1912_vm13, %v1914_v17, %v1909_v58  ;;  %v1192_v46 = vsel %vm315_vm9, %v1163_v3, %v1189_v32  ;;  %v1224_v1 = vadd.f32 %v1223_v28, %v1222_v59 }
 0x12b   : > { %v1230_v11 = vrot.slane %v1229_v33, 4  ;;  %v1236_v55 = vsel %vm258_vm2, %v1216_v8, 0.0  ;;  %v1243_v47 = vsel %vm300_vm6, %v1217_v61, 0.0  ;;  %v1990_v0 = vrot.slane %v1988_v21, 4 }
 0x12c   : > { %v1193_v13 = vsel %vm317_vm10, %v1190_v56, %v1191_v63  ;;  %v3148_v58 = vsel %vm1517_vm12, %v1515_v45, %v3012_v4  ;;  %v3151_v50 = vsel %vm258_vm2, %v1515_v45, %v1516_v6  ;;  %v1293_v49 = vld.sshfl [vmem:[#allocation1] sm:$0xff pattern:$0x75316420]  ;;  %v1294_v30 = vld.sshfl [vmem:[#allocation1 + $0x8] sm:$0xff pattern:$0x75316420] }
 0x12d   : > { %v1194_v29 = vsel %vm319_vm11, %v1192_v46, %v1193_v13  ;;  %v1231_v38 = vadd.f32 %v1230_v11, %v1229_v33  ;;  %v1301_v39 = vsel %vm278_vm3, %v1293_v49, 0.0  ;;  %v1308_v54 = vsel %vm258_vm2, %v1294_v30, 0.0  ;;  %1369 = vst [vmem:[#allocation1] ss:$2 sm:$0xff] %v3083_v27  ;;  %v2067_v27 = vpop.permute.xlu0 %2066  ;;  %v3164_v61 = vpop.permute.xlu2 %2145 }
 0x12e   : > { %1195 = vrot.lane.b32.xlu2 %v1194_v29, %s2629_s20  ;;  %v1225_v20 = vrot.slane %v1224_v1, 2  ;;  %v1237_v2 = vrot.slane %v1236_v55, 4  ;;  %v1302_v4 = vrot.slane %v1301_v39, 4  ;;  %v1309_v5 = vrot.slane %v1308_v54, 4 }
 0x12f   : > { %v1232_v31 = vrot.slane %v1231_v38, 2  ;;  %v1244_v36 = vrot.slane %v1243_v47, 4  ;;  %vm1991_vm14 = vcmask 261120   ;;  %v1993_v45 = vsel %vm258_vm2, %v1989_v48, %v1990_v0 }
 0x130   : > { %v1226_v43 = vadd.f32 %v1225_v20, %v1224_v1  ;;  %v1238_v14 = vadd.f32 %v1237_v2, %v1236_v55  ;;  %v1295_v41 = vld.sshfl [vmem:[#allocation1 + $0x10] sm:$0xff pattern:$0x75316420]  ;;  %v1296_v6 = vld.sshfl [vmem:[#allocation1 + $0x18] sm:$0xff pattern:$0x75316420]  ;;  %v1303_v32 = vadd.f32 %v1302_v4, %v1301_v39  ;;  %v1310_v51 = vadd.f32 %v1309_v5, %v1308_v54 }
 0x131   : > { %v1233_v56 = vadd.f32 %v1232_v31, %v1231_v38  ;;  %v1245_v8 = vadd.f32 %v1244_v36, %v1243_v47  ;;  %vm2070_vm15 = vcmask 244736   ;;  %v1315_v59 = vsel %vm258_vm2, %v1295_v41, 0.0  ;;  %1371 = vst [vmem:[#allocation1 + $0x10] ss:$2 sm:$0xff] %v3111_v25 }
 0x132   : > { %v1322_v33 = vsel %vm300_vm6, %v1296_v6, 0.0  ;;  %v1239_v3 = vrot.slane %v1238_v14, 2  ;;  %v2069_v17 = vrot.slane %v2067_v27, 4  ;;  %v1304_v28 = vrot.slane %v1303_v32, 2 }
 0x133   : > { %v1311_v63 = vrot.slane %v1310_v51, 2  ;;  %v1316_v46 = vrot.slane %v1315_v59, 4  ;;  %v1323_v1 = vrot.slane %v1322_v33, 4  ;;  %v1227_v11 = vrot.slane %v1226_v43, 1 }
 0x134   : > { %v1234_v13 = vrot.slane %v1233_v56, 1  ;;  %v1240_v55 = vadd.f32 %v1239_v3, %v1238_v14  ;;  %v1246_v47 = vrot.slane %v1245_v8, 2  ;;  %v1305_v0 = vadd.f32 %v1304_v28, %v1303_v32  ;;  %v1372_v38 = vld.sshfl [vmem:[#allocation1] sm:$0xff pattern:$0x75316420] }
 0x135   : > { %v1312_v29 = vadd.f32 %v1311_v63, %v1310_v51  ;;  %v1317_v49 = vadd.f32 %v1316_v46, %v1315_v59  ;;  %v1324_v30 = vadd.f32 %v1323_v1, %v1322_v33  ;;  %v1373_v39 = vld.sshfl [vmem:[#allocation1 + $0x8] sm:$0xff pattern:$0x75316420]  ;;  %v3167_v2 = vsel %vm1991_vm14, %v1993_v45, %v1988_v21 }
 0x136   : > { %v1235_v54 = vadd.f32 %v1234_v13, %v1233_v56  ;;  %v1241_v25 = vrot.slane %v1240_v55, 1  ;;  %v1247_v20 = vadd.f32 %v1246_v47, %v1245_v8  ;;  %1448 = vst [vmem:[#allocation1] ss:$2 sm:$0xff] %v3117_v40  ;;  %v1306_v4 = vrot.slane %v1305_v0, 1 }
 0x137   : > { %v1313_v5 = vrot.slane %v1312_v29, 1  ;;  %v1318_v31 = vrot.slane %v1317_v49, 2  ;;  %v1325_v36 = vrot.slane %v1324_v30, 2  ;;  %v1228_v14 = vadd.f32 %v1227_v11, %v1226_v43 }
 0x138   : > { %v1242_v41 = vadd.f32 %v1241_v25, %v1240_v55  ;;  %v1248_v6 = vrot.slane %v1247_v20, 1  ;;  %v1254_v32 = vrot.slane %v1235_v54, 7  ;;  %v328_v3 = vlaneseq  ;;  %v1374_v56 = vld.sshfl [vmem:[#allocation1 + $0x10] sm:$0xff pattern:$0x75316420] }
 0x139   : > { %v1314_v51 = vadd.f32 %v1313_v5, %v1312_v29  ;;  %v1319_v59 = vadd.f32 %v1318_v31, %v1317_v49  ;;  %v1326_v33 = vadd.f32 %v1325_v36, %v1324_v30  ;;  %v1375_v28 = vld.sshfl [vmem:[#allocation1 + $0x18] sm:$0xff pattern:$0x75316420]  ;;  %v1307_v8 = vadd.f32 %v1306_v4, %v1305_v0  ;;  %v3191_v31 = vpop.permute.xlu1 %2143  ;;  %v322_v36 = vpop.permute.xlu0 %321 }
 0x13a   : > { %v1249_v63 = vadd.f32 %v1248_v6, %v1247_v20  ;;  %v1255_v21 = vrot.slane %v1242_v41, 6  ;;  %v2072_v40 = vsel %vm258_vm2, %v2068_v12, %v2069_v17  ;;  %1450 = vst [vmem:[#allocation1 + $0x10] ss:$2 sm:$0xff] %v3122_v53  ;;  %vm1596_vm0 = vcmask 654336   ;;  %v485_v17 = vpop.permute.xlu2 %484 }
 0x13b   : > { %v1320_v43 = vrot.slane %v1319_v59, 1  ;;  %v1327_v45 = vrot.slane %v1326_v33, 1  ;;  %v1333_v46 = vrot.slane %v1314_v51, 7  ;;  %v3175_v1 = vsel %vm2070_vm15, %v2072_v40, %v2067_v27 }
 0x13c   : > { %v2148_v11 = vrot.slane %v3164_v61, 4  ;;  %v1256_v13 = vrot.slane %v1249_v63, 5  ;;  %v1257_v55 = vsel %vm315_vm9, %v1228_v14, %v1254_v32  ;;  %vm324_vm1 = vcmask 228352  }
 0x13d   : > { %v1321_v47 = vadd.f32 %v1320_v43, %v1319_v59  ;;  %v1328_v0 = vadd.f32 %v1327_v45, %v1326_v33  ;;  %v1336_v29 = vsel %vm315_vm9, %v1307_v8, %v1333_v46  ;;  %v2630_v49 = vmov 0.0   ;;  %v1451_v43 = vld.sshfl [vmem:[#allocation1] sm:$0xff pattern:$0x75316420] }
 0x13e   : > { %228 = vst [vmem:[#allocation2] sm:$0x1f] %v2630_v49  ;;  %v1258_v53 = vsel %vm317_vm10, %v1255_v21, %v1256_v13  ;;  %vm3182_vm4 = vcmp.lt.s32.totalorder %v328_v3, 384  ;;  %v1380_v27 = vsel %vm278_vm3, %v1372_v38, 0.0  ;;  %v1387_v54 = vsel %vm258_vm2, %v1373_v39, 0.0 }
 0x13f   : > { %229 = vst [vmem:[#allocation2 + $0x8] sm:$0x1f] %v2630_v49  ;;  %v1334_v25 = vrot.slane %v1321_v47, 6  ;;  %v1335_v20 = vrot.slane %v1328_v0, 5  ;;  %v1259_v4 = vsel %vm319_vm11, %v1257_v55, %v1258_v53  ;;  %v1381_v5 = vrot.slane %v1380_v27, 4 }
 0x140   : > { %230 = vst [vmem:[#allocation2 + $0x10] sm:$0x1f] %v2630_v49  ;;  %1260 = vrot.lane.b32.xlu0 %v1259_v4, %s2629_s20  ;;  %v486_v14 = vrot.slane %v485_v17, 1  ;;  %v1388_v41 = vrot.slane %v1387_v54, 4  ;;  %v1394_v38 = vsel %vm258_vm2, %v1374_v56, 0.0  ;;  %v1401_v39 = vsel %vm300_vm6, %v1375_v28, 0.0 }
 0x141   : > { %231 = vst [vmem:[#allocation2 + $0x18] sm:$0x1f] %v2630_v49  ;;  %v1337_v6 = vsel %vm317_vm10, %v1334_v25, %v1335_v20  ;;  %v1382_v32 = vadd.f32 %v1381_v5, %v1380_v27  ;;  %v1395_v51 = vrot.slane %v1394_v38, 4  ;;  %v1402_v59 = vrot.slane %v1401_v39, 4 }
 0x142   : > { %232 = vst [vmem:[#allocation2 + $0x20] sm:$0x1f] %v2630_v49  ;;  %v1338_v33 = vsel %vm319_vm11, %v1336_v29, %v1337_v6  ;;  %v1389_v3 = vadd.f32 %v1388_v41, %v1387_v54  ;;  %v2147_v8 = vrot.slane %v3191_v31, 4  ;;  %v323_v63 = vrot.slane %v322_v36, 1 }
 0x143   : > { %233 = vst [vmem:[#allocation2 + $0x28] sm:$0x1f] %v2630_v49  ;;  %v1520_v56 = vsel %vm1517_vm12, %v3151_v50, %v3022_v57  ;;  %1339 = vrot.lane.b32.xlu1 %v1338_v33, %s2629_s20  ;;  %v1383_v28 = vrot.slane %v1382_v32, 2  ;;  %v1396_v21 = vadd.f32 %v1395_v51, %v1394_v38  ;;  %v1403_v40 = vadd.f32 %v1402_v59, %v1401_v39  ;;  %v1452_v29 = vld.sshfl [vmem:[#allocation1 + $0x8] sm:$0xff pattern:$0x75316420]  ;;  %v406_v33 = vpop.permute.xlu1 %405 }
 0x144   : > { %234 = vst [vmem:[#allocation2 + $0x30] sm:$0x1f] %v2630_v49  ;;  %v487_v45 = vsel %vm324_vm1, %v485_v17, %v486_v14  ;;  %v1390_v46 = vrot.slane %v1389_v3, 2  ;;  %v2150_v13 = vsel %vm258_vm2, %v2147_v8, %v2148_v11  ;;  %v325_v55 = vsel %vm324_vm1, %v322_v36, %v323_v63  ;;  %v1453_v17 = vld.sshfl [vmem:[#allocation1 + $0x10] sm:$0xff pattern:$0x75316420] }
 0x145   : > { %235 = vst [vmem:[#allocation2 + $0x38] sm:$0x1f] %v2630_v49  ;;  %v1384_v57 = vadd.f32 %v1383_v28, %v1382_v32  ;;  %v1397_v50 = vrot.slane %v1396_v21, 2  ;;  %v1404_v47 = vrot.slane %v1403_v40, 2  ;;  %v3216_v0 = vsel %vm324_vm1, %v2150_v13, %v3164_v61 }
 0x146   : > { %236 = vst [vmem:[#allocation2 + $0x40] sm:$0x1f] %v2630_v49  ;;  %v3222_v53 = vsel %vm1596_vm0, %v1594_v24, %v3014_v35  ;;  %v1523_v11 = vmul.f32 %v3067_v15, %v3148_v58  ;;  %v1391_v54 = vadd.f32 %v1390_v46, %v1389_v3  ;;  %v1459_v25 = vsel %vm278_vm3, %v1451_v43, 0.0  ;;  %v1454_v39 = vld.sshfl [vmem:[#allocation1 + $0x18] sm:$0xff pattern:$0x75316420] }
 0x147   : > { %v416_v27 = vld [vmem:[#allocation2 + $0x2] ss:$8 sm:$0x7]  ;;  %237 = vst [vmem:[#allocation2 + $0x48] sm:$0x1f] %v2630_v49  ;;  %v1385_v61 = vrot.slane %v1384_v57, 1  ;;  %v1398_v4 = vadd.f32 %v1397_v50, %v1396_v21  ;;  %v1405_v5 = vadd.f32 %v1404_v47, %v1403_v40  ;;  %v1524_v14 = vmul.f32 %v3073_v22, %v1520_v56 }
 0x148   : > { %v489_v20 = vadd.f32 %v487_v45, %v416_v27  ;;  %238 = vst [vmem:[#allocation2 + $0x50] sm:$0x1f] %v2630_v49  ;;  %v247_v36 = vld [vmem:[#allocation2] ss:$8 sm:$0x7]  ;;  %v1598_v58 = vsel %vm258_vm2, %v1594_v24, %v1595_v16  ;;  %v1392_v41 = vrot.slane %v1391_v54, 1 }
 0x149   : > { %239 = vst [vmem:[#allocation2 + $0x58] sm:$0x1f] %v2630_v49  ;;  %v327_v38 = vadd.f32 %v325_v55, %v247_v36  ;;  %v1386_v6 = vadd.f32 %v1385_v61, %v1384_v57  ;;  %v1399_v32 = vrot.slane %v1398_v4, 1  ;;  %v1406_v51 = vrot.slane %v1405_v5, 1 }
 0x14a   : > { %490 = vst.msk [vmem:[#allocation2 + $0x2] ss:$8 sm:$0x7] %vm3182_vm4, %v489_v20  ;;  %v1460_v59 = vrot.slane %v1459_v25, 4  ;;  %v1393_v3 = vadd.f32 %v1392_v41, %v1391_v54  ;;  %v1466_v35 = vsel %vm258_vm2, %v1452_v29, 0.0  ;;  %v1473_v24 = vsel %vm258_vm2, %v1453_v17, 0.0  ;;  %v722_v29 = vpop.permute.xlu2 %721 }
 0x14b   : > { %240 = vst [vmem:[#allocation2 + $0x60] sm:$0x1f] %v2630_v49  ;;  %v1480_v16 = vsel %vm300_vm6, %v1454_v39, 0.0  ;;  %v1400_v63 = vadd.f32 %v1399_v32, %v1398_v4  ;;  %v1407_v56 = vadd.f32 %v1406_v51, %v1405_v5  ;;  %v1467_v21 = vrot.slane %v1466_v35, 4 }
 0x14c   : > { %241 = vst [vmem:[#allocation2 + $0x68] sm:$0x1f] %v2630_v49  ;;  %v1461_v28 = vadd.f32 %v1460_v59, %v1459_v25  ;;  %v337_v40 = vld [vmem:[#allocation2 + $0x1] ss:$8 sm:$0x7]  ;;  %v1412_v43 = vrot.slane %v1393_v3, 7  ;;  %v1599_v39 = vsel %vm1596_vm0, %v1598_v58, %v3028_v23  ;;  %v1602_v3 = vmul.f32 %v3067_v15, %v3222_v53 }
 0x14d   : > { %242 = vst [vmem:[#allocation2 + $0x70] sm:$0x1f] %v2630_v49  ;;  %v1474_v45 = vrot.slane %v1473_v24, 4  ;;  %v1481_v46 = vrot.slane %v1480_v16, 4  ;;  %v407_v13 = vrot.slane %v406_v33, 1  ;;  %v1413_v55 = vrot.slane %v1400_v63, 6 }
 0x14e   : > { %v1414_v57 = vrot.slane %v1407_v56, 5  ;;  %332 = vst.msk [vmem:[#allocation2] ss:$8 sm:$0x7] %vm3182_vm4, %v327_v38  ;;  %v1462_v50 = vrot.slane %v1461_v28, 2  ;;  %v1468_v47 = vadd.f32 %v1467_v21, %v1466_v35  ;;  %v1415_v17 = vsel %vm315_vm9, %v1386_v6, %v1412_v43 }
 0x14f   : > { %v1475_v27 = vadd.f32 %v1474_v45, %v1473_v24  ;;  %v1482_v54 = vadd.f32 %v1481_v46, %v1480_v16  ;;  %1527 = vst [vmem:[#allocation1] ss:$2 sm:$0xff] %v1523_v11  ;;  %v408_v25 = vsel %vm324_vm1, %v406_v33, %v407_v13  ;;  %v723_v38 = vrot.slane %v722_v29, 1  ;;  %v653_v59 = vld [vmem:[#allocation2 + $0x18] ss:$8 sm:$0x7] }
 0x150   : > { %v1416_v49 = vsel %vm317_vm10, %v1413_v55, %v1414_v57  ;;  %v1463_v20 = vadd.f32 %v1462_v50, %v1461_v28  ;;  %v1469_v61 = vrot.slane %v1468_v47, 2  ;;  %1529 = vst [vmem:[#allocation1 + $0x10] ss:$2 sm:$0xff] %v1524_v14  ;;  %v410_v4 = vadd.f32 %v408_v25, %v337_v40  ;;  %v564_v57 = vpop.permute.xlu0 %563 }
 0x151   : > { %v1417_v5 = vsel %vm319_vm11, %v1415_v17, %v1416_v49  ;;  %v1476_v36 = vrot.slane %v1475_v27, 2  ;;  %v1483_v41 = vrot.slane %v1482_v54, 2  ;;  %vm1675_vm5 = vcmask 637952  }
 0x152   : > { %v1673_v6 = vrot.slane %v3039_v34, 4  ;;  %1418 = vrot.lane.b32.xlu2 %v1417_v5, %s2629_s20  ;;  %v1470_v11 = vadd.f32 %v1469_v61, %v1468_v47  ;;  %411 = vst.msk [vmem:[#allocation2 + $0x1] ss:$8 sm:$0x7] %vm3182_vm4, %v410_v4  ;;  %v1464_v32 = vrot.slane %v1463_v20, 1  ;;  %v724_v33 = vsel %vm324_vm1, %v722_v29, %v723_v38 }
 0x153   : > { %v1477_v14 = vadd.f32 %v1476_v36, %v1475_v27  ;;  %v1484_v51 = vadd.f32 %v1483_v41, %v1482_v54  ;;  %vm1754_vm7 = vcmask 621568   ;;  %v1752_v35 = vrot.slane %v3054_v52, 4 }
 0x154   : > { %v1677_v23 = vsel %vm258_vm2, %v1673_v6, %v1674_v44  ;;  %v1471_v58 = vrot.slane %v1470_v11, 1  ;;  %v1603_v63 = vmul.f32 %v3073_v22, %v1599_v39  ;;  %v1676_v56 = vsel %vm1675_vm5, %v1673_v6, %v3039_v34 }
 0x155   : > { %v1478_v24 = vrot.slane %v1477_v14, 1  ;;  %v1485_v16 = vrot.slane %v1484_v51, 1  ;;  %v726_v43 = vadd.f32 %v724_v33, %v653_v59  ;;  %v1678_v53 = vsel %vm1675_vm5, %v1677_v23, %v3034_v26  ;;  %v495_v59 = vld [vmem:[#allocation2 + $0x3] ss:$8 sm:$0x7] }
 0x156   : > { %v1472_v28 = vadd.f32 %v1471_v58, %v1470_v11  ;;  %v1530_v21 = vld.sshfl [vmem:[#allocation1] sm:$0xff pattern:$0x75316420]  ;;  %v1531_v40 = vld.sshfl [vmem:[#allocation1 + $0x8] sm:$0xff pattern:$0x75316420]  ;;  %v1465_v45 = vadd.f32 %v1464_v32, %v1463_v20  ;;  %v1755_v38 = vsel %vm1754_vm7, %v1752_v35, %v3054_v52  ;;  %v1682_v58 = vmul.f32 %v3073_v22, %v1678_v53 }
 0x157   : > { %v1479_v44 = vadd.f32 %v1478_v24, %v1477_v14  ;;  %v1486_v46 = vadd.f32 %v1485_v16, %v1484_v51  ;;  %v1532_v13 = vld.sshfl [vmem:[#allocation1 + $0x10] sm:$0xff pattern:$0x75316420]  ;;  %v1533_v55 = vld.sshfl [vmem:[#allocation1 + $0x18] sm:$0xff pattern:$0x75316420] }
 0x158   : > { %v1491_v50 = vrot.slane %v1472_v28, 7  ;;  %v1538_v47 = vsel %vm278_vm3, %v1530_v21, 0.0  ;;  %v1545_v29 = vsel %vm258_vm2, %v1531_v40, 0.0  ;;  %v1552_v34 = vsel %vm258_vm2, %v1532_v13, 0.0  ;;  %1606 = vst [vmem:[#allocation1] ss:$2 sm:$0xff] %v1602_v3 }
 0x159   : > { %v1492_v17 = vrot.slane %v1479_v44, 6  ;;  %v1493_v27 = vrot.slane %v1486_v46, 5  ;;  %v1539_v54 = vrot.slane %v1538_v47, 4  ;;  %v1546_v25 = vrot.slane %v1545_v29, 4  ;;  %1608 = vst [vmem:[#allocation1 + $0x10] ss:$2 sm:$0xff] %v1603_v63 }
 0x15a   : > { %v1494_v26 = vsel %vm315_vm9, %v1465_v45, %v1491_v50  ;;  %v1553_v49 = vrot.slane %v1552_v34, 4  ;;  %v1559_v20 = vsel %vm300_vm6, %v1533_v55, 0.0  ;;  %727 = vst.msk [vmem:[#allocation2 + $0x18] ss:$8 sm:$0x7] %vm3182_vm4, %v726_v43  ;;  %v565_v61 = vrot.slane %v564_v57, 1 }
 0x15b   : > { %v1495_v4 = vsel %vm317_vm10, %v1492_v17, %v1493_v27  ;;  %v1540_v5 = vadd.f32 %v1539_v54, %v1538_v47  ;;  %v1547_v36 = vadd.f32 %v1546_v25, %v1545_v29  ;;  %v1560_v41 = vrot.slane %v1559_v20, 4  ;;  %v643_v54 = vpop.permute.xlu1 %642 }
 0x15c   : > { %v1753_v39 = vrot.slane %v3078_v10, 4  ;;  %v1496_v6 = vsel %vm319_vm11, %v1494_v26, %v1495_v4  ;;  %v1554_v11 = vadd.f32 %v1553_v49, %v1552_v34  ;;  %v566_v33 = vsel %vm324_vm1, %v564_v57, %v565_v61 }
 0x15d   : > { %1497 = vrot.lane.b32.xlu0 %v1496_v6, %s2629_s20  ;;  %v1541_v32 = vrot.slane %v1540_v5, 2  ;;  %v1548_v14 = vrot.slane %v1547_v36, 2  ;;  %v1561_v51 = vadd.f32 %v1560_v41, %v1559_v20  ;;  %v1681_v3 = vmul.f32 %v3067_v15, %v1676_v56  ;;  %v574_v6 = vld [vmem:[#allocation2 + $0x4] ss:$8 sm:$0x7] }
 0x15e   : > { %v1555_v23 = vrot.slane %v1554_v11, 2  ;;  %v3285_v28 = vmul.f32 %v3067_v15, %v1755_v38  ;;  %v1756_v21 = vsel %vm258_vm2, %v1752_v35, %v1753_v39  ;;  %v568_v44 = vadd.f32 %v566_v33, %v495_v59 }
 0x15f   : > { %v1542_v24 = vadd.f32 %v1541_v32, %v1540_v5  ;;  %v1549_v52 = vadd.f32 %v1548_v14, %v1547_v36  ;;  %v1562_v16 = vrot.slane %v1561_v51, 2  ;;  %v1609_v63 = vld.sshfl [vmem:[#allocation1] sm:$0xff pattern:$0x75316420]  ;;  %v1757_v32 = vsel %vm1754_vm7, %v1756_v21, %v3078_v10 }
 0x160   : > { %v1556_v40 = vadd.f32 %v1555_v23, %v1554_v11  ;;  %v1610_v43 = vld.sshfl [vmem:[#allocation1 + $0x8] sm:$0xff pattern:$0x75316420]  ;;  %v1611_v45 = vld.sshfl [vmem:[#allocation1 + $0x10] sm:$0xff pattern:$0x75316420] }
 0x161   : > { %v1543_v46 = vrot.slane %v1542_v24, 1  ;;  %v1550_v13 = vrot.slane %v1549_v52, 1  ;;  %v1563_v55 = vadd.f32 %v1562_v16, %v1561_v51  ;;  %v1612_v56 = vld.sshfl [vmem:[#allocation1 + $0x18] sm:$0xff pattern:$0x75316420]  ;;  %v1617_v57 = vsel %vm278_vm3, %v1609_v63, 0.0 }
 0x162   : > { %v1557_v53 = vrot.slane %v1556_v40, 1  ;;  %v1618_v50 = vrot.slane %v1617_v57, 4  ;;  %v1624_v47 = vsel %vm258_vm2, %v1610_v43, 0.0  ;;  %v1631_v29 = vsel %vm258_vm2, %v1611_v45, 0.0  ;;  %1685 = vst [vmem:[#allocation1] ss:$2 sm:$0xff] %v1681_v3 }
 0x163   : > { %v1544_v34 = vadd.f32 %v1543_v46, %v1542_v24  ;;  %v1551_v17 = vadd.f32 %v1550_v13, %v1549_v52  ;;  %v1564_v35 = vrot.slane %v1563_v55, 1  ;;  %v1625_v27 = vrot.slane %v1624_v47, 4  ;;  %1687 = vst [vmem:[#allocation1 + $0x10] ss:$2 sm:$0xff] %v1682_v58 }
 0x164   : > { %v1558_v25 = vadd.f32 %v1557_v53, %v1556_v40  ;;  %v1619_v26 = vadd.f32 %v1618_v50, %v1617_v57  ;;  %v1632_v49 = vrot.slane %v1631_v29, 4  ;;  %v1638_v20 = vsel %vm300_vm6, %v1612_v56, 0.0  ;;  %569 = vst.msk [vmem:[#allocation2 + $0x3] ss:$8 sm:$0x7] %vm3182_vm4, %v568_v44 }
 0x165   : > { %v1565_v61 = vadd.f32 %v1564_v35, %v1563_v55  ;;  %v1570_v4 = vrot.slane %v1551_v17, 7  ;;  %v1626_v5 = vadd.f32 %v1625_v27, %v1624_v47  ;;  %v1639_v36 = vrot.slane %v1638_v20, 4 }
 0x166   : > { %v1571_v41 = vrot.slane %v1558_v25, 6  ;;  %v1620_v38 = vrot.slane %v1619_v26, 2  ;;  %v1633_v39 = vadd.f32 %v1632_v49, %v1631_v29  ;;  %v644_v11 = vrot.slane %v643_v54, 1 }
 0x167   : > { %v1572_v14 = vrot.slane %v1565_v61, 5  ;;  %v1627_v51 = vrot.slane %v1626_v5, 2  ;;  %v1640_v59 = vadd.f32 %v1639_v36, %v1638_v20  ;;  %v1573_v33 = vsel %vm315_vm9, %v1544_v34, %v1570_v4 }
 0x168   : > { %v1621_v3 = vadd.f32 %v1620_v38, %v1619_v26  ;;  %v1634_v23 = vrot.slane %v1633_v39, 2  ;;  %v645_v58 = vsel %vm324_vm1, %v643_v54, %v644_v11  ;;  %v1761_v53 = vmul.f32 %v3073_v22, %v1757_v32 }
 0x169   : > { %v1574_v24 = vsel %vm317_vm10, %v1571_v41, %v1572_v14  ;;  %v1628_v52 = vadd.f32 %v1627_v51, %v1626_v5  ;;  %v1641_v16 = vrot.slane %v1640_v59, 2  ;;  %v1688_v63 = vld.sshfl [vmem:[#allocation1] sm:$0xff pattern:$0x75316420]  ;;  %v647_v40 = vadd.f32 %v645_v58, %v574_v6  ;;  %v959_v36 = vpop.permute.xlu2 %958 }
 0x16a   : > { %v1575_v43 = vsel %vm319_vm11, %v1573_v33, %v1574_v24  ;;  %v1622_v45 = vrot.slane %v1621_v3, 1  ;;  %v1635_v10 = vadd.f32 %v1634_v23, %v1633_v39  ;;  %v1689_v21 = vld.sshfl [vmem:[#allocation1 + $0x8] sm:$0xff pattern:$0x75316420]  ;;  %v1696_v44 = vsel %vm278_vm3, %v1688_v63, 0.0 }
 0x16b   : > { %1576 = vrot.lane.b32.xlu1 %v1575_v43, %s2629_s20  ;;  %v1629_v46 = vrot.slane %v1628_v52, 1  ;;  %v1642_v13 = vadd.f32 %v1641_v16, %v1640_v59  ;;  %v1690_v55 = vld.sshfl [vmem:[#allocation1 + $0x10] sm:$0xff pattern:$0x75316420]  ;;  %v1697_v56 = vrot.slane %v1696_v44, 4  ;;  %v1703_v57 = vsel %vm258_vm2, %v1689_v21, 0.0 }
 0x16c   : > { %v1636_v50 = vrot.slane %v1635_v10, 1  ;;  %v1691_v47 = vld.sshfl [vmem:[#allocation1 + $0x18] sm:$0xff pattern:$0x75316420]  ;;  %v1704_v29 = vrot.slane %v1703_v57, 4  ;;  %v1710_v34 = vsel %vm258_vm2, %v1690_v55, 0.0  ;;  %v1623_v39 = vadd.f32 %v1622_v45, %v1621_v3 }
 0x16d   : > { %v1630_v17 = vadd.f32 %v1629_v46, %v1628_v52  ;;  %v1643_v35 = vrot.slane %v1642_v13, 1  ;;  %v1698_v27 = vadd.f32 %v1697_v56, %v1696_v44  ;;  %v1711_v54 = vrot.slane %v1710_v34, 4  ;;  %1764 = vst [vmem:[#allocation1] ss:$2 sm:$0xff] %v3285_v28 }
 0x16e   : > { %v1637_v25 = vadd.f32 %v1636_v50, %v1635_v10  ;;  %v1705_v26 = vadd.f32 %v1704_v29, %v1703_v57  ;;  %v1717_v49 = vsel %vm300_vm6, %v1691_v47, 0.0  ;;  %1766 = vst [vmem:[#allocation1 + $0x10] ss:$2 sm:$0xff] %v1761_v53  ;;  %v960_v59 = vrot.slane %v959_v36, 1 }
 0x16f   : > { %v1644_v20 = vadd.f32 %v1643_v35, %v1642_v13  ;;  %v1649_v61 = vrot.slane %v1630_v17, 7  ;;  %v1699_v4 = vrot.slane %v1698_v27, 2  ;;  %v1712_v5 = vadd.f32 %v1711_v54, %v1710_v34  ;;  %648 = vst.msk [vmem:[#allocation2 + $0x4] ss:$8 sm:$0x7] %vm3182_vm4, %v647_v40  ;;  %v801_v54 = vpop.permute.xlu0 %800 }
 0x170   : > { %v1650_v41 = vrot.slane %v1637_v25, 6  ;;  %v1706_v38 = vrot.slane %v1705_v26, 2  ;;  %v1718_v28 = vrot.slane %v1717_v49, 4  ;;  %v1834_v33 = vsel %vm1833_vm8, %v1831_v9, %v3063_v42  ;;  %v890_v21 = vld [vmem:[#allocation2 + $0x1b] ss:$8 sm:$0x7] }
 0x171   : > { %v1651_v6 = vrot.slane %v1644_v20, 5  ;;  %v1700_v11 = vadd.f32 %v1699_v4, %v1698_v27  ;;  %v1713_v32 = vrot.slane %v1712_v5, 2  ;;  %v1652_v23 = vsel %vm315_vm9, %v1623_v39, %v1649_v61 }
 0x172   : > { %v1707_v14 = vadd.f32 %v1706_v38, %v1705_v26  ;;  %v1719_v51 = vadd.f32 %v1718_v28, %v1717_v49  ;;  %v1839_v42 = vmul.f32 %v3067_v15, %v1834_v33  ;;  %v961_v56 = vsel %vm324_vm1, %v959_v36, %v960_v59 }
 0x173   : > { %v1653_v58 = vsel %vm317_vm10, %v1650_v41, %v1651_v6  ;;  %v1714_v24 = vadd.f32 %v1713_v32, %v1712_v5  ;;  %v1701_v40 = vrot.slane %v1700_v11, 1  ;;  %v1840_v15 = vmul.f32 %v3073_v22, %v3114_v37  ;;  %v732_v22 = vld [vmem:[#allocation2 + $0x19] ss:$8 sm:$0x7] }
 0x174   : > { %v1654_v52 = vsel %vm319_vm11, %v1652_v23, %v1653_v58  ;;  %v1708_v3 = vrot.slane %v1707_v14, 1  ;;  %v1720_v16 = vrot.slane %v1719_v51, 2  ;;  %v1767_v63 = vld.sshfl [vmem:[#allocation1] sm:$0xff pattern:$0x75316420]  ;;  %v963_v36 = vadd.f32 %v961_v56, %v890_v21 }
 0x175   : > { %1655 = vrot.lane.b32.xlu2 %v1654_v52, %s2629_s20  ;;  %v1715_v43 = vrot.slane %v1714_v24, 1  ;;  %v1768_v45 = vld.sshfl [vmem:[#allocation1 + $0x8] sm:$0xff pattern:$0x75316420]  ;;  %v1775_v10 = vsel %vm278_vm3, %v1767_v63, 0.0  ;;  %v1702_v37 = vadd.f32 %v1701_v40, %v1700_v11  ;;  %v802_v28 = vrot.slane %v801_v54, 1 }
 0x176   : > { %v1709_v9 = vadd.f32 %v1708_v3, %v1707_v14  ;;  %v1721_v44 = vadd.f32 %v1720_v16, %v1719_v51  ;;  %v2218_v46 = vld [vmem:[#allocation2] sm:$0x1f]  ;;  %v2219_v13 = vld [vmem:[#allocation2 + $0x8] sm:$0x1f]  ;;  %v2220_v55 = vld [vmem:[#allocation2 + $0x10] sm:$0x1f]  ;;  %v1913_v52 = vsel %vm1912_vm13, %v1910_v7, %v3099_v18 }
 0x177   : > { %v1716_v57 = vadd.f32 %v1715_v43, %v1714_v24  ;;  %v2233_v53 = vmul.f32 0.25, %v2218_v46  ;;  %v2234_v50 = vmul.f32 0.25, %v2219_v13  ;;  %v2235_v47 = vmul.f32 0.25, %v2220_v55  ;;  %v1769_v29 = vld.sshfl [vmem:[#allocation1 + $0x10] sm:$0xff pattern:$0x75316420] }
 0x178   : > { %v1722_v34 = vrot.slane %v1721_v44, 1  ;;  %v1728_v17 = vrot.slane %v1709_v9, 7  ;;  %v1770_v35 = vld.sshfl [vmem:[#allocation1 + $0x18] sm:$0xff pattern:$0x75316420]  ;;  %v1776_v27 = vrot.slane %v1775_v10, 4  ;;  %v803_v33 = vsel %vm324_vm1, %v801_v54, %v802_v28 }
 0x179   : > { %v1729_v25 = vrot.slane %v1716_v57, 6  ;;  %2248 = vst [vmem:[%s3329_s6] sm:$0x1f] %v2233_v53  ;;  %v1782_v26 = vsel %vm258_vm2, %v1768_v45, 0.0  ;;  %v1789_v49 = vsel %vm258_vm2, %v1769_v29, 0.0  ;;  %v1796_v20 = vsel %vm300_vm6, %v1770_v35, 0.0  ;;  %v3354_v21 = vld [vmem:[%s2719_s26] sm:$0xff] }
 0x17a   : > { %v1723_v61 = vadd.f32 %v1722_v34, %v1721_v44  ;;  %2249 = vst [vmem:[%s3329_s6 + $0x8] sm:$0x1f] %v2234_v50  ;;  %v1777_v4 = vadd.f32 %v1776_v27, %v1775_v10  ;;  %v1783_v5 = vrot.slane %v1782_v26, 4  ;;  %v1790_v41 = vrot.slane %v1789_v49, 4  ;;  %v3358_v46 = vld [vmem:[%s2719_s26 + $0x8] sm:$0xff] }
 0x17b   : > { %2250 = vst [vmem:[%s3329_s6 + $0x10] sm:$0x1f] %v2235_v47  ;;  %v1797_v38 = vrot.slane %v1796_v20, 4  ;;  %v1731_v14 = vsel %vm315_vm9, %v1702_v37, %v1728_v17  ;;  %v805_v24 = vadd.f32 %v803_v33, %v732_v22  ;;  %v1919_v13 = vmul.f32 %v3358_v46, %v3138_v19 }
 0x17c   : > { %v1730_v39 = vrot.slane %v1723_v61, 5  ;;  %v1778_v6 = vrot.slane %v1777_v4, 2  ;;  %v1784_v32 = vadd.f32 %v1783_v5, %v1782_v26  ;;  %1843 = vst [vmem:[#allocation1] ss:$2 sm:$0xff] %v1839_v42  ;;  %v1791_v51 = vadd.f32 %v1790_v41, %v1789_v49 }
 0x17d   : > { %v1798_v59 = vadd.f32 %v1797_v38, %v1796_v20  ;;  %1845 = vst [vmem:[#allocation1 + $0x10] ss:$2 sm:$0xff] %v1840_v15  ;;  %v1918_v42 = vmul.f32 %v3354_v21, %v1913_v52  ;;  %v1992_v61 = vsel %vm1991_vm14, %v1989_v48, %v3126_v60 }
 0x17e   : > { %v1732_v23 = vsel %vm317_vm10, %v1729_v25, %v1730_v39  ;;  %v1779_v58 = vadd.f32 %v1778_v6, %v1777_v4  ;;  %v1785_v11 = vrot.slane %v1784_v32, 2  ;;  %964 = vst.msk [vmem:[#allocation2 + $0x1b] ss:$8 sm:$0x7] %vm3182_vm4, %v963_v36  ;;  %v1792_v16 = vrot.slane %v1791_v51, 2  ;;  %v880_v25 = vpop.permute.xlu1 %879 }
 0x17f   : > { %v1733_v3 = vsel %vm319_vm11, %v1731_v14, %v1732_v23  ;;  %v1799_v63 = vrot.slane %v1798_v59, 2  ;;  %806 = vst.msk [vmem:[#allocation2 + $0x19] ss:$8 sm:$0x7] %vm3182_vm4, %v805_v24  ;;  %v881_v38 = vrot.slane %v880_v25, 1  ;;  %v1997_v48 = vmul.f32 %v3354_v21, %v1992_v61 }
 0x180   : > { %1734 = vrot.lane.b32.xlu0 %v1733_v3, %s2629_s20  ;;  %v1780_v40 = vrot.slane %v1779_v58, 1  ;;  %v1786_v43 = vadd.f32 %v1785_v11, %v1784_v32  ;;  %v1793_v45 = vadd.f32 %v1792_v16, %v1791_v51  ;;  %v811_v51 = vld [vmem:[#allocation2 + $0x1a] ss:$8 sm:$0x7] }
 0x181   : > { %v1800_v10 = vadd.f32 %v1799_v63, %v1798_v59  ;;  %v882_v60 = vsel %vm324_vm1, %v880_v25, %v881_v38 }
 0x182   : > { %v1787_v9 = vrot.slane %v1786_v43, 1  ;;  %v1794_v18 = vrot.slane %v1793_v45, 1  ;;  %v1781_v55 = vadd.f32 %v1780_v40, %v1779_v58  ;;  %v2071_v58 = vsel %vm2070_vm15, %v2068_v12, %v3130_v62 }
 0x183   : > { %v1801_v7 = vrot.slane %v1800_v10, 1  ;;  %v1846_v44 = vld.sshfl [vmem:[#allocation1] sm:$0xff pattern:$0x75316420] }
 0x184   : > { %v1788_v56 = vadd.f32 %v1787_v9, %v1786_v43  ;;  %v1847_v57 = vld.sshfl [vmem:[#allocation1 + $0x8] sm:$0xff pattern:$0x75316420]  ;;  %v1848_v53 = vld.sshfl [vmem:[#allocation1 + $0x10] sm:$0xff pattern:$0x75316420]  ;;  %v1795_v50 = vadd.f32 %v1794_v18, %v1793_v45  ;;  %v884_v43 = vadd.f32 %v882_v60, %v811_v51  ;;  %v1998_v45 = vmul.f32 %v3358_v46, %v3167_v2 }
 0x185   : > { %v1802_v47 = vadd.f32 %v1801_v7, %v1800_v10  ;;  %v1849_v29 = vld.sshfl [vmem:[#allocation1 + $0x18] sm:$0xff pattern:$0x75316420]  ;;  %v1854_v15 = vsel %vm278_vm3, %v1846_v44, 0.0  ;;  %v1861_v34 = vsel %vm258_vm2, %v1847_v57, 0.0  ;;  %v1868_v54 = vsel %vm258_vm2, %v1848_v53, 0.0 }
 0x186   : > { %v1807_v17 = vrot.slane %v1788_v56, 7  ;;  %v1855_v35 = vrot.slane %v1854_v15, 4  ;;  %v1862_v27 = vrot.slane %v1861_v34, 4  ;;  %1922 = vst [vmem:[#allocation1] ss:$2 sm:$0xff] %v1918_v42  ;;  %v1808_v26 = vrot.slane %v1795_v50, 6 }
 0x187   : > { %v1809_v19 = vrot.slane %v1802_v47, 5  ;;  %v1869_v49 = vrot.slane %v1868_v54, 4  ;;  %v1875_v20 = vsel %vm300_vm6, %v1849_v29, 0.0  ;;  %1924 = vst [vmem:[#allocation1 + $0x10] ss:$2 sm:$0xff] %v1919_v13 }
 0x188   : > { %v1856_v4 = vadd.f32 %v1855_v35, %v1854_v15  ;;  %v1863_v5 = vadd.f32 %v1862_v27, %v1861_v34  ;;  %v1876_v36 = vrot.slane %v1875_v20, 4  ;;  %v1810_v22 = vsel %vm315_vm9, %v1781_v55, %v1807_v17  ;;  %885 = vst.msk [vmem:[#allocation2 + $0x1a] ss:$8 sm:$0x7] %vm3182_vm4, %v884_v43  ;;  %v1196_v29 = vpop.permute.xlu2 %1195 }
 0x189   : > { %v1811_v37 = vsel %vm317_vm10, %v1808_v26, %v1809_v19  ;;  %v1870_v41 = vadd.f32 %v1869_v49, %v1868_v54  ;;  %v2076_v26 = vmul.f32 %v3354_v21, %v2071_v58  ;;  %v1197_v61 = vrot.slane %v1196_v29, 1 }
 0x18a   : > { %v1812_v28 = vsel %vm319_vm11, %v1810_v22, %v1811_v37  ;;  %v1857_v39 = vrot.slane %v1856_v4, 2  ;;  %v1864_v6 = vrot.slane %v1863_v5, 2  ;;  %v1877_v32 = vadd.f32 %v1876_v36, %v1875_v20  ;;  %v1127_v20 = vld [vmem:[#allocation2 + $0x31] ss:$8 sm:$0x7] }
 0x18b   : > { %1813 = vrot.lane.b32.xlu1 %v1812_v28, %s2629_s20  ;;  %v1871_v14 = vrot.slane %v1870_v41, 2 }
 0x18c   : > { %v1858_v59 = vadd.f32 %v1857_v39, %v1856_v4  ;;  %v1865_v33 = vadd.f32 %v1864_v6, %v1863_v5  ;;  %v1878_v23 = vrot.slane %v1877_v32, 2  ;;  %v1198_v39 = vsel %vm324_vm1, %v1196_v29, %v1197_v61 }
 0x18d   : > { %v1872_v11 = vadd.f32 %v1871_v14, %v1870_v41  ;;  %v1925_v24 = vld.sshfl [vmem:[#allocation1] sm:$0xff pattern:$0x75316420]  ;;  %v1926_v52 = vld.sshfl [vmem:[#allocation1 + $0x8] sm:$0xff pattern:$0x75316420]  ;;  %v1200_v60 = vadd.f32 %v1198_v39, %v1127_v20 }
 0x18e   : > { %v1866_v3 = vrot.slane %v1865_v33, 1  ;;  %v1879_v16 = vadd.f32 %v1878_v23, %v1877_v32  ;;  %v1927_v63 = vld.sshfl [vmem:[#allocation1 + $0x10] sm:$0xff pattern:$0x75316420]  ;;  %v1933_v40 = vsel %vm278_vm3, %v1925_v24, 0.0  ;;  %v1940_v18 = vsel %vm258_vm2, %v1926_v52, 0.0 }
 0x18f   : > { %v1873_v10 = vrot.slane %v1872_v11, 1  ;;  %v1928_v42 = vld.sshfl [vmem:[#allocation1 + $0x18] sm:$0xff pattern:$0x75316420]  ;;  %v1934_v9 = vrot.slane %v1933_v40, 4  ;;  %v1859_v7 = vrot.slane %v1858_v59, 1 }
 0x190   : > { %v1867_v44 = vadd.f32 %v1866_v3, %v1865_v33  ;;  %v1880_v62 = vrot.slane %v1879_v16, 1  ;;  %v1941_v12 = vrot.slane %v1940_v18, 4  ;;  %2001 = vst [vmem:[#allocation1] ss:$2 sm:$0xff] %v1997_v48  ;;  %v1947_v56 = vsel %vm258_vm2, %v1927_v63, 0.0 }
 0x191   : > { %v1874_v13 = vadd.f32 %v1873_v10, %v1872_v11  ;;  %v1935_v55 = vadd.f32 %v1934_v9, %v1933_v40  ;;  %v1954_v57 = vsel %vm300_vm6, %v1928_v42, 0.0  ;;  %2003 = vst [vmem:[#allocation1 + $0x10] ss:$2 sm:$0xff] %v1998_v45  ;;  %v1948_v47 = vrot.slane %v1947_v56, 4 }
 0x192   : > { %v1881_v53 = vadd.f32 %v1880_v62, %v1879_v16  ;;  %v1886_v50 = vrot.slane %v1867_v44, 7  ;;  %v1942_v2 = vadd.f32 %v1941_v12, %v1940_v18  ;;  %v1955_v17 = vrot.slane %v1954_v57, 4  ;;  %v1038_v16 = vpop.permute.xlu0 %1037  ;;  %1201 = vst.msk [vmem:[#allocation2 + $0x31] ss:$8 sm:$0x7] %vm3182_vm4, %v1200_v60 }
 0x193   : > { %v1887_v15 = vrot.slane %v1874_v13, 6  ;;  %v1936_v34 = vrot.slane %v1935_v55, 2  ;;  %v1860_v35 = vadd.f32 %v1859_v7, %v1858_v59  ;;  %v1949_v25 = vadd.f32 %v1948_v47, %v1947_v56 }
 0x194   : > { %v1888_v27 = vrot.slane %v1881_v53, 5  ;;  %v1943_v54 = vrot.slane %v1942_v2, 2  ;;  %v1956_v49 = vadd.f32 %v1955_v17, %v1954_v57  ;;  %v2077_v48 = vmul.f32 %v3358_v46, %v3175_v1 }
 0x195   : > { %v1937_v19 = vadd.f32 %v1936_v34, %v1935_v55  ;;  %v1889_v4 = vsel %vm315_vm9, %v1860_v35, %v1886_v50  ;;  %v1950_v22 = vrot.slane %v1949_v25, 2  ;;  %v2149_v59 = vsel %vm324_vm1, %v2147_v8, %v3191_v31  ;;  %v969_v55 = vld [vmem:[#allocation2 + $0x1c] ss:$8 sm:$0x7] }
 0x196   : > { %v1890_v5 = vsel %vm317_vm10, %v1887_v15, %v1888_v27  ;;  %v1944_v36 = vadd.f32 %v1943_v54, %v1942_v2  ;;  %v1957_v38 = vrot.slane %v1956_v49, 2  ;;  %v1039_v7 = vrot.slane %v1038_v16, 1 }
 0x197   : > { %v1891_v37 = vsel %vm319_vm11, %v1889_v4, %v1890_v5  ;;  %v1938_v41 = vrot.slane %v1937_v19, 1  ;;  %v2004_v28 = vld.sshfl [vmem:[#allocation1] sm:$0xff pattern:$0x75316420]  ;;  %v1951_v32 = vadd.f32 %v1950_v22, %v1949_v25  ;;  %v2154_v2 = vmul.f32 %v3354_v21, %v2149_v59  ;;  %v1117_v59 = vpop.permute.xlu1 %1116 }
 0x198   : > { %1892 = vrot.lane.b32.xlu2 %v1891_v37, %s2629_s20  ;;  %v1945_v6 = vrot.slane %v1944_v36, 1  ;;  %v2005_v14 = vld.sshfl [vmem:[#allocation1 + $0x8] sm:$0xff pattern:$0x75316420]  ;;  %v2012_v51 = vsel %vm278_vm3, %v2004_v28, 0.0  ;;  %v1958_v33 = vadd.f32 %v1957_v38, %v1956_v49  ;;  %v1040_v50 = vsel %vm324_vm1, %v1038_v16, %v1039_v7 }
 0x199   : > { %v2006_v23 = vld.sshfl [vmem:[#allocation1 + $0x10] sm:$0xff pattern:$0x75316420]  ;;  %v2007_v58 = vld.sshfl [vmem:[#allocation1 + $0x18] sm:$0xff pattern:$0x75316420]  ;;  %v1939_v44 = vadd.f32 %v1938_v41, %v1937_v19  ;;  %v1042_v54 = vadd.f32 %v1040_v50, %v969_v55  ;;  %v2155_v22 = vmul.f32 %v3358_v46, %v3216_v0 }
 0x19a   : > { %v1946_v11 = vadd.f32 %v1945_v6, %v1944_v36  ;;  %v1952_v24 = vrot.slane %v1951_v32, 1  ;;  %v2013_v52 = vrot.slane %v2012_v51, 4  ;;  %v2019_v3 = vsel %vm258_vm2, %v2005_v14, 0.0  ;;  %2080 = vst [vmem:[#allocation1] ss:$2 sm:$0xff] %v2076_v26 }
 0x19b   : > { %v1959_v63 = vrot.slane %v1958_v33, 1  ;;  %v2020_v40 = vrot.slane %v2019_v3, 4  ;;  %v2026_v43 = vsel %vm258_vm2, %v2006_v23, 0.0  ;;  %v2033_v1 = vsel %vm300_vm6, %v2007_v58, 0.0  ;;  %2082 = vst [vmem:[#allocation1 + $0x10] ss:$2 sm:$0xff] %v2077_v48 }
 0x19c   : > { %v1953_v45 = vadd.f32 %v1952_v24, %v1951_v32  ;;  %v1965_v10 = vrot.slane %v1946_v11, 7  ;;  %v2014_v31 = vadd.f32 %v2013_v52, %v2012_v51  ;;  %v2027_v8 = vrot.slane %v2026_v43, 4  ;;  %1043 = vst.msk [vmem:[#allocation2 + $0x1c] ss:$8 sm:$0x7] %vm3182_vm4, %v1042_v54 }
 0x19d   : > { %v1960_v42 = vadd.f32 %v1959_v63, %v1958_v33  ;;  %v2021_v9 = vadd.f32 %v2020_v40, %v2019_v3  ;;  %v2034_v18 = vrot.slane %v2033_v1, 4  ;;  %v1118_v40 = vrot.slane %v1117_v59, 1 }
 0x19e   : > { %v1966_v62 = vrot.slane %v1953_v45, 6  ;;  %v2015_v12 = vrot.slane %v2014_v31, 2  ;;  %v2028_v13 = vadd.f32 %v2027_v8, %v2026_v43  ;;  %v1968_v47 = vsel %vm315_vm9, %v1939_v44, %v1965_v10  ;;  %v1048_v8 = vld [vmem:[#allocation2 + $0x30] ss:$8 sm:$0x7] }
 0x19f   : > { %v1967_v56 = vrot.slane %v1960_v42, 5  ;;  %v2022_v57 = vrot.slane %v2021_v9, 2  ;;  %v2035_v53 = vadd.f32 %v2034_v18, %v2033_v1 }
 0x1a0   : > { %v2016_v29 = vadd.f32 %v2015_v12, %v2014_v31  ;;  %v2029_v15 = vrot.slane %v2028_v13, 2 }
 0x1a1   : > { %v1969_v34 = vsel %vm317_vm10, %v1966_v62, %v1967_v56  ;;  %v2023_v17 = vadd.f32 %v2022_v57, %v2021_v9  ;;  %v2036_v35 = vrot.slane %v2035_v53, 2  ;;  %v2083_v27 = vld.sshfl [vmem:[#allocation1] sm:$0xff pattern:$0x75316420]  ;;  %v1119_v56 = vsel %vm324_vm1, %v1117_v59, %v1118_v40 }
 0x1a2   : > { %v1970_v25 = vsel %vm319_vm11, %v1968_v47, %v1969_v34  ;;  %v2017_v26 = vrot.slane %v2016_v29, 1  ;;  %v2030_v19 = vadd.f32 %v2029_v15, %v2028_v13  ;;  %v2084_v49 = vld.sshfl [vmem:[#allocation1 + $0x8] sm:$0xff pattern:$0x75316420]  ;;  %v2091_v20 = vsel %vm278_vm3, %v2083_v27, 0.0 }
 0x1a3   : > { %1971 = vrot.lane.b32.xlu0 %v1970_v25, %s2629_s20  ;;  %v2024_v21 = vrot.slane %v2023_v17, 1  ;;  %v2037_v61 = vadd.f32 %v2036_v35, %v2035_v53  ;;  %v2085_v4 = vld.sshfl [vmem:[#allocation1 + $0x10] sm:$0xff pattern:$0x75316420]  ;;  %v2092_v5 = vrot.slane %v2091_v20, 4  ;;  %v2098_v36 = vsel %vm258_vm2, %v2084_v49, 0.0 }
 0x1a4   : > { %v2031_v37 = vrot.slane %v2030_v19, 1  ;;  %v2086_v41 = vld.sshfl [vmem:[#allocation1 + $0x18] sm:$0xff pattern:$0x75316420]  ;;  %v2099_v38 = vrot.slane %v2098_v36, 4  ;;  %v2105_v28 = vsel %vm258_vm2, %v2085_v4, 0.0  ;;  %v2018_v46 = vadd.f32 %v2017_v26, %v2016_v29 }
 0x1a5   : > { %v2025_v39 = vadd.f32 %v2024_v21, %v2023_v17  ;;  %v2038_v6 = vrot.slane %v2037_v61, 1  ;;  %v2093_v32 = vadd.f32 %v2092_v5, %v2091_v20  ;;  %v2106_v14 = vrot.slane %v2105_v28, 4  ;;  %2158 = vst [vmem:[#allocation1] ss:$2 sm:$0xff] %v2154_v2  ;;  %v2221_v2 = vld [vmem:[#allocation2 + $0x18] sm:$0x1f] }
 0x1a6   : > { %v2032_v51 = vadd.f32 %v2031_v37, %v2030_v19  ;;  %v2100_v60 = vadd.f32 %v2099_v38, %v2098_v36  ;;  %v2112_v48 = vsel %vm300_vm6, %v2086_v41, 0.0  ;;  %2160 = vst [vmem:[#allocation1 + $0x10] ss:$2 sm:$0xff] %v2155_v22  ;;  %v2222_v47 = vld [vmem:[#allocation2 + $0x20] sm:$0x1f]  ;;  %v2236_v17 = vmul.f32 0.25, %v2221_v2 }
 0x1a7   : > { %v2039_v33 = vadd.f32 %v2038_v6, %v2037_v61  ;;  %v2044_v23 = vrot.slane %v2025_v39, 7  ;;  %v2094_v58 = vrot.slane %v2093_v32, 2  ;;  %v2107_v0 = vadd.f32 %v2106_v14, %v2105_v28  ;;  %v2223_v29 = vld [vmem:[#allocation2 + $0x28] sm:$0x1f] }
 0x1a8   : > { %v2045_v11 = vrot.slane %v2032_v51, 6  ;;  %v2101_v24 = vrot.slane %v2100_v60, 2  ;;  %v2113_v52 = vrot.slane %v2112_v48, 4  ;;  %v1350_v15 = vld [vmem:[#allocation2 + $0x34] ss:$8 sm:$0x7]  ;;  %v1121_v49 = vadd.f32 %v1119_v56, %v1048_v8 }
 0x1a9   : > { %v2046_v3 = vrot.slane %v2039_v33, 5  ;;  %v2095_v16 = vadd.f32 %v2094_v58, %v2093_v32  ;;  %v2108_v63 = vrot.slane %v2107_v0, 2  ;;  %v2047_v45 = vsel %vm315_vm9, %v2018_v46, %v2044_v23  ;;  %2251 = vst [vmem:[%s3329_s6 + $0x18] sm:$0x1f] %v2236_v17 }
 0x1aa   : > { %v2102_v43 = vadd.f32 %v2101_v24, %v2100_v60  ;;  %v2114_v1 = vadd.f32 %v2113_v52, %v2112_v48  ;;  %v2237_v35 = vmul.f32 0.25, %v2222_v47  ;;  %v2238_v27 = vmul.f32 0.25, %v2223_v29  ;;  %1122 = vst.msk [vmem:[#allocation2 + $0x30] ss:$8 sm:$0x7] %vm3182_vm4, %v1121_v49 }
 0x1ab   : > { %v2048_v10 = vsel %vm317_vm10, %v2045_v11, %v2046_v3  ;;  %v2109_v31 = vadd.f32 %v2108_v63, %v2107_v0  ;;  %v2096_v9 = vrot.slane %v2095_v16, 1  ;;  %v1206_v58 = vld [vmem:[#allocation2 + $0x32] ss:$8 sm:$0x7] }
 0x1ac   : > { %v2049_v42 = vsel %vm319_vm11, %v2047_v45, %v2048_v10  ;;  %v2103_v18 = vrot.slane %v2102_v43, 1  ;;  %v2115_v7 = vrot.slane %v2114_v1, 2  ;;  %v2161_v44 = vld.sshfl [vmem:[#allocation1] sm:$0xff pattern:$0x75316420]  ;;  %v1419_v62 = vpop.permute.xlu2 %1418 }
 0x1ad   : > { %2050 = vrot.lane.b32.xlu1 %v2049_v42, %s2629_s20  ;;  %v2110_v12 = vrot.slane %v2109_v31, 1  ;;  %v2162_v13 = vld.sshfl [vmem:[#allocation1 + $0x8] sm:$0xff pattern:$0x75316420]  ;;  %v2169_v55 = vsel %vm278_vm3, %v2161_v44, 0.0  ;;  %v1420_v57 = vrot.slane %v1419_v62, 1  ;;  %v2097_v38 = vadd.f32 %v2096_v9, %v2095_v16 }
 0x1ae   : > { %v2104_v53 = vadd.f32 %v2103_v18, %v2102_v43  ;;  %v2116_v50 = vadd.f32 %v2115_v7, %v2114_v1  ;;  %v2163_v54 = vld.sshfl [vmem:[#allocation1 + $0x10] sm:$0xff pattern:$0x75316420]  ;;  %v2164_v26 = vld.sshfl [vmem:[#allocation1 + $0x18] sm:$0xff pattern:$0x75316420] }
 0x1af   : > { %v2111_v34 = vadd.f32 %v2110_v12, %v2109_v31  ;;  %v2170_v19 = vrot.slane %v2169_v55, 4  ;;  %v1421_v20 = vsel %vm324_vm1, %v1419_v62, %v1420_v57  ;;  %v2176_v61 = vsel %vm258_vm2, %v2162_v13, 0.0  ;;  %2252 = vst [vmem:[%s3329_s6 + $0x20] sm:$0x1f] %v2237_v35 }
 0x1b0   : > { %v2117_v25 = vrot.slane %v2116_v50, 1  ;;  %v2123_v21 = vrot.slane %v2104_v53, 7  ;;  %v2183_v4 = vsel %vm258_vm2, %v2163_v54, 0.0  ;;  %v2190_v5 = vsel %vm300_vm6, %v2164_v26, 0.0  ;;  %2253 = vst [vmem:[%s3329_s6 + $0x28] sm:$0x1f] %v2238_v27 }
 0x1b1   : > { %v2124_v22 = vrot.slane %v2111_v34, 6  ;;  %v2171_v37 = vadd.f32 %v2170_v19, %v2169_v55  ;;  %v2177_v41 = vrot.slane %v2176_v61, 4  ;;  %v2184_v28 = vrot.slane %v2183_v4, 4  ;;  %v1271_v40 = vld [vmem:[#allocation2 + $0x33] ss:$8 sm:$0x7] }
 0x1b2   : > { %v2118_v36 = vadd.f32 %v2117_v25, %v2116_v50  ;;  %v2191_v39 = vrot.slane %v2190_v5, 4  ;;  %v1423_v6 = vadd.f32 %v1421_v20, %v1350_v15  ;;  %v1261_v32 = vpop.permute.xlu0 %1260  ;;  %v2126_v59 = vsel %vm315_vm9, %v2097_v38, %v2123_v21  ;;  %v1587_v25 = vld [vmem:[#allocation2 + $0x4a] ss:$8 sm:$0x7] }
 0x1b3   : > { %v2172_v51 = vrot.slane %v2171_v37, 2  ;;  %v2178_v60 = vadd.f32 %v2177_v41, %v2176_v61  ;;  %v1262_v48 = vrot.slane %v1261_v32, 1  ;;  %v2185_v33 = vadd.f32 %v2184_v28, %v2183_v4  ;;  %v1429_v49 = vld [vmem:[#allocation2 + $0x48] ss:$8 sm:$0x7] }
 0x1b4   : > { %v2125_v14 = vrot.slane %v2118_v36, 5  ;;  %v2192_v23 = vadd.f32 %v2191_v39, %v2190_v5  ;;  %1424 = vst.msk [vmem:[#allocation2 + $0x34] ss:$8 sm:$0x7] %vm3182_vm4, %v1423_v6 }
 0x1b5   : > { %v2173_v46 = vadd.f32 %v2172_v51, %v2171_v37  ;;  %v2179_v11 = vrot.slane %v2178_v60, 2  ;;  %v1340_v24 = vpop.permute.xlu1 %1339  ;;  %v1263_v52 = vsel %vm324_vm1, %v1261_v32, %v1262_v48  ;;  %v2186_v16 = vrot.slane %v2185_v33, 2  ;;  %v1824_v39 = vld [vmem:[#allocation2 + $0x60] ss:$8 sm:$0x7] }
 0x1b6   : > { %v2127_v0 = vsel %vm317_vm10, %v2124_v22, %v2125_v14  ;;  %v2193_v63 = vrot.slane %v2192_v23, 2  ;;  %v1341_v43 = vrot.slane %v1340_v24, 1  ;;  %v1265_v45 = vadd.f32 %v1263_v52, %v1206_v58  ;;  %v1508_v22 = vld [vmem:[#allocation2 + $0x49] ss:$8 sm:$0x7] }
 0x1b7   : > { %v2128_v3 = vsel %vm319_vm11, %v2126_v59, %v2127_v0  ;;  %v2180_v1 = vadd.f32 %v2179_v11, %v2178_v60  ;;  %v2187_v10 = vadd.f32 %v2186_v16, %v2185_v33  ;;  %v2174_v18 = vrot.slane %v2173_v46, 1  ;;  %v1666_v14 = vld [vmem:[#allocation2 + $0x4b] ss:$8 sm:$0x7] }
 0x1b8   : > { %2129 = vrot.lane.b32.xlu2 %v2128_v3, %s2629_s20  ;;  %v2194_v31 = vadd.f32 %v2193_v63, %v2192_v23  ;;  %v1342_v8 = vsel %vm324_vm1, %v1340_v24, %v1341_v43  ;;  %1266 = vst.msk [vmem:[#allocation2 + $0x32] ss:$8 sm:$0x7] %vm3182_vm4, %v1265_v45  ;;  %v1745_v58 = vld [vmem:[#allocation2 + $0x4c] ss:$8 sm:$0x7] }
 0x1b9   : > { %v2181_v42 = vrot.slane %v2180_v1, 1  ;;  %v1344_v9 = vadd.f32 %v1342_v8, %v1271_v40  ;;  %v2188_v7 = vrot.slane %v2187_v10, 1  ;;  %v2175_v56 = vadd.f32 %v2174_v18, %v2173_v46 }
 0x1ba   : > { %v2195_v44 = vrot.slane %v2194_v31, 1 }
 0x1bb   : > { %v2182_v62 = vadd.f32 %v2181_v42, %v2180_v1  ;;  %1345 = vst.msk [vmem:[#allocation2 + $0x33] ss:$8 sm:$0x7] %vm3182_vm4, %v1344_v9  ;;  %v2189_v12 = vadd.f32 %v2188_v7, %v2187_v10  ;;  %v2061_v1 = vld [vmem:[#allocation2 + $0x63] ss:$8 sm:$0x7] }
 0x1bc   : > { %v2196_v13 = vadd.f32 %v2195_v44, %v2194_v31  ;;  %v1903_v42 = vld [vmem:[#allocation2 + $0x61] ss:$8 sm:$0x7] }
 0x1bd   : > { %v2201_v55 = vrot.slane %v2182_v62, 7  ;;  %v2202_v57 = vrot.slane %v2189_v12, 6  ;;  %v1982_v62 = vld [vmem:[#allocation2 + $0x62] ss:$8 sm:$0x7] }
 0x1be   : > { %v2203_v53 = vrot.slane %v2196_v13, 5 }
 0x1bf   : > { %v2204_v50 = vsel %vm315_vm9, %v2175_v56, %v2201_v55 }
 0x1c0   : > { %v2205_v2 = vsel %vm317_vm10, %v2202_v57, %v2203_v53  ;;  %v2140_v57 = vld [vmem:[#allocation2 + $0x64] ss:$8 sm:$0x7] }
 0x1c1   : > { %v2206_v47 = vsel %vm319_vm11, %v2204_v50, %v2205_v2 }
 0x1c2   : > { %2207 = vrot.lane.b32.xlu0 %v2206_v47, %s2629_s20  ;;  %v2224_v29 = vld [vmem:[#allocation2 + $0x30] sm:$0x1f]  ;;  %v2225_v15 = vld [vmem:[#allocation2 + $0x38] sm:$0x1f]  ;;  %v2226_v34 = vld [vmem:[#allocation2 + $0x40] sm:$0x1f] }
 0x1c3   : > { %v2239_v17 = vmul.f32 0.25, %v2224_v29  ;;  %v2240_v35 = vmul.f32 0.25, %v2225_v15  ;;  %v2241_v27 = vmul.f32 0.25, %v2226_v34 }
 0x1c5   : > { %2254 = vst [vmem:[%s3329_s6 + $0x30] sm:$0x1f] %v2239_v17 }
 0x1c6   : > { %2255 = vst [vmem:[%s3329_s6 + $0x38] sm:$0x1f] %v2240_v35 }
 0x1c7   : > { %2256 = vst [vmem:[%s3329_s6 + $0x40] sm:$0x1f] %v2241_v27 }
 0x1cf   : > { %v1656_v54 = vpop.permute.xlu2 %1655  ;;  %v1498_v26 = vpop.permute.xlu0 %1497 }
 0x1d0   : > { %v1657_v19 = vrot.slane %v1656_v54, 1  ;;  %v1499_v20 = vrot.slane %v1498_v26, 1 }
 0x1d2   : > { %v1658_v21 = vsel %vm324_vm1, %v1656_v54, %v1657_v19  ;;  %v1500_v61 = vsel %vm324_vm1, %v1498_v26, %v1499_v20 }
 0x1d3   : > { %v1660_v4 = vadd.f32 %v1658_v21, %v1587_v25  ;;  %v1502_v5 = vadd.f32 %v1500_v61, %v1429_v49 }
 0x1d5   : > { %1661 = vst.msk [vmem:[#allocation2 + $0x4a] ss:$8 sm:$0x7] %vm3182_vm4, %v1660_v4 }
 0x1d6   : > { %1503 = vst.msk [vmem:[#allocation2 + $0x48] ss:$8 sm:$0x7] %vm3182_vm4, %v1502_v5 }
 0x1dd   : > { %v1577_v36 = vpop.permute.xlu1 %1576 }
 0x1de   : > { %v1578_v37 = vrot.slane %v1577_v36, 1 }
 0x1e0   : > { %v1579_v41 = vsel %vm324_vm1, %v1577_v36, %v1578_v37 }
 0x1e1   : > { %v1581_v38 = vadd.f32 %v1579_v41, %v1508_v22 }
 0x1e3   : > { %1582 = vst.msk [vmem:[#allocation2 + $0x49] ss:$8 sm:$0x7] %vm3182_vm4, %v1581_v38 }
 0x1f2   : > { %v1893_v28 = vpop.permute.xlu2 %1892  ;;  %v1735_v6 = vpop.permute.xlu0 %1734 }
 0x1f3   : > { %v1894_v32 = vrot.slane %v1893_v28, 1  ;;  %v1736_v51 = vrot.slane %v1735_v6, 1 }
 0x1f5   : > { %v1895_v60 = vsel %vm324_vm1, %v1893_v28, %v1894_v32  ;;  %v1737_v48 = vsel %vm324_vm1, %v1735_v6, %v1736_v51 }
 0x1f6   : > { %v1897_v59 = vadd.f32 %v1895_v60, %v1824_v39  ;;  %v1739_v33 = vadd.f32 %v1737_v48, %v1666_v14 }
 0x1f8   : > { %1898 = vst.msk [vmem:[#allocation2 + $0x60] ss:$8 sm:$0x7] %vm3182_vm4, %v1897_v59 }
 0x1f9   : > { %1740 = vst.msk [vmem:[#allocation2 + $0x4b] ss:$8 sm:$0x7] %vm3182_vm4, %v1739_v33 }
 0x1fd   : > { %v1814_v23 = vpop.permute.xlu1 %1813 }
 0x1fe   : > { %v1815_v0 = vrot.slane %v1814_v23, 1 }
 0x200   : > { %v1816_v46 = vsel %vm324_vm1, %v1814_v23, %v1815_v0 }
 0x201   : > { %v1818_v11 = vadd.f32 %v1816_v46, %v1745_v58 }
 0x203   : > { %1819 = vst.msk [vmem:[#allocation2 + $0x4c] ss:$8 sm:$0x7] %vm3182_vm4, %v1818_v11 }
 0x20a   : > { %v2227_v24 = vld [vmem:[#allocation2 + $0x48] sm:$0x1f]  ;;  %v2228_v52 = vld [vmem:[#allocation2 + $0x50] sm:$0x1f]  ;;  %v2229_v3 = vld [vmem:[#allocation2 + $0x58] sm:$0x1f] }
 0x20b   : > { %v2242_v16 = vmul.f32 0.25, %v2227_v24  ;;  %v2243_v63 = vmul.f32 0.25, %v2228_v52  ;;  %v2244_v40 = vmul.f32 0.25, %v2229_v3 }
 0x20d   : > { %2257 = vst [vmem:[%s3329_s6 + $0x48] sm:$0x1f] %v2242_v16 }
 0x20e   : > { %2258 = vst [vmem:[%s3329_s6 + $0x50] sm:$0x1f] %v2243_v63 }
 0x20f   : > { %2259 = vst [vmem:[%s3329_s6 + $0x58] sm:$0x1f] %v2244_v40 }
 0x212   : > { %v2130_v43 = vpop.permute.xlu2 %2129 }
 0x213   : > { %v2131_v45 = vrot.slane %v2130_v43, 1 }
 0x215   : > { %v2132_v10 = vsel %vm324_vm1, %v2130_v43, %v2131_v45  ;;  %v1972_v31 = vpop.permute.xlu0 %1971 }
 0x216   : > { %v2134_v8 = vadd.f32 %v2132_v10, %v2061_v1  ;;  %v1973_v9 = vrot.slane %v1972_v31, 1 }
 0x218   : > { %2135 = vst.msk [vmem:[#allocation2 + $0x63] ss:$8 sm:$0x7] %vm3182_vm4, %v2134_v8  ;;  %v1974_v18 = vsel %vm324_vm1, %v1972_v31, %v1973_v9 }
 0x219   : > { %v1976_v7 = vadd.f32 %v1974_v18, %v1903_v42 }
 0x21b   : > { %1977 = vst.msk [vmem:[#allocation2 + $0x61] ss:$8 sm:$0x7] %vm3182_vm4, %v1976_v7 }
 0x21f   : > { %v2051_v44 = vpop.permute.xlu1 %2050 }
 0x220   : > { %v2052_v12 = vrot.slane %v2051_v44, 1 }
 0x222   : > { %v2053_v13 = vsel %vm324_vm1, %v2051_v44, %v2052_v12 }
 0x223   : > { %v2055_v55 = vadd.f32 %v2053_v13, %v1982_v62 }
 0x225   : > { %2056 = vst.msk [vmem:[#allocation2 + $0x62] ss:$8 sm:$0x7] %vm3182_vm4, %v2055_v55 }
 0x234   : > { %v2208_v56 = vpop.permute.xlu0 %2207 }
 0x235   : > { %v2209_v53 = vrot.slane %v2208_v56, 1 }
 0x237   : > { %v2210_v50 = vsel %vm324_vm1, %v2208_v56, %v2209_v53 }
 0x238   : > { %v2212_v2 = vadd.f32 %v2210_v50, %v2140_v57 }
 0x23a   : > { %2213 = vst.msk [vmem:[#allocation2 + $0x64] ss:$8 sm:$0x7] %vm3182_vm4, %v2212_v2 }
 0x241   : > { %v2230_v47 = vld [vmem:[#allocation2 + $0x60] sm:$0x1f]  ;;  %v2231_v29 = vld [vmem:[#allocation2 + $0x68] sm:$0x1f]  ;;  %v2232_v15 = vld [vmem:[#allocation2 + $0x70] sm:$0x1f] }
 0x242   : > { %v2245_v34 = vmul.f32 0.25, %v2230_v47  ;;  %v2246_v17 = vmul.f32 0.25, %v2231_v29  ;;  %v2247_v35 = vmul.f32 0.25, %v2232_v15 }
 0x244   : > { %2260 = vst [vmem:[%s3329_s6 + $0x60] sm:$0x1f] %v2245_v34 }
 0x245   : > { %2261 = vst [vmem:[%s3329_s6 + $0x68] sm:$0x1f] %v2246_v17 }
 0x246   : > { %2262 = vst [vmem:[%s3329_s6 + $0x70] sm:$0x1f] %v2247_v35 }
 0x247 PF: > { %s18_s14 = sadd.s32 1, %s2604_s14   ;;  %s3516_s9 = smov %s2588_s10 }
 0x248   : > { %p15_p0 = scmp.ge.s32.totalorder %s18_s14, 4   ;;  %s3517_s10 = smov %s2592_s11 }
 0x249   : > { %s3518_s11 = smov %s2695_s21  ;;  %s3519_s12 = smov %s2600_s13 }
 0x24a   : > { %s3520_s13 = smov %s3522_s16  ;;  %17 = sbr.rel (!%p15_p0) target bundleno = 6 (0x6), region = 138 }
 0x24f   :  { %2284 = vsyncpa [#allocation4], 1 }
 0x250   :  { %2286 = vsyncpa [#allocation4 + $0x1], 1 }
 0x251   :  { %2287 = vsyncpa [#allocation6], 1 }
 0x252   :  { %2289 = vsyncpa [#allocation6 + $0x1], 1 }

</bundles_post_ra>
